<compile_context>
chip_gen: v7x
topology: tpu7x:2x2x1
jax: 0.10.0
libtpu: 0.0.40
codegen_flags: <defaults>
</compile_context>

<pallas_src>
import math
import functools

import jax
import jax.numpy as jnp
from jax.experimental import pallas as pl
from jax.experimental.pallas import tpu as pltpu

# ----------------------------- model config ---------------------------------
D_MODEL = 32          # d_model
D_FF = 64             # d_ff
NUM_HEADS = 4         # head_num
CLIP = 4              # clipping_distance
N_LAYERS = 2          # N (kept small for the demo; semantics identical per layer)
BATCH = 2
SEQ = 8
D_HEAD = D_MODEL // NUM_HEADS
R_BUCKETS = 2 * CLIP + 1
LN_EPS = 1e-5
MASK_VAL = -1000000.0


# ------------------------------ Pallas kernel --------------------------------
def encoder_kernel(num_heads,
                   x_ref, wqkv_ref, wo_ref, ekT_ref, ev_ref,
                   w1_ref, b1_ref, w2_ref, b2_ref,
                   g1_ref, be1_ref, g2_ref, be2_ref,
                   oh_ref, keep_ref,
                   o_ref, x_scr):
    """One grid step == one encoder layer, operating on the whole (B*S, D) slab."""
    layer = pl.program_id(0)

    # Seed the resident activation buffer from HBM input at the first layer only.
    @pl.when(layer == 0)
    def _():
        x_scr[...] = x_ref[...]

    x2 = x_scr[...]                                   # (BS, D) resident activations
    BS, D = x2.shape
    dh = D // num_heads
    scale = 1.0 / math.sqrt(dh)

    # --- fused Q/K/V projection: one MXU matmul instead of three ---
    qkv = jnp.dot(x2, wqkv_ref[...], preferred_element_type=jnp.float32)   # (BS, 3D)
    q = qkv[:, :D]
    k = qkv[:, D:2 * D]
    v = qkv[:, 2 * D:]

    ekT = ekT_ref[...]                                # (dh, R)   emb_k^T (per layer)
    ev = ev_ref[...]                                  # (R, dh)   emb_v   (per layer)
    oh = oh_ref[...]                                  # (BS, R, BS) bucket one-hot (f32)
    keep = keep_ref[...] > 0.5                        # (BS, BS) same-batch & valid-key

    # Per-head loop (static unroll, H small).  At dh=8/S=8 batching heads through a
    # single dot_general would require leading-dim relayouts that cost more than the
    # four tiny matmuls they replace.
    head_outs = []
    for h in range(num_heads):
        qh = q[:, h * dh:(h + 1) * dh]                # (BS, dh)
        kh = k[:, h * dh:(h + 1) * dh]
        vh = v[:, h * dh:(h + 1) * dh]

        # content scores (MXU) + bucketed relative-position scores (MXU + select)
        s = jnp.dot(qh, kh.T, preferred_element_type=jnp.float32)          # (BS, BS)
        qe = jnp.dot(qh, ekT, preferred_element_type=jnp.float32)          # (BS, R)
        s = s + jnp.sum(qe[:, :, None] * oh, axis=1)                       # gather-by-bucket
        s = jnp.where(keep, s * scale, MASK_VAL)

        # softmax over the folded key axis; masked lanes underflow to exactly 0,
        # so cross-batch keys contribute nothing.
        m = jnp.max(s, axis=-1, keepdims=True)
        e = jnp.exp(s - m)
        attn = e / jnp.sum(e, axis=-1, keepdims=True)

        out = jnp.dot(attn, vh, preferred_element_type=jnp.float32)        # (BS, dh)
        ab = jnp.sum(attn[:, None, :] * oh, axis=-1)                       # (BS, R) bucket mass
        out = out + jnp.dot(ab, ev, preferred_element_type=jnp.float32)    # + RPR values
        head_outs.append(out)

    concat = jnp.concatenate(head_outs, axis=-1)                           # (BS, D)
    attn_out = jnp.dot(concat, wo_ref[...], preferred_element_type=jnp.float32)

    # --- AddNorm 1 ---
    y = x2 + attn_out
    mu = jnp.mean(y, axis=-1, keepdims=True)
    var = jnp.mean((y - mu) ** 2, axis=-1, keepdims=True)
    y = (y - mu) * jax.lax.rsqrt(var + LN_EPS) * g1_ref[...] + be1_ref[...]

    # --- position-wise FFN ---
    hid = jnp.maximum(
        jnp.dot(y, w1_ref[...], preferred_element_type=jnp.float32) + b1_ref[...], 0.0)
    z = jnp.dot(hid, w2_ref[...], preferred_element_type=jnp.float32) + b2_ref[...]

    # --- AddNorm 2 ---
    y2 = y + z
    mu2 = jnp.mean(y2, axis=-1, keepdims=True)
    var2 = jnp.mean((y2 - mu2) ** 2, axis=-1, keepdims=True)
    y2 = (y2 - mu2) * jax.lax.rsqrt(var2 + LN_EPS) * g2_ref[...] + be2_ref[...]

    x_scr[...] = y2                     # carry activations to the next layer
    o_ref[...] = y2                     # resident output block; flushed to HBM once


# ------------------------------ wrapper ---------------------------------------
def encoder_with_rpr(x, valid_lens, layer_params, *, num_heads=NUM_HEADS, clip=CLIP):
    """Full EncoderWithRPR forward as a single fused pallas_call over layers."""
    B, S, D = x.shape
    BS = B * S
    n_layers = len(layer_params)
    dh = D // num_heads
    R = 2 * clip + 1
    F = layer_params[0]["w1"].shape[1]

    # --- glue (host/XLA side): stack per-layer params along a leading layer axis ---
    st = lambda name: jnp.stack([p[name] for p in layer_params], axis=0)
    wqkv = jnp.stack(
        [jnp.concatenate([p["wq"], p["wk"], p["wv"]], axis=1) for p in layer_params],
        axis=0)                                                    # (N, D, 3D)
    wo = st("wo")                                                  # (N, D, D)
    ekT = jnp.stack([p["emb_k"].T for p in layer_params], axis=0)  # (N, dh, R)
    ev = st("emb_v")                                               # (N, R, dh)
    w1, b1, w2, b2 = st("w1"), st("b1"), st("w2"), st("b2")
    g1, be1, g2, be2 = st("g1"), st("be1"), st("g2"), st("be2")

    # --- position-only tables, shared by every layer and every head ---
    idx = jnp.arange(BS)
    b_id, pos = idx // S, idx % S
    dist = jnp.clip(pos[None, :] - pos[:, None], -clip, clip) + clip           # (BS, BS)
    onehot = (dist[:, None, :] == jnp.arange(R)[None, :, None]).astype(jnp.float32)
    keep = ((b_id[None, :] == b_id[:, None])
            & (pos[None, :] < valid_lens[b_id][:, None])).astype(jnp.float32)  # (BS, BS)

    x2 = x.reshape(BS, D)

    def stacked(shape):   # per-layer tensor: leading layer dim selected by grid index
        nz = (0,) * len(shape)
        return pl.BlockSpec((None,) + tuple(shape), lambda l, _nz=nz: (l,) + _nz)

    def shared(shape):    # layer-invariant tensor: same block every step (DMA'd once)
        nz = (0,) * len(shape)
        return pl.BlockSpec(tuple(shape), lambda l, _nz=nz: _nz)

    grid_spec = pltpu.PrefetchScalarGridSpec(
        num_scalar_prefetch=0,
        grid=(n_layers,),
        in_specs=[
            shared((BS, D)),                                  # x (read at layer 0 only)
            stacked((D, 3 * D)),                              # fused Wq|Wk|Wv
            stacked((D, D)),                                  # Wo
            stacked((dh, R)), stacked((R, dh)),               # emb_k^T, emb_v
            stacked((D, F)), stacked((1, F)),                 # W1, b1
            stacked((F, D)), stacked((1, D)),                 # W2, b2
            stacked((1, D)), stacked((1, D)),                 # LN1 gamma, beta
            stacked((1, D)), stacked((1, D)),                 # LN2 gamma, beta
            shared((BS, R, BS)),                              # bucket one-hot
            shared((BS, BS)),                                 # batch/valid-len mask
        ],
        out_specs=pl.BlockSpec((BS, D), lambda l: (0, 0)),
        scratch_shapes=[pltpu.VMEM((BS, D), jnp.float32)],    # resident activations
    )

    out = pl.pallas_call(
        functools.partial(encoder_kernel, num_heads),
        grid_spec=grid_spec,
        out_shape=jax.ShapeDtypeStruct((BS, D), jnp.float32),
        compiler_params=pltpu.CompilerParams(
            dimension_semantics=("arbitrary",)),              # layer axis carries state
    )(x2, wqkv, wo, ekT, ev, w1, b1, w2, b2, g1, be1, g2, be2, onehot, keep)
    # TODO(synk): on v7x a parallel (e.g. row-split) grid axis would be needed to use
    # the second TensorCore; at B*S=16 rows it is pure overhead, so it is omitted.
    return out.reshape(B, S, D)


# ------------------------------ pure-JAX reference ---------------------------
def ref_block(x, valid_lens, p, H=NUM_HEADS, clip=CLIP):
    B, S, D = x.shape
    dh = D // H
    q = x @ p["wq"]; k = x @ p["wk"]; v = x @ p["wv"]
    split = lambda t: t.reshape(B, S, H, dh).transpose(0, 2, 1, 3)
    qh, kh, vh = split(q), split(k), split(v)
    rng = jnp.arange(S)
    dist = jnp.clip(rng[None, :] - rng[:, None], -clip, clip) + clip
    pk = p["emb_k"][dist]; pv = p["emb_v"][dist]
    s = (jnp.einsum("bhqd,bhkd->bhqk", qh, kh)
         + jnp.einsum("bhqd,qkd->bhqk", qh, pk)) / math.sqrt(dh)
    mask = (jnp.arange(S)[None, :] < valid_lens[:, None])[:, None, None, :]
    s = jnp.where(mask, s, MASK_VAL)
    attn = jax.nn.softmax(s, axis=-1)
    out = (jnp.einsum("bhqk,bhkd->bhqd", attn, vh)
           + jnp.einsum("bhqk,qkd->bhqd", attn, pv))
    out = out.transpose(0, 2, 1, 3).reshape(B, S, D) @ p["wo"]

    def ln(t, g, be):
        mu = t.mean(-1, keepdims=True)
        var = ((t - mu) ** 2).mean(-1, keepdims=True)
        return (t - mu) / jnp.sqrt(var + LN_EPS) * g + be

    y = ln(x + out, p["g1"], p["be1"])
    h = jnp.maximum(y @ p["w1"] + p["b1"], 0.0)
    z = h @ p["w2"] + p["b2"]
    return ln(y + z, p["g2"], p["be2"])


def ref_encoder(x, valid_lens, layer_params):
    for p in layer_params:
        x = ref_block(x, valid_lens, p)
    return x


# ------------------------------ params ---------------------------------------
def init_layer_params(key):
    ks = jax.random.split(key, 10)
    w = lambda k, shape: jax.random.normal(k, shape, jnp.float32) * 0.05
    return dict(
        wq=w(ks[0], (D_MODEL, D_MODEL)),
        wk=w(ks[1], (D_MODEL, D_MODEL)),
        wv=w(ks[2], (D_MODEL, D_MODEL)),
        wo=w(ks[3], (D_MODEL, D_MODEL)),
        emb_k=w(ks[4], (R_BUCKETS, D_HEAD)),
        emb_v=w(ks[5], (R_BUCKETS, D_HEAD)),
        w1=w(ks[6], (D_MODEL, D_FF)),
        b1=w(ks[7], (1, D_FF)),
        w2=w(ks[8], (D_FF, D_MODEL)),
        b2=w(ks[9], (1, D_MODEL)),
        g1=jnp.ones((1, D_MODEL), jnp.float32),
        be1=jnp.zeros((1, D_MODEL), jnp.float32),
        g2=jnp.ones((1, D_MODEL), jnp.float32),
        be2=jnp.zeros((1, D_MODEL), jnp.float32),
    )


if __name__ == "__main__":
    key = jax.random.PRNGKey(0)
    k_x, *k_layers = jax.random.split(key, N_LAYERS + 1)

    x = jax.random.normal(k_x, (BATCH, SEQ, D_MODEL), jnp.float32)
    valid_lens = jnp.array([5, 8], dtype=jnp.int32)       # per-batch valid lengths
    layer_params = [init_layer_params(k) for k in k_layers]

    out = jax.block_until_ready(encoder_with_rpr(x, valid_lens, layer_params))
    ref = jax.block_until_ready(ref_encoder(x, valid_lens, layer_params))

    assert out.shape == (BATCH, SEQ, D_MODEL)
    assert jnp.allclose(out, ref, atol=1e-4, rtol=1e-4)

    print("KERNEL_OK")
</pallas_src>

<mosaic_0001>
module attributes {stable_mosaic.version = 11 : i64} {
  func.func @encoder_kernel(%arg0: i32, %arg1: memref<16x32xf32, #tpu.memory_space<vmem>>, %arg2: memref<1x32x96xf32, #tpu.memory_space<vmem>>, %arg3: memref<1x32x32xf32, #tpu.memory_space<vmem>>, %arg4: memref<1x8x9xf32, #tpu.memory_space<vmem>>, %arg5: memref<1x9x8xf32, #tpu.memory_space<vmem>>, %arg6: memref<1x32x64xf32, #tpu.memory_space<vmem>>, %arg7: memref<1x1x64xf32, #tpu.memory_space<vmem>>, %arg8: memref<1x64x32xf32, #tpu.memory_space<vmem>>, %arg9: memref<1x1x32xf32, #tpu.memory_space<vmem>>, %arg10: memref<1x1x32xf32, #tpu.memory_space<vmem>>, %arg11: memref<1x1x32xf32, #tpu.memory_space<vmem>>, %arg12: memref<1x1x32xf32, #tpu.memory_space<vmem>>, %arg13: memref<1x1x32xf32, #tpu.memory_space<vmem>>, %arg14: memref<16x9x16xf32, #tpu.memory_space<vmem>>, %arg15: memref<16x16xf32, #tpu.memory_space<vmem>>, %arg16: memref<16x32xf32, #tpu.memory_space<vmem>>, %arg17: memref<16x32xf32, #tpu.memory_space<vmem>>) attributes {dimension_semantics = [#tpu.dimension_semantics<arbitrary>], iteration_bounds = array<i64: 2>, scalar_prefetch = 0 : i64, scratch_operands = 1 : i64, tpu.core_type = #tpu.core_type<tc>, window_params = [{pipeline_mode = #tpu.pipeline_mode<synchronous>, transform_indices = @transform_0, window_bounds = array<i64: 16, 32>}, {transform_indices = @transform_1, window_bounds = array<i64: 1, 32, 96>}, {transform_indices = @transform_2, window_bounds = array<i64: 1, 32, 32>}, {transform_indices = @transform_3, window_bounds = array<i64: 1, 8, 9>}, {transform_indices = @transform_4, window_bounds = array<i64: 1, 9, 8>}, {transform_indices = @transform_5, window_bounds = array<i64: 1, 32, 64>}, {transform_indices = @transform_6, window_bounds = array<i64: 1, 1, 64>}, {transform_indices = @transform_7, window_bounds = array<i64: 1, 64, 32>}, {transform_indices = @transform_8, window_bounds = array<i64: 1, 1, 32>}, {transform_indices = @transform_9, window_bounds = array<i64: 1, 1, 32>}, {transform_indices = @transform_10, window_bounds = array<i64: 1, 1, 32>}, {transform_indices = @transform_11, window_bounds = array<i64: 1, 1, 32>}, {transform_indices = @transform_12, window_bounds = array<i64: 1, 1, 32>}, {pipeline_mode = #tpu.pipeline_mode<synchronous>, transform_indices = @transform_13, window_bounds = array<i64: 16, 9, 16>}, {pipeline_mode = #tpu.pipeline_mode<synchronous>, transform_indices = @transform_14, window_bounds = array<i64: 16, 16>}, {pipeline_mode = #tpu.pipeline_mode<synchronous>, transform_indices = @transform_15, window_bounds = array<i64: 16, 32>}]} {
    %c0_i32 = arith.constant 0 : i32
    %0 = arith.cmpi eq, %arg0, %c0_i32 : i32
    %1 = arith.extui %0 : i1 to i32
    %c0_i32_0 = arith.constant 0 : i32
    %2 = arith.cmpi ne, %1, %c0_i32_0 : i32
    scf.if %2 {
      %c0_102 = arith.constant 0 : index
      %c0_103 = arith.constant 0 : index
      %218 = vector.load %arg1[%c0_102, %c0_103] : memref<16x32xf32, #tpu.memory_space<vmem>>, vector<16x32xf32>
      %c0_104 = arith.constant 0 : index
      %c0_105 = arith.constant 0 : index
      %219 = vector.load %arg17[%c0_104, %c0_105] : memref<16x32xf32, #tpu.memory_space<vmem>>, vector<16x32xf32>
      tpu.vector_store %arg17[%c0_104, %c0_105], %218 {strides = array<i32>} : memref<16x32xf32, #tpu.memory_space<vmem>>, vector<16x32xf32>,
    } else {
    }
    %c0 = arith.constant 0 : index
    %c0_1 = arith.constant 0 : index
    %3 = vector.load %arg17[%c0, %c0_1] : memref<16x32xf32, #tpu.memory_space<vmem>>, vector<16x32xf32>
    %c0_2 = arith.constant 0 : index
    %c0_3 = arith.constant 0 : index
    %c0_4 = arith.constant 0 : index
    %4 = vector.load %arg2[%c0_2, %c0_3, %c0_4] : memref<1x32x96xf32, #tpu.memory_space<vmem>>, vector<1x32x96xf32>
    %5 = vector.shape_cast %4 : vector<1x32x96xf32> to vector<32x96xf32>
    %cst = arith.constant dense<0.000000e+00> : vector<16x96xf32>
    %6 = tpu.matmul %3, %5, %cst {dimension_numbers = #tpu.dot_dimension_numbers<[1], [0], [0], [1], [0, 0, 1, 1], [], []>} : vector<16x32xf32>, vector<32x96xf32>, vector<16x96xf32> -> vector<16x96xf32>
    %7 = vector.extract_strided_slice %6 {offsets = [0, 0], sizes = [16, 32], strides = [1, 1]} : vector<16x96xf32> to vector<16x32xf32>
    %8 = vector.extract_strided_slice %6 {offsets = [0, 32], sizes = [16, 32], strides = [1, 1]} : vector<16x96xf32> to vector<16x32xf32>
    %9 = vector.extract_strided_slice %6 {offsets = [0, 64], sizes = [16, 32], strides = [1, 1]} : vector<16x96xf32> to vector<16x32xf32>
    %c0_5 = arith.constant 0 : index
    %c0_6 = arith.constant 0 : index
    %c0_7 = arith.constant 0 : index
    %10 = vector.load %arg4[%c0_5, %c0_6, %c0_7] : memref<1x8x9xf32, #tpu.memory_space<vmem>>, vector<1x8x9xf32>
    %11 = vector.shape_cast %10 : vector<1x8x9xf32> to vector<8x9xf32>
    %c0_8 = arith.constant 0 : index
    %c0_9 = arith.constant 0 : index
    %c0_10 = arith.constant 0 : index
    %12 = vector.load %arg5[%c0_8, %c0_9, %c0_10] : memref<1x9x8xf32, #tpu.memory_space<vmem>>, vector<1x9x8xf32>
    %13 = vector.shape_cast %12 : vector<1x9x8xf32> to vector<9x8xf32>
    %c0_11 = arith.constant 0 : index
    %c0_12 = arith.constant 0 : index
    %c0_13 = arith.constant 0 : index
    %14 = vector.load %arg14[%c0_11, %c0_12, %c0_13] : memref<16x9x16xf32, #tpu.memory_space<vmem>>, vector<16x9x16xf32>
    %c0_14 = arith.constant 0 : index
    %c0_15 = arith.constant 0 : index
    %15 = vector.load %arg15[%c0_14, %c0_15] : memref<16x16xf32, #tpu.memory_space<vmem>>, vector<16x16xf32>
    %cst_16 = arith.constant 5.000000e-01 : f32
    %16 = vector.broadcast %cst_16 : f32 to vector<16x16xf32>
    %17 = arith.cmpf ogt, %15, %16 : vector<16x16xf32>
    %18 = vector.extract_strided_slice %7 {offsets = [0, 0], sizes = [16, 8], strides = [1, 1]} : vector<16x32xf32> to vector<16x8xf32>
    %19 = vector.extract_strided_slice %8 {offsets = [0, 0], sizes = [16, 8], strides = [1, 1]} : vector<16x32xf32> to vector<16x8xf32>
    %20 = vector.extract_strided_slice %9 {offsets = [0, 0], sizes = [16, 8], strides = [1, 1]} : vector<16x32xf32> to vector<16x8xf32>
    %21 = tpu.transpose %19, [1, 0] : vector<16x8xf32> -> vector<8x16xf32>
    %cst_17 = arith.constant dense<0.000000e+00> : vector<16x16xf32>
    %22 = tpu.matmul %18, %21, %cst_17 {dimension_numbers = #tpu.dot_dimension_numbers<[1], [0], [0], [1], [0, 0, 1, 1], [], []>} : vector<16x8xf32>, vector<8x16xf32>, vector<16x16xf32> -> vector<16x16xf32>
    %cst_18 = arith.constant dense<0.000000e+00> : vector<16x9xf32>
    %23 = tpu.matmul %18, %11, %cst_18 {dimension_numbers = #tpu.dot_dimension_numbers<[1], [0], [0], [1], [0, 0, 1, 1], [], []>} : vector<16x8xf32>, vector<8x9xf32>, vector<16x9xf32> -> vector<16x9xf32>
    %24 = vector.shape_cast %23 : vector<16x9xf32> to vector<16x9x1xf32>
    %25 = vector.broadcast %24 : vector<16x9x1xf32> to vector<16x9x16xf32>
    %26 = arith.mulf %25, %14 : vector<16x9x16xf32>
    %cst_19 = arith.constant dense<0.000000e+00> : vector<16x16xf32>
    %27 = vector.multi_reduction <add>, %26, %cst_19 [1] : vector<16x9x16xf32> to vector<16x16xf32>
    %28 = arith.addf %22, %27 : vector<16x16xf32>
    %cst_20 = arith.constant 0.353553385 : f32
    %29 = vector.broadcast %cst_20 : f32 to vector<16x16xf32>
    %30 = arith.mulf %28, %29 : vector<16x16xf32>
    %cst_21 = arith.constant -1.000000e+06 : f32
    %31 = vector.broadcast %cst_21 : f32 to vector<16x16xf32>
    %32 = arith.select %17, %30, %31 : vector<16x16xi1>, vector<16x16xf32>
    %cst_22 = arith.constant dense<0xFF800000> : vector<16xf32>
    %33 = vector.multi_reduction <maximumf>, %32, %cst_22 [1] : vector<16x16xf32> to vector<16xf32>
    %34 = vector.shape_cast %33 : vector<16xf32> to vector<16x1xf32>
    %35 = vector.broadcast %34 : vector<16x1xf32> to vector<16x16xf32>
    %36 = arith.subf %32, %35 : vector<16x16xf32>
    %37 = math.exp %36 : vector<16x16xf32>
    %cst_23 = arith.constant dense<0.000000e+00> : vector<16xf32>
    %38 = vector.multi_reduction <add>, %37, %cst_23 [1] : vector<16x16xf32> to vector<16xf32>
    %39 = vector.shape_cast %38 : vector<16xf32> to vector<16x1xf32>
    %40 = vector.broadcast %39 : vector<16x1xf32> to vector<16x16xf32>
    %41 = arith.divf %37, %40 : vector<16x16xf32>
    %cst_24 = arith.constant dense<0.000000e+00> : vector<16x8xf32>
    %42 = tpu.matmul %41, %20, %cst_24 {dimension_numbers = #tpu.dot_dimension_numbers<[1], [0], [0], [1], [0, 0, 1, 1], [], []>} : vector<16x16xf32>, vector<16x8xf32>, vector<16x8xf32> -> vector<16x8xf32>
    %43 = vector.shape_cast %41 : vector<16x16xf32> to vector<16x1x16xf32>
    %44 = vector.broadcast %43 : vector<16x1x16xf32> to vector<16x9x16xf32>
    %45 = arith.mulf %44, %14 : vector<16x9x16xf32>
    %cst_25 = arith.constant dense<0.000000e+00> : vector<16x9xf32>
    %46 = vector.multi_reduction <add>, %45, %cst_25 [2] : vector<16x9x16xf32> to vector<16x9xf32>
    %cst_26 = arith.constant dense<0.000000e+00> : vector<16x8xf32>
    %47 = tpu.matmul %46, %13, %cst_26 {dimension_numbers = #tpu.dot_dimension_numbers<[1], [0], [0], [1], [0, 0, 1, 1], [], []>} : vector<16x9xf32>, vector<9x8xf32>, vector<16x8xf32> -> vector<16x8xf32>
    %48 = arith.addf %42, %47 : vector<16x8xf32>
    %49 = vector.extract_strided_slice %7 {offsets = [0, 8], sizes = [16, 8], strides = [1, 1]} : vector<16x32xf32> to vector<16x8xf32>
    %50 = vector.extract_strided_slice %8 {offsets = [0, 8], sizes = [16, 8], strides = [1, 1]} : vector<16x32xf32> to vector<16x8xf32>
    %51 = vector.extract_strided_slice %9 {offsets = [0, 8], sizes = [16, 8], strides = [1, 1]} : vector<16x32xf32> to vector<16x8xf32>
    %52 = tpu.transpose %50, [1, 0] : vector<16x8xf32> -> vector<8x16xf32>
    %cst_27 = arith.constant dense<0.000000e+00> : vector<16x16xf32>
    %53 = tpu.matmul %49, %52, %cst_27 {dimension_numbers = #tpu.dot_dimension_numbers<[1], [0], [0], [1], [0, 0, 1, 1], [], []>} : vector<16x8xf32>, vector<8x16xf32>, vector<16x16xf32> -> vector<16x16xf32>
    %cst_28 = arith.constant dense<0.000000e+00> : vector<16x9xf32>
    %54 = tpu.matmul %49, %11, %cst_28 {dimension_numbers = #tpu.dot_dimension_numbers<[1], [0], [0], [1], [0, 0, 1, 1], [], []>} : vector<16x8xf32>, vector<8x9xf32>, vector<16x9xf32> -> vector<16x9xf32>
    %55 = vector.shape_cast %54 : vector<16x9xf32> to vector<16x9x1xf32>
    %56 = vector.broadcast %55 : vector<16x9x1xf32> to vector<16x9x16xf32>
    %57 = arith.mulf %56, %14 : vector<16x9x16xf32>
    %cst_29 = arith.constant dense<0.000000e+00> : vector<16x16xf32>
    %58 = vector.multi_reduction <add>, %57, %cst_29 [1] : vector<16x9x16xf32> to vector<16x16xf32>
    %59 = arith.addf %53, %58 : vector<16x16xf32>
    %cst_30 = arith.constant 0.353553385 : f32
    %60 = vector.broadcast %cst_30 : f32 to vector<16x16xf32>
    %61 = arith.mulf %59, %60 : vector<16x16xf32>
    %cst_31 = arith.constant -1.000000e+06 : f32
    %62 = vector.broadcast %cst_31 : f32 to vector<16x16xf32>
    %63 = arith.select %17, %61, %62 : vector<16x16xi1>, vector<16x16xf32>
    %cst_32 = arith.constant dense<0xFF800000> : vector<16xf32>
    %64 = vector.multi_reduction <maximumf>, %63, %cst_32 [1] : vector<16x16xf32> to vector<16xf32>
    %65 = vector.shape_cast %64 : vector<16xf32> to vector<16x1xf32>
    %66 = vector.broadcast %65 : vector<16x1xf32> to vector<16x16xf32>
    %67 = arith.subf %63, %66 : vector<16x16xf32>
    %68 = math.exp %67 : vector<16x16xf32>
    %cst_33 = arith.constant dense<0.000000e+00> : vector<16xf32>
    %69 = vector.multi_reduction <add>, %68, %cst_33 [1] : vector<16x16xf32> to vector<16xf32>
    %70 = vector.shape_cast %69 : vector<16xf32> to vector<16x1xf32>
    %71 = vector.broadcast %70 : vector<16x1xf32> to vector<16x16xf32>
    %72 = arith.divf %68, %71 : vector<16x16xf32>
    %cst_34 = arith.constant dense<0.000000e+00> : vector<16x8xf32>
    %73 = tpu.matmul %72, %51, %cst_34 {dimension_numbers = #tpu.dot_dimension_numbers<[1], [0], [0], [1], [0, 0, 1, 1], [], []>} : vector<16x16xf32>, vector<16x8xf32>, vector<16x8xf32> -> vector<16x8xf32>
    %74 = vector.shape_cast %72 : vector<16x16xf32> to vector<16x1x16xf32>
    %75 = vector.broadcast %74 : vector<16x1x16xf32> to vector<16x9x16xf32>
    %76 = arith.mulf %75, %14 : vector<16x9x16xf32>
    %cst_35 = arith.constant dense<0.000000e+00> : vector<16x9xf32>
    %77 = vector.multi_reduction <add>, %76, %cst_35 [2] : vector<16x9x16xf32> to vector<16x9xf32>
    %cst_36 = arith.constant dense<0.000000e+00> : vector<16x8xf32>
    %78 = tpu.matmul %77, %13, %cst_36 {dimension_numbers = #tpu.dot_dimension_numbers<[1], [0], [0], [1], [0, 0, 1, 1], [], []>} : vector<16x9xf32>, vector<9x8xf32>, vector<16x8xf32> -> vector<16x8xf32>
    %79 = arith.addf %73, %78 : vector<16x8xf32>
    %80 = vector.extract_strided_slice %7 {offsets = [0, 16], sizes = [16, 8], strides = [1, 1]} : vector<16x32xf32> to vector<16x8xf32>
    %81 = vector.extract_strided_slice %8 {offsets = [0, 16], sizes = [16, 8], strides = [1, 1]} : vector<16x32xf32> to vector<16x8xf32>
    %82 = vector.extract_strided_slice %9 {offsets = [0, 16], sizes = [16, 8], strides = [1, 1]} : vector<16x32xf32> to vector<16x8xf32>
    %83 = tpu.transpose %81, [1, 0] : vector<16x8xf32> -> vector<8x16xf32>
    %cst_37 = arith.constant dense<0.000000e+00> : vector<16x16xf32>
    %84 = tpu.matmul %80, %83, %cst_37 {dimension_numbers = #tpu.dot_dimension_numbers<[1], [0], [0], [1], [0, 0, 1, 1], [], []>} : vector<16x8xf32>, vector<8x16xf32>, vector<16x16xf32> -> vector<16x16xf32>
    %cst_38 = arith.constant dense<0.000000e+00> : vector<16x9xf32>
    %85 = tpu.matmul %80, %11, %cst_38 {dimension_numbers = #tpu.dot_dimension_numbers<[1], [0], [0], [1], [0, 0, 1, 1], [], []>} : vector<16x8xf32>, vector<8x9xf32>, vector<16x9xf32> -> vector<16x9xf32>
    %86 = vector.shape_cast %85 : vector<16x9xf32> to vector<16x9x1xf32>
    %87 = vector.broadcast %86 : vector<16x9x1xf32> to vector<16x9x16xf32>
    %88 = arith.mulf %87, %14 : vector<16x9x16xf32>
    %cst_39 = arith.constant dense<0.000000e+00> : vector<16x16xf32>
    %89 = vector.multi_reduction <add>, %88, %cst_39 [1] : vector<16x9x16xf32> to vector<16x16xf32>
    %90 = arith.addf %84, %89 : vector<16x16xf32>
    %cst_40 = arith.constant 0.353553385 : f32
    %91 = vector.broadcast %cst_40 : f32 to vector<16x16xf32>
    %92 = arith.mulf %90, %91 : vector<16x16xf32>
    %cst_41 = arith.constant -1.000000e+06 : f32
    %93 = vector.broadcast %cst_41 : f32 to vector<16x16xf32>
    %94 = arith.select %17, %92, %93 : vector<16x16xi1>, vector<16x16xf32>
    %cst_42 = arith.constant dense<0xFF800000> : vector<16xf32>
    %95 = vector.multi_reduction <maximumf>, %94, %cst_42 [1] : vector<16x16xf32> to vector<16xf32>
    %96 = vector.shape_cast %95 : vector<16xf32> to vector<16x1xf32>
    %97 = vector.broadcast %96 : vector<16x1xf32> to vector<16x16xf32>
    %98 = arith.subf %94, %97 : vector<16x16xf32>
    %99 = math.exp %98 : vector<16x16xf32>
    %cst_43 = arith.constant dense<0.000000e+00> : vector<16xf32>
    %100 = vector.multi_reduction <add>, %99, %cst_43 [1] : vector<16x16xf32> to vector<16xf32>
    %101 = vector.shape_cast %100 : vector<16xf32> to vector<16x1xf32>
    %102 = vector.broadcast %101 : vector<16x1xf32> to vector<16x16xf32>
    %103 = arith.divf %99, %102 : vector<16x16xf32>
    %cst_44 = arith.constant dense<0.000000e+00> : vector<16x8xf32>
    %104 = tpu.matmul %103, %82, %cst_44 {dimension_numbers = #tpu.dot_dimension_numbers<[1], [0], [0], [1], [0, 0, 1, 1], [], []>} : vector<16x16xf32>, vector<16x8xf32>, vector<16x8xf32> -> vector<16x8xf32>
    %105 = vector.shape_cast %103 : vector<16x16xf32> to vector<16x1x16xf32>
    %106 = vector.broadcast %105 : vector<16x1x16xf32> to vector<16x9x16xf32>
    %107 = arith.mulf %106, %14 : vector<16x9x16xf32>
    %cst_45 = arith.constant dense<0.000000e+00> : vector<16x9xf32>
    %108 = vector.multi_reduction <add>, %107, %cst_45 [2] : vector<16x9x16xf32> to vector<16x9xf32>
    %cst_46 = arith.constant dense<0.000000e+00> : vector<16x8xf32>
    %109 = tpu.matmul %108, %13, %cst_46 {dimension_numbers = #tpu.dot_dimension_numbers<[1], [0], [0], [1], [0, 0, 1, 1], [], []>} : vector<16x9xf32>, vector<9x8xf32>, vector<16x8xf32> -> vector<16x8xf32>
    %110 = arith.addf %104, %109 : vector<16x8xf32>
    %111 = vector.extract_strided_slice %7 {offsets = [0, 24], sizes = [16, 8], strides = [1, 1]} : vector<16x32xf32> to vector<16x8xf32>
    %112 = vector.extract_strided_slice %8 {offsets = [0, 24], sizes = [16, 8], strides = [1, 1]} : vector<16x32xf32> to vector<16x8xf32>
    %113 = vector.extract_strided_slice %9 {offsets = [0, 24], sizes = [16, 8], strides = [1, 1]} : vector<16x32xf32> to vector<16x8xf32>
    %114 = tpu.transpose %112, [1, 0] : vector<16x8xf32> -> vector<8x16xf32>
    %cst_47 = arith.constant dense<0.000000e+00> : vector<16x16xf32>
    %115 = tpu.matmul %111, %114, %cst_47 {dimension_numbers = #tpu.dot_dimension_numbers<[1], [0], [0], [1], [0, 0, 1, 1], [], []>} : vector<16x8xf32>, vector<8x16xf32>, vector<16x16xf32> -> vector<16x16xf32>
    %cst_48 = arith.constant dense<0.000000e+00> : vector<16x9xf32>
    %116 = tpu.matmul %111, %11, %cst_48 {dimension_numbers = #tpu.dot_dimension_numbers<[1], [0], [0], [1], [0, 0, 1, 1], [], []>} : vector<16x8xf32>, vector<8x9xf32>, vector<16x9xf32> -> vector<16x9xf32>
    %117 = vector.shape_cast %116 : vector<16x9xf32> to vector<16x9x1xf32>
    %118 = vector.broadcast %117 : vector<16x9x1xf32> to vector<16x9x16xf32>
    %119 = arith.mulf %118, %14 : vector<16x9x16xf32>
    %cst_49 = arith.constant dense<0.000000e+00> : vector<16x16xf32>
    %120 = vector.multi_reduction <add>, %119, %cst_49 [1] : vector<16x9x16xf32> to vector<16x16xf32>
    %121 = arith.addf %115, %120 : vector<16x16xf32>
    %cst_50 = arith.constant 0.353553385 : f32
    %122 = vector.broadcast %cst_50 : f32 to vector<16x16xf32>
    %123 = arith.mulf %121, %122 : vector<16x16xf32>
    %cst_51 = arith.constant -1.000000e+06 : f32
    %124 = vector.broadcast %cst_51 : f32 to vector<16x16xf32>
    %125 = arith.select %17, %123, %124 : vector<16x16xi1>, vector<16x16xf32>
    %cst_52 = arith.constant dense<0xFF800000> : vector<16xf32>
    %126 = vector.multi_reduction <maximumf>, %125, %cst_52 [1] : vector<16x16xf32> to vector<16xf32>
    %127 = vector.shape_cast %126 : vector<16xf32> to vector<16x1xf32>
    %128 = vector.broadcast %127 : vector<16x1xf32> to vector<16x16xf32>
    %129 = arith.subf %125, %128 : vector<16x16xf32>
    %130 = math.exp %129 : vector<16x16xf32>
    %cst_53 = arith.constant dense<0.000000e+00> : vector<16xf32>
    %131 = vector.multi_reduction <add>, %130, %cst_53 [1] : vector<16x16xf32> to vector<16xf32>
    %132 = vector.shape_cast %131 : vector<16xf32> to vector<16x1xf32>
    %133 = vector.broadcast %132 : vector<16x1xf32> to vector<16x16xf32>
    %134 = arith.divf %130, %133 : vector<16x16xf32>
    %cst_54 = arith.constant dense<0.000000e+00> : vector<16x8xf32>
    %135 = tpu.matmul %134, %113, %cst_54 {dimension_numbers = #tpu.dot_dimension_numbers<[1], [0], [0], [1], [0, 0, 1, 1], [], []>} : vector<16x16xf32>, vector<16x8xf32>, vector<16x8xf32> -> vector<16x8xf32>
    %136 = vector.shape_cast %134 : vector<16x16xf32> to vector<16x1x16xf32>
    %137 = vector.broadcast %136 : vector<16x1x16xf32> to vector<16x9x16xf32>
    %138 = arith.mulf %137, %14 : vector<16x9x16xf32>
    %cst_55 = arith.constant dense<0.000000e+00> : vector<16x9xf32>
    %139 = vector.multi_reduction <add>, %138, %cst_55 [2] : vector<16x9x16xf32> to vector<16x9xf32>
    %cst_56 = arith.constant dense<0.000000e+00> : vector<16x8xf32>
    %140 = tpu.matmul %139, %13, %cst_56 {dimension_numbers = #tpu.dot_dimension_numbers<[1], [0], [0], [1], [0, 0, 1, 1], [], []>} : vector<16x9xf32>, vector<9x8xf32>, vector<16x8xf32> -> vector<16x8xf32>
    %141 = arith.addf %135, %140 : vector<16x8xf32>
    %142 = tpu.concatenate %48, %79, %110, %141 in 1 : vector<16x8xf32>, vector<16x8xf32>, vector<16x8xf32>, vector<16x8xf32> -> vector<16x32xf32>
    %c0_57 = arith.constant 0 : index
    %c0_58 = arith.constant 0 : index
    %c0_59 = arith.constant 0 : index
    %143 = vector.load %arg3[%c0_57, %c0_58, %c0_59] : memref<1x32x32xf32, #tpu.memory_space<vmem>>, vector<1x32x32xf32>
    %144 = vector.shape_cast %143 : vector<1x32x32xf32> to vector<32x32xf32>
    %cst_60 = arith.constant dense<0.000000e+00> : vector<16x32xf32>
    %145 = tpu.matmul %142, %144, %cst_60 {dimension_numbers = #tpu.dot_dimension_numbers<[1], [0], [0], [1], [0, 0, 1, 1], [], []>} : vector<16x32xf32>, vector<32x32xf32>, vector<16x32xf32> -> vector<16x32xf32>
    %146 = arith.addf %3, %145 : vector<16x32xf32>
    %cst_61 = arith.constant dense<0.000000e+00> : vector<16xf32>
    %147 = vector.multi_reduction <add>, %146, %cst_61 [1] : vector<16x32xf32> to vector<16xf32>
    %148 = vector.shape_cast %147 : vector<16xf32> to vector<16x1xf32>
    %cst_62 = arith.constant 3.200000e+01 : f32
    %149 = vector.broadcast %cst_62 : f32 to vector<16x1xf32>
    %150 = arith.divf %148, %149 : vector<16x1xf32>
    %151 = vector.broadcast %150 : vector<16x1xf32> to vector<16x32xf32>
    %152 = arith.subf %146, %151 : vector<16x32xf32>
    %153 = arith.mulf %152, %152 : vector<16x32xf32>
    %cst_63 = arith.constant dense<0.000000e+00> : vector<16xf32>
    %154 = vector.multi_reduction <add>, %153, %cst_63 [1] : vector<16x32xf32> to vector<16xf32>
    %155 = vector.shape_cast %154 : vector<16xf32> to vector<16x1xf32>
    %cst_64 = arith.constant 3.200000e+01 : f32
    %156 = vector.broadcast %cst_64 : f32 to vector<16x1xf32>
    %157 = arith.divf %155, %156 : vector<16x1xf32>
    %158 = vector.broadcast %150 : vector<16x1xf32> to vector<16x32xf32>
    %159 = arith.subf %146, %158 : vector<16x32xf32>
    %cst_65 = arith.constant 9.99999974E-6 : f32
    %160 = vector.broadcast %cst_65 : f32 to vector<16x1xf32>
    %161 = arith.addf %157, %160 : vector<16x1xf32>
    %162 = math.rsqrt %161 : vector<16x1xf32>
    %163 = vector.broadcast %162 : vector<16x1xf32> to vector<16x32xf32>
    %164 = arith.mulf %159, %163 : vector<16x32xf32>
    %c0_66 = arith.constant 0 : index
    %c0_67 = arith.constant 0 : index
    %c0_68 = arith.constant 0 : index
    %165 = vector.load %arg10[%c0_66, %c0_67, %c0_68] : memref<1x1x32xf32, #tpu.memory_space<vmem>>, vector<1x1x32xf32>
    %166 = vector.shape_cast %165 : vector<1x1x32xf32> to vector<1x32xf32>
    %167 = vector.broadcast %166 : vector<1x32xf32> to vector<16x32xf32>
    %168 = arith.mulf %164, %167 : vector<16x32xf32>
    %c0_69 = arith.constant 0 : index
    %c0_70 = arith.constant 0 : index
    %c0_71 = arith.constant 0 : index
    %169 = vector.load %arg11[%c0_69, %c0_70, %c0_71] : memref<1x1x32xf32, #tpu.memory_space<vmem>>, vector<1x1x32xf32>
    %170 = vector.shape_cast %169 : vector<1x1x32xf32> to vector<1x32xf32>
    %171 = vector.broadcast %170 : vector<1x32xf32> to vector<16x32xf32>
    %172 = arith.addf %168, %171 : vector<16x32xf32>
    %c0_72 = arith.constant 0 : index
    %c0_73 = arith.constant 0 : index
    %c0_74 = arith.constant 0 : index
    %173 = vector.load %arg6[%c0_72, %c0_73, %c0_74] : memref<1x32x64xf32, #tpu.memory_space<vmem>>, vector<1x32x64xf32>
    %174 = vector.shape_cast %173 : vector<1x32x64xf32> to vector<32x64xf32>
    %cst_75 = arith.constant dense<0.000000e+00> : vector<16x64xf32>
    %175 = tpu.matmul %172, %174, %cst_75 {dimension_numbers = #tpu.dot_dimension_numbers<[1], [0], [0], [1], [0, 0, 1, 1], [], []>} : vector<16x32xf32>, vector<32x64xf32>, vector<16x64xf32> -> vector<16x64xf32>
    %c0_76 = arith.constant 0 : index
    %c0_77 = arith.constant 0 : index
    %c0_78 = arith.constant 0 : index
    %176 = vector.load %arg7[%c0_76, %c0_77, %c0_78] : memref<1x1x64xf32, #tpu.memory_space<vmem>>, vector<1x1x64xf32>
    %177 = vector.shape_cast %176 : vector<1x1x64xf32> to vector<1x64xf32>
    %178 = vector.broadcast %177 : vector<1x64xf32> to vector<16x64xf32>
    %179 = arith.addf %175, %178 : vector<16x64xf32>
    %cst_79 = arith.constant 0.000000e+00 : f32
    %180 = vector.broadcast %cst_79 : f32 to vector<16x64xf32>
    %181 = arith.maximumf %179, %180 : vector<16x64xf32>
    %c0_80 = arith.constant 0 : index
    %c0_81 = arith.constant 0 : index
    %c0_82 = arith.constant 0 : index
    %182 = vector.load %arg8[%c0_80, %c0_81, %c0_82] : memref<1x64x32xf32, #tpu.memory_space<vmem>>, vector<1x64x32xf32>
    %183 = vector.shape_cast %182 : vector<1x64x32xf32> to vector<64x32xf32>
    %cst_83 = arith.constant dense<0.000000e+00> : vector<16x32xf32>
    %184 = tpu.matmul %181, %183, %cst_83 {dimension_numbers = #tpu.dot_dimension_numbers<[1], [0], [0], [1], [0, 0, 1, 1], [], []>} : vector<16x64xf32>, vector<64x32xf32>, vector<16x32xf32> -> vector<16x32xf32>
    %c0_84 = arith.constant 0 : index
    %c0_85 = arith.constant 0 : index
    %c0_86 = arith.constant 0 : index
    %185 = vector.load %arg9[%c0_84, %c0_85, %c0_86] : memref<1x1x32xf32, #tpu.memory_space<vmem>>, vector<1x1x32xf32>
    %186 = vector.shape_cast %185 : vector<1x1x32xf32> to vector<1x32xf32>
    %187 = vector.broadcast %186 : vector<1x32xf32> to vector<16x32xf32>
    %188 = arith.addf %184, %187 : vector<16x32xf32>
    %189 = arith.addf %172, %188 : vector<16x32xf32>
    %cst_87 = arith.constant dense<0.000000e+00> : vector<16xf32>
    %190 = vector.multi_reduction <add>, %189, %cst_87 [1] : vector<16x32xf32> to vector<16xf32>
    %191 = vector.shape_cast %190 : vector<16xf32> to vector<16x1xf32>
    %cst_88 = arith.constant 3.200000e+01 : f32
    %192 = vector.broadcast %cst_88 : f32 to vector<16x1xf32>
    %193 = arith.divf %191, %192 : vector<16x1xf32>
    %194 = vector.broadcast %193 : vector<16x1xf32> to vector<16x32xf32>
    %195 = arith.subf %189, %194 : vector<16x32xf32>
    %196 = arith.mulf %195, %195 : vector<16x32xf32>
    %cst_89 = arith.constant dense<0.000000e+00> : vector<16xf32>
    %197 = vector.multi_reduction <add>, %196, %cst_89 [1] : vector<16x32xf32> to vector<16xf32>
    %198 = vector.shape_cast %197 : vector<16xf32> to vector<16x1xf32>
    %cst_90 = arith.constant 3.200000e+01 : f32
    %199 = vector.broadcast %cst_90 : f32 to vector<16x1xf32>
    %200 = arith.divf %198, %199 : vector<16x1xf32>
    %201 = vector.broadcast %193 : vector<16x1xf32> to vector<16x32xf32>
    %202 = arith.subf %189, %201 : vector<16x32xf32>
    %cst_91 = arith.constant 9.99999974E-6 : f32
    %203 = vector.broadcast %cst_91 : f32 to vector<16x1xf32>
    %204 = arith.addf %200, %203 : vector<16x1xf32>
    %205 = math.rsqrt %204 : vector<16x1xf32>
    %206 = vector.broadcast %205 : vector<16x1xf32> to vector<16x32xf32>
    %207 = arith.mulf %202, %206 : vector<16x32xf32>
    %c0_92 = arith.constant 0 : index
    %c0_93 = arith.constant 0 : index
    %c0_94 = arith.constant 0 : index
    %208 = vector.load %arg12[%c0_92, %c0_93, %c0_94] : memref<1x1x32xf32, #tpu.memory_space<vmem>>, vector<1x1x32xf32>
    %209 = vector.shape_cast %208 : vector<1x1x32xf32> to vector<1x32xf32>
    %210 = vector.broadcast %209 : vector<1x32xf32> to vector<16x32xf32>
    %211 = arith.mulf %207, %210 : vector<16x32xf32>
    %c0_95 = arith.constant 0 : index
    %c0_96 = arith.constant 0 : index
    %c0_97 = arith.constant 0 : index
    %212 = vector.load %arg13[%c0_95, %c0_96, %c0_97] : memref<1x1x32xf32, #tpu.memory_space<vmem>>, vector<1x1x32xf32>
    %213 = vector.shape_cast %212 : vector<1x1x32xf32> to vector<1x32xf32>
    %214 = vector.broadcast %213 : vector<1x32xf32> to vector<16x32xf32>
    %215 = arith.addf %211, %214 : vector<16x32xf32>
    %c0_98 = arith.constant 0 : index
    %c0_99 = arith.constant 0 : index
    %216 = vector.load %arg17[%c0_98, %c0_99] : memref<16x32xf32, #tpu.memory_space<vmem>>, vector<16x32xf32>
    tpu.vector_store %arg17[%c0_98, %c0_99], %215 {strides = array<i32>} : memref<16x32xf32, #tpu.memory_space<vmem>>, vector<16x32xf32>,
    %c0_100 = arith.constant 0 : index
    %c0_101 = arith.constant 0 : index
    %217 = vector.load %arg16[%c0_100, %c0_101] : memref<16x32xf32, #tpu.memory_space<vmem>>, vector<16x32xf32>
    tpu.vector_store %arg16[%c0_100, %c0_101], %215 {strides = array<i32>} : memref<16x32xf32, #tpu.memory_space<vmem>>, vector<16x32xf32>,
    return
  }
  func.func @transform_0(%arg0: i32) -> (i32, i32) {
    %c0_i32 = arith.constant 0 : i32
    %c0_i32_0 = arith.constant 0 : i32
    %c0_i32_1 = arith.constant 0 : i32
    return %c0_i32, %c0_i32_0 : i32, i32
  }
  func.func @transform_1(%arg0: i32) -> (i32, i32, i32) {
    %c0_i32 = arith.constant 0 : i32
    %c0_i32_0 = arith.constant 0 : i32
    %c0_i32_1 = arith.constant 0 : i32
    return %arg0, %c0_i32, %c0_i32_0 : i32, i32, i32
  }
  func.func @transform_2(%arg0: i32) -> (i32, i32, i32) {
    %c0_i32 = arith.constant 0 : i32
    %c0_i32_0 = arith.constant 0 : i32
    %c0_i32_1 = arith.constant 0 : i32
    return %arg0, %c0_i32, %c0_i32_0 : i32, i32, i32
  }
  func.func @transform_3(%arg0: i32) -> (i32, i32, i32) {
    %c0_i32 = arith.constant 0 : i32
    %c0_i32_0 = arith.constant 0 : i32
    %c0_i32_1 = arith.constant 0 : i32
    return %arg0, %c0_i32, %c0_i32_0 : i32, i32, i32
  }
  func.func @transform_4(%arg0: i32) -> (i32, i32, i32) {
    %c0_i32 = arith.constant 0 : i32
    %c0_i32_0 = arith.constant 0 : i32
    %c0_i32_1 = arith.constant 0 : i32
    return %arg0, %c0_i32, %c0_i32_0 : i32, i32, i32
  }
  func.func @transform_5(%arg0: i32) -> (i32, i32, i32) {
    %c0_i32 = arith.constant 0 : i32
    %c0_i32_0 = arith.constant 0 : i32
    %c0_i32_1 = arith.constant 0 : i32
    return %arg0, %c0_i32, %c0_i32_0 : i32, i32, i32
  }
  func.func @transform_6(%arg0: i32) -> (i32, i32, i32) {
    %c0_i32 = arith.constant 0 : i32
    %c0_i32_0 = arith.constant 0 : i32
    %c0_i32_1 = arith.constant 0 : i32
    return %arg0, %c0_i32, %c0_i32_0 : i32, i32, i32
  }
  func.func @transform_7(%arg0: i32) -> (i32, i32, i32) {
    %c0_i32 = arith.constant 0 : i32
    %c0_i32_0 = arith.constant 0 : i32
    %c0_i32_1 = arith.constant 0 : i32
    return %arg0, %c0_i32, %c0_i32_0 : i32, i32, i32
  }
  func.func @transform_8(%arg0: i32) -> (i32, i32, i32) {
    %c0_i32 = arith.constant 0 : i32
    %c0_i32_0 = arith.constant 0 : i32
    %c0_i32_1 = arith.constant 0 : i32
    return %arg0, %c0_i32, %c0_i32_0 : i32, i32, i32
  }
  func.func @transform_9(%arg0: i32) -> (i32, i32, i32) {
    %c0_i32 = arith.constant 0 : i32
    %c0_i32_0 = arith.constant 0 : i32
    %c0_i32_1 = arith.constant 0 : i32
    return %arg0, %c0_i32, %c0_i32_0 : i32, i32, i32
  }
  func.func @transform_10(%arg0: i32) -> (i32, i32, i32) {
    %c0_i32 = arith.constant 0 : i32
    %c0_i32_0 = arith.constant 0 : i32
    %c0_i32_1 = arith.constant 0 : i32
    return %arg0, %c0_i32, %c0_i32_0 : i32, i32, i32
  }
  func.func @transform_11(%arg0: i32) -> (i32, i32, i32) {
    %c0_i32 = arith.constant 0 : i32
    %c0_i32_0 = arith.constant 0 : i32
    %c0_i32_1 = arith.constant 0 : i32
    return %arg0, %c0_i32, %c0_i32_0 : i32, i32, i32
  }
  func.func @transform_12(%arg0: i32) -> (i32, i32, i32) {
    %c0_i32 = arith.constant 0 : i32
    %c0_i32_0 = arith.constant 0 : i32
    %c0_i32_1 = arith.constant 0 : i32
    return %arg0, %c0_i32, %c0_i32_0 : i32, i32, i32
  }
  func.func @transform_13(%arg0: i32) -> (i32, i32, i32) {
    %c0_i32 = arith.constant 0 : i32
    %c0_i32_0 = arith.constant 0 : i32
    %c0_i32_1 = arith.constant 0 : i32
    %c0_i32_2 = arith.constant 0 : i32
    return %c0_i32, %c0_i32_0, %c0_i32_1 : i32, i32, i32
  }
  func.func @transform_14(%arg0: i32) -> (i32, i32) {
    %c0_i32 = arith.constant 0 : i32
    %c0_i32_0 = arith.constant 0 : i32
    %c0_i32_1 = arith.constant 0 : i32
    return %c0_i32, %c0_i32_0 : i32, i32
  }
  func.func @transform_15(%arg0: i32) -> (i32, i32) {
    %c0_i32 = arith.constant 0 : i32
    %c0_i32_0 = arith.constant 0 : i32
    %c0_i32_1 = arith.constant 0 : i32
    return %c0_i32, %c0_i32_0 : i32, i32
  }
}

</mosaic_0001>

<bundles_post_ra>
// kernel: tpu_custom_call.1
= control target key start
LH: loop header
LB: loop body
LE: loop exit
PB: predicated region body
PF: predicated region fallthrough
CT: control target
= control target key end

     0   :  { %s9634_s0 = inlined_call_operand.vmem [shape: f32[16,32], index: 0, kind: input, shape index: {}]   ;;  %s9635_s1 = inlined_call_operand.vmem [shape: f32[2,32,96], index: 1, kind: input, shape index: {}]   ;;  %s9636_s2 = inlined_call_operand.vmem [shape: f32[2,32,32], index: 2, kind: input, shape index: {}]   ;;  %s9637_s3 = inlined_call_operand.vmem [shape: f32[2,8,9], index: 3, kind: input, shape index: {}]   ;;  %s9638_s4 = inlined_call_operand.vmem [shape: f32[2,9,8], index: 4, kind: input, shape index: {}]   ;;  %s9639_s5 = inlined_call_operand.vmem [shape: f32[2,32,64], index: 5, kind: input, shape index: {}]   ;;  %s9640_s6 = inlined_call_operand.vmem [shape: f32[2,1,64], index: 6, kind: input, shape index: {}]   ;;  %s9641_s7 = inlined_call_operand.vmem [shape: f32[2,64,32], index: 7, kind: input, shape index: {}]   ;;  %s9642_s8 = inlined_call_operand.vmem [shape: f32[2,1,32], index: 8, kind: input, shape index: {}]   ;;  %s9643_s9 = inlined_call_operand.vmem [shape: f32[2,1,32], index: 9, kind: input, shape index: {}]   ;;  %s9644_s10 = inlined_call_operand.vmem [shape: f32[2,1,32], index: 10, kind: input, shape index: {}]   ;;  %s9645_s11 = inlined_call_operand.vmem [shape: f32[2,1,32], index: 11, kind: input, shape index: {}]   ;;  %s9646_s12 = inlined_call_operand.vmem [shape: f32[2,1,32], index: 12, kind: input, shape index: {}]   ;;  %s9647_s13 = inlined_call_operand.vmem [shape: f32[16,9,16], index: 13, kind: input, shape index: {}]   ;;  %s9648_s14 = inlined_call_operand.vmem [shape: f32[16,16], index: 14, kind: input, shape index: {}]   ;;  %s9649_s15 = inlined_call_operand.hbm [shape: f32[16,32], index: 15, kind: output, shape index: {}]  }
   0x1   :  { %9749 = sst [smem:[#allocation42_spill]] %s9634_s0 }
   0x2   :  { %9750 = sst [smem:[#allocation43_spill]] %s9635_s1 }
   0x3   :  { %9751 = sst [smem:[#allocation44_spill]] %s9636_s2 }
   0x4   :  { %9752 = sst [smem:[#allocation45_spill]] %s9637_s3 }
   0x5   :  { %9753 = sst [smem:[#allocation46_spill]] %s9638_s4 }
   0x6   :  { %9754 = sst [smem:[#allocation47_spill]] %s9639_s5 }
   0x7   :  { %9755 = sst [smem:[#allocation48_spill]] %s9647_s13 }
   0x8   :  { %9756 = sst [smem:[#allocation49_spill]] %s9648_s14 }
   0x9   :  { %9757 = sst [smem:[#allocation50_spill]] %s9649_s15 }
   0xa   :  { %20 = vsyncpa [#allocation4], 0  ;;  %s7119_s18 = smov 0  }
   0xb LB: > { %9758 = sst [smem:[#allocation6_spill]] %s7019_s18  ;;  %s7125_s19 = sadd.s32 4294967295, %s7019_s18   ;;  %s7019_s18 = sphi %s7119_s18, %s26_s18  }
   0xc   : > { %p6336_p0 = scmp.ge.s32.totalorder %s7019_s18, 1  ;;  %p530_p1 = scmp.lt.s32.totalorder %s7019_s18, 3 }
   0xe   : > { %p531_p2 = pnand %p6336_p0, %p530_p1 }
  0x10   : > { %534 = sbr.rel (%p531_p2) target bundleno = 4505 (0x1199), region = 80 }
  0x17   : > { %p615_p3 = scmp.lt.s32.totalorder %s7125_s19, 1  ;;  %s9759_s1 = sld [smem:[#allocation43_spill]] }
  0x18   : > { %s9760_s2 = sld [smem:[#allocation44_spill]]  ;;  %s9761_s3 = sld [smem:[#allocation45_spill]] }
  0x19   : > { %s7131_s20 = scalar_select %p615_p3, %s7125_s19, 1 }
  0x1a   : > { %s9762_s4 = sld [smem:[#allocation46_spill]]  ;;  %s9763_s5 = sld [smem:[#allocation47_spill]] }
  0x1b   : > { %s6411_s21 = sshll.u32 %s7131_s20, 5  ;;  %s6341_s22 = sshll.u32 %s7131_s20, 3 }
  0x1c   : > { %s6413_s17 = sshll.u32 %s7131_s20, 4  ;;  %s649_s15 = scalar_lea.vmem %s9642_s8, %s7131_s20 }
  0x1d   : > { %s619_s25 = scalar_lea.vmem %s9759_s1, %s6411_s21  ;;  %s6415_s1 = sshll.u32 %s7131_s20, 6 }
  0x1e   : > { %s7141_s28 = scalar_lea.vmem %s9760_s2, %s6411_s21  ;;  %s7146_s16 = scalar_lea.vmem %s9761_s3, %s6341_s22 }
  0x1f   : > { %s7167_s22 = scalar_lea.vmem %s9641_s7, %s6415_s1  ;;  %s652_s0 = scalar_lea.vmem %s9643_s9, %s7131_s20 }
  0x20   : > { %s7152_s14 = scalar_lea.vmem %s9762_s4, %s6413_s17  ;;  %s7157_s23 = scalar_lea.vmem %s9763_s5, %s6411_s21 }
  0x21   : > { %s655_s4 = scalar_lea.vmem %s9644_s10, %s7131_s20  ;;  %s658_s27 = scalar_lea.vmem %s9645_s11, %s7131_s20 }
  0x22   : > { %s661_s1 = scalar_lea.vmem %s9646_s12, %s7131_s20  ;;  %p6348_p4 = scmp.ne.s32.totalorder %s7125_s19, 0 }
  0x23   : > { %s9764_s30 = sld [smem:[#allocation42_spill]] (!%p6348_p4)  ;;  %vm668_vm0 = vcmask (!%p6348_p4), 261120  }
  0x24   : > { %665 = sbr.rel (%p6348_p4) target bundleno = 43 (0x2b), region = 84 }
  0x29   : > { %v666_v0 = vld [vmem:[%s9764_s30] sm:$0xff] (!%p6348_p4)  ;;  %v667_v1 = vld [vmem:[%s9764_s30 + $0x8] sm:$0xff] (!%p6348_p4) }
  0x2a   : > { %669 = vst.msk [vmem:[#allocation2] sm:$0xff] (!%p6348_p4), %vm668_vm0, %v666_v0  ;;  %670 = vst.msk [vmem:[#allocation2 + $0x8] sm:$0xff] (!%p6348_p4), %vm668_vm0, %v667_v1 }
  0x2b PF: > { %v673_v2 = vld [vmem:[%s619_s25] sm:$0xff]  ;;  %v674_v3 = vld [vmem:[%s619_s25 + $0x8] sm:$0xff]  ;;  %v675_v4 = vld [vmem:[%s619_s25 + $0x10] sm:$0xff]  ;;  %vm9695_vm1 = vcmask 261120   ;;  %vm798_vm2 = vcmask 64512   ;;  %s7021_s5 = smov 120   ;;  %v9655_v25 = vlaneseq }
  0x2c   : > { %v6660_v5 = vpack.c.bf16 %v674_v3, %v673_v2  ;;  %v676_v6 = vld [vmem:[%s619_s25 + $0x18] sm:$0xff]  ;;  %v759_v10 = vld [vmem:[%s7146_s16] sm:$0xff]  ;;  %s7022_s25 = smov 96   ;;  %s7023_s13 = smov 88   ;;  %vm7220_vm3 = vmpackc.low %vm798_vm2, %vm798_vm2  ;;  %v9768_v19 = vmov 0  ;;  %vm1090_vm4 = vcmask 122880  }
  0x2d   : > { %v6664_v8 = vpack.c.bf16 %v676_v6, %v675_v4  ;;  %6515 = vmatprep.subr.mxu1 %v759_v10  ;;  %v9769_v19 = vsel %vm7220_vm3, 4294967295, %v9768_v19  ;;  %v7238_v26 = vshrl.u32 %v9655_v25, 7  ;;  %s9780_s26 = sld [smem:[#allocation48_spill]]  ;;  %vm1088_vm5 = vcmask 130048   ;;  %s9802_s17 = sld [smem:[#allocation49_spill]] }
  0x2e   : > { %6661 = vmatprep.subr.bf16.mxu0 %v6660_v5  ;;  %6516 = vmatpush3.msra.mxu1 %v759_v10  ;;  %9770 = vst [vmem:[#allocation10_spill] sm:$0xff] %v9769_v19  ;;  %vm1254_vm6 = vcmask 1041409   ;;  %vm1256_vm7 = vcmask 1042434   ;;  %vm1258_vm8 = vcmask 1043459   ;;  %vm1260_vm9 = vcmask 1044484   ;;  %s7025_s21 = smov 64  }
  0x2f   : > { %6663 = vmatpush3.bf16.msra.mxu0 %v6660_v5  ;;  %6541 = vmatprep.subr.mxu1 %v759_v10  ;;  %9771 = vst [vmem:[#allocation11_spill] sm:$0xff] %v7238_v26  ;;  %v7241_v27 = vsub.s32 0, %v7238_v26  ;;  %v7245_v31 = vsub.s32 1, %v7238_v26  ;;  %v7249_v33 = vsub.s32 2, %v7238_v26  ;;  %v7253_v35 = vsub.s32 3, %v7238_v26  ;;  %s7028_s29 = smov 80  }
  0x30   : > { %6665 = vmatprep.subr.bf16.mxu0 %v6664_v8  ;;  %v7257_v37 = vsub.s32 4, %v7238_v26  ;;  %v7261_v39 = vsub.s32 5, %v7238_v26  ;;  %v7265_v41 = vsub.s32 6, %v7238_v26  ;;  %v7269_v43 = vsub.s32 7, %v7238_v26  ;;  %s7029_s18 = smov 56   ;;  %p6776_p5 = scmp.eq.s32.totalorder %s7125_s19, 1 }
  0x31   : > { %v671_v7 = vld [vmem:[#allocation2] sm:$0xff]  ;;  %v672_v9 = vld [vmem:[#allocation2 + $0x8] sm:$0xff]  ;;  %9772 = vst [vmem:[#allocation12_spill] sm:$0xff] %v7241_v27  ;;  %9773 = vst [vmem:[#allocation13_spill] sm:$0xff] %v7245_v31  ;;  %vm1262_vm10 = vcmask 1045509   ;;  %vm1264_vm11 = vcmask 1046534  }
  0x32   : > { %6512 = vmatprep.mubr.msk.f32.mxu0 %vm9695_vm1, %v671_v7  ;;  %9774 = vst [vmem:[#allocation14_spill] sm:$0xff] %v7249_v33  ;;  %9775 = vst [vmem:[#allocation15_spill] sm:$0xff] %v7253_v35  ;;  %vm1266_vm12 = vcmask 1047559   ;;  %vm1889_vm15 = vcmask 1040384   ;;  %vm7026_vm0 = vmmov 1  }
  0x33   : > { %6667 = vmatpush3.bf16.msra.mxu0 %v6664_v8  ;;  %9776 = vst [vmem:[#allocation16_spill] sm:$0xff] %v7257_v37  ;;  %9777 = vst [vmem:[#allocation17_spill] sm:$0xff] %v7261_v39  ;;  %v7293_v0 = vld [vmem:[%s9780_s26 + $0x88] sm:$0x1]  ;;  %v7298_v1 = vld [vmem:[%s9780_s26 + $0x80] sm:$0xff] }
  0x34   : > { %9778 = vst [vmem:[#allocation18_spill] sm:$0xff] %v7265_v41  ;;  %9779 = vst [vmem:[#allocation19_spill] sm:$0xff] %v7269_v43 }
  0x36   : > { %6513 = vmatmul.mubr.msk.f32.vlgmr.msra.gmra.mrb[0].mxu0 %vm9695_vm1, %v672_v9  ;;  %vm7663_vm1 = vmpackc.low %vm1889_vm15, %vm7026_vm0  ;;  %vm1733_vm15 = vcmask 130112   ;;  %vm1884_vm0 = vcmask 72704  }
 0x109   : > { %v7199_v11 = vpop.f32.mrb[0].mxu0 }
 0x10a   : > { %9765 = vst [vmem:[#allocation7_spill] sm:$0xff] %v7199_v11  ;;  %v7201_v12 = vpop.f32.mrb[1].mxu0 }
 0x10b   : > { %9766 = vst [vmem:[#allocation8_spill] sm:$0xff] %v7201_v12  ;;  %2053 = vrot.lane.b32.xlu0 %v7201_v12, %s7021_s5  ;;  %6517 = vmatprep.mubr.msk.f32.mxu1 %vm798_vm2, %v7201_v12  ;;  %v7208_v13 = vpack.i.bf16 %v7199_v11, %v7201_v12 }
 0x10c   : > { %6524 = vmatprep.mubr.msk.f32.mxu0 %vm798_vm2, %v7201_v12  ;;  %6518 = vmatmul.mubr.msk.f32.vlgmr.msra.gmra.mrb[0].mxu1 %vm798_vm2, %v7199_v11 }
 0x10d   : > { %9767 = vst [vmem:[#allocation9_spill] sm:$0xff] %v7208_v13  ;;  %6805 = vrot.lane.b32.xlu1 %v7208_v13, %s7022_s25  ;;  %6542 = vmatpush3.msra.mxu1 %v759_v10  ;;  %s7036_s25 = smov 24  }
 0x10f   : > { %2055 = vrot.lane.b32.xlu0 %v7199_v11, %s7021_s5  ;;  %s7035_s5 = smov 16  }
 0x111   : > { %6810 = vrot.lane.b32.xlu1 %v7208_v13, %s7023_s13  ;;  %s7024_s13 = smov 112  }
 0x17d   : > { %v2054_v14 = vpop.permute.xlu0 %2053 }
 0x17e   : > { %6543 = vmatprep.mubr.msk.f32.mxu1 %vm798_vm2, %v2054_v14 }
 0x17f   : > { %v6806_v15 = vpop.permute.xlu1 %6805 }
 0x180   : > { %v6808_v16 = vunpack.i.h.bf16 %v6806_v15  ;;  %v6807_v17 = vunpack.i.l.bf16 %v6806_v15 }
 0x181   : > { %v2056_v18 = vpop.permute.xlu0 %2055 }
 0x182   : > { %v6668_v20 = vpack.c.bf16 %v6808_v16, %v6807_v17  ;;  %6544 = vmatmul.mubr.msk.f32.vlgmr.msra.gmra.mrb[2].mxu1 %vm798_vm2, %v2056_v18 }
 0x183   : > { %v6811_v21 = vpop.permute.xlu1 %6810  ;;  %6550 = vmatprep.mubr.msk.f32.mxu1 %vm798_vm2, %v2054_v14  ;;  %v7318_v14 = vld [vmem:[%s9780_s26 + $0x90] sm:$0xff] }
 0x184   : > { %v6813_v22 = vunpack.i.h.bf16 %v6811_v21  ;;  %v6812_v23 = vunpack.i.l.bf16 %v6811_v21  ;;  %6670 = vmatprep.subr.msk.bf16.mxu0 %vm7220_vm3, %v6668_v20 }
 0x185   : > { %6673 = vmatpush3.bf16.xpose.msk.msra.mxu0 %vm7220_vm3, %v6668_v20 }
 0x186   : > { %v6684_v24 = vpack.c.bf16 %v6813_v22, %v6812_v23 }
 0x188   : > { %6686 = vmatprep.subr.msk.bf16.mxu1 %vm7220_vm3, %v6684_v24 }
 0x189   : > { %6689 = vmatpush3.bf16.xpose.msk.msra.mxu1 %vm7220_vm3, %v6684_v24 }
 0x18a   : > { %6567 = vmatprep.subr.mxu1 %v759_v10 }
 0x18c   : > { %6525 = vmatmul.mubr.msk.f32.vlgmr.msra.gmra.mrb[2].mxu0 %vm798_vm2, %v7199_v11 }
 0x190   : > { %6551 = vmatmul.mubr.msk.f32.vlgmr.msra.gmra.mrb[4].mxu1 %vm798_vm2, %v2056_v18 }
 0x191   : > { %6568 = vmatpush3.msra.mxu1 %v759_v10  ;;  %v7313_v10 = vld [vmem:[%s9780_s26 + $0x98] sm:$0x1] }
 0x1df   : > { %v6519_v28 = vpop.f32.mrb[0].mxu1 }
 0x1e0   : > { %v871_v29 = vpop.f32.mrb[1].mxu1  ;;  %v971_v30 = vrot.slane %v6519_v28, %v7241_v27  ;;  %v982_v32 = vrot.slane %v6519_v28, %v7245_v31  ;;  %v993_v34 = vrot.slane %v6519_v28, %v7249_v33  ;;  %v1004_v36 = vrot.slane %v6519_v28, %v7253_v35 }
 0x1e1   : > { %v1015_v38 = vrot.slane %v6519_v28, %v7257_v37  ;;  %v1026_v40 = vrot.slane %v6519_v28, %v7261_v39  ;;  %v1037_v42 = vrot.slane %v6519_v28, %v7265_v41  ;;  %v1048_v44 = vrot.slane %v6519_v28, %v7269_v43 }
 0x1e2   : > { %977 = vbcast.lane.b32.xlu1 %v971_v30, 264  ;;  %973 = vbcast.lane.b32.xlu0 %v971_v30, 256  ;;  %v883_v45 = vrot.slane %v871_v29, %v7241_v27  ;;  %v894_v46 = vrot.slane %v871_v29, %v7245_v31  ;;  %v905_v47 = vrot.slane %v871_v29, %v7249_v33 }
 0x1e3   : > { %v916_v48 = vrot.slane %v871_v29, %v7253_v35  ;;  %v927_v49 = vrot.slane %v871_v29, %v7257_v37  ;;  %v938_v50 = vrot.slane %v871_v29, %v7261_v39  ;;  %v949_v51 = vrot.slane %v871_v29, %v7265_v41 }
 0x1e4   : > { %v960_v52 = vrot.slane %v871_v29, %v7269_v43 }
 0x1e6   : > { %988 = vbcast.lane.b32.xlu1 %v982_v32, 264  ;;  %984 = vbcast.lane.b32.xlu0 %v982_v32, 256 }
 0x1ea   : > { %999 = vbcast.lane.b32.xlu1 %v993_v34, 264  ;;  %995 = vbcast.lane.b32.xlu0 %v993_v34, 256 }
 0x1ee   : > { %1010 = vbcast.lane.b32.xlu1 %v1004_v36, 264  ;;  %1006 = vbcast.lane.b32.xlu0 %v1004_v36, 256  ;;  %v7343_v36 = vld [vmem:[%s9780_s26 + $0xa8] sm:$0x1] }
 0x1f2   : > { %1021 = vbcast.lane.b32.xlu1 %v1015_v38, 264  ;;  %1017 = vbcast.lane.b32.xlu0 %v1015_v38, 256  ;;  %v7348_v38 = vld [vmem:[%s9780_s26 + $0xa0] sm:$0xff] }
 0x1f6   : > { %1032 = vbcast.lane.b32.xlu1 %v1026_v40, 264  ;;  %1028 = vbcast.lane.b32.xlu0 %v1026_v40, 256 }
 0x1fa   : > { %1043 = vbcast.lane.b32.xlu1 %v1037_v42, 264  ;;  %1039 = vbcast.lane.b32.xlu0 %v1037_v42, 256 }
 0x1fe   : > { %1054 = vbcast.lane.b32.xlu1 %v1048_v44, 264  ;;  %1050 = vbcast.lane.b32.xlu0 %v1048_v44, 256 }
 0x202   : > { %889 = vbcast.lane.b32.xlu1 %v883_v45, 264  ;;  %885 = vbcast.lane.b32.xlu0 %v883_v45, 256 }
 0x206   : > { %900 = vbcast.lane.b32.xlu1 %v894_v46, 264  ;;  %896 = vbcast.lane.b32.xlu0 %v894_v46, 256 }
 0x20a   : > { %911 = vbcast.lane.b32.xlu1 %v905_v47, 264  ;;  %907 = vbcast.lane.b32.xlu0 %v905_v47, 256 }
 0x20e   : > { %922 = vbcast.lane.b32.xlu1 %v916_v48, 264  ;;  %918 = vbcast.lane.b32.xlu0 %v916_v48, 256 }
 0x212   : > { %933 = vbcast.lane.b32.xlu1 %v927_v49, 264  ;;  %929 = vbcast.lane.b32.xlu0 %v927_v49, 256 }
 0x216   : > { %944 = vbcast.lane.b32.xlu1 %v938_v50, 264  ;;  %940 = vbcast.lane.b32.xlu0 %v938_v50, 256 }
 0x21a   : > { %955 = vbcast.lane.b32.xlu1 %v949_v51, 264  ;;  %951 = vbcast.lane.b32.xlu0 %v949_v51, 256 }
 0x21e   : > { %966 = vbcast.lane.b32.xlu1 %v960_v52, 264  ;;  %962 = vbcast.lane.b32.xlu0 %v960_v52, 256 }
 0x254   : > { %v978_v53 = vpop.permute.xlu1 %977  ;;  %v974_v54 = vpop.permute.xlu0 %973 }
 0x255   : > { %v7280_v55 = vpop.f32.mrb[2].mxu1  ;;  %v1073_v6 = vmul.f32 %v978_v53, %v7293_v0  ;;  %v1072_v7 = vmul.f32 %v974_v54, %v7298_v1 }
 0x256   : > { %v7282_v56 = vpop.f32.mrb[3].mxu1  ;;  %v2227_v57 = vrot.slane %v7280_v55, %v7241_v27  ;;  %v2238_v60 = vrot.slane %v7280_v55, %v7245_v31  ;;  %v2249_v63 = vrot.slane %v7280_v55, %v7249_v33  ;;  %v2260_v8 = vrot.slane %v7280_v55, %v7253_v35 }
 0x257   : > { %v1163_v18 = vsel %vm1090_vm4, %v1073_v6, 0.0  ;;  %v1162_v20 = vsel %vm1088_vm5, %v1072_v7, 0.0  ;;  %v2271_v21 = vrot.slane %v7280_v55, %v7257_v37  ;;  %v2282_v30 = vrot.slane %v7280_v55, %v7261_v39 }
 0x258   : > { %v989_v58 = vpop.permute.xlu1 %988  ;;  %v985_v59 = vpop.permute.xlu0 %984  ;;  %2233 = vbcast.lane.b32.xlu1 %v2227_v57, 264  ;;  %2229 = vbcast.lane.b32.xlu0 %v2227_v57, 256  ;;  %v1164_v28 = vadd.f32 %v1163_v18, %v1162_v20  ;;  %v2293_v46 = vrot.slane %v7280_v55, %v7265_v41  ;;  %v2139_v53 = vrot.slane %v7282_v56, %v7241_v27  ;;  %v7383_v20 = vld [vmem:[%s9780_s26 + $0x18] sm:$0x1] }
 0x259   : > { %v1075_v22 = vmul.f32 %v989_v58, %v7313_v10  ;;  %v1074_v23 = vmul.f32 %v985_v59, %v7318_v14  ;;  %v7369_v58 = vld [vmem:[%s9780_s26 + $0xb8] sm:$0x1]  ;;  %v7374_v59 = vld [vmem:[%s9780_s26 + $0xb0] sm:$0xff]  ;;  %v2150_v7 = vrot.slane %v7282_v56, %v7245_v31 }
 0x25a   : > { %v1165_v42 = vrot.slane %v1164_v28, 4 }
 0x25b   : > { %v1172_v32 = vsel %vm1090_vm4, %v1075_v22, 0.0  ;;  %v1171_v34 = vsel %vm1088_vm5, %v1074_v23, 0.0  ;;  %v7388_v22 = vld [vmem:[%s9780_s26 + $0x10] sm:$0xff] }
 0x25c   : > { %v1000_v61 = vpop.permute.xlu1 %999  ;;  %v996_v62 = vpop.permute.xlu0 %995  ;;  %2244 = vbcast.lane.b32.xlu1 %v2238_v60, 264  ;;  %2240 = vbcast.lane.b32.xlu0 %v2238_v60, 256  ;;  %v1173_v45 = vadd.f32 %v1172_v32, %v1171_v34  ;;  %v1166_v50 = vadd.f32 %v1165_v42, %v1164_v28  ;;  %v7397_v32 = vld [vmem:[%s9780_s26 + $0x8] sm:$0x1]  ;;  %v7402_v34 = vld [vmem:[%s9780_s26] sm:$0xff]  ;;  %v2172_v42 = vrot.slane %v7282_v56, %v7253_v35 }
 0x25d   : > { %v1077_v47 = vmul.f32 %v1000_v61, %v7343_v36  ;;  %v1076_v48 = vmul.f32 %v996_v62, %v7348_v38 }
 0x25e   : > { %v1174_v52 = vrot.slane %v1173_v45, 4  ;;  %v1167_v61 = vrot.slane %v1166_v50, 2 }
 0x25f   : > { %v7300_v2 = vpop.f32.mrb[2].mxu0  ;;  %v1181_v54 = vsel %vm1090_vm4, %v1077_v47, 0.0  ;;  %v1180_v57 = vsel %vm1088_vm5, %v1076_v48, 0.0 }
 0x260   : > { %v7302_v3 = vpop.f32.mrb[3].mxu0  ;;  %v1011_v4 = vpop.permute.xlu1 %1010  ;;  %2255 = vbcast.lane.b32.xlu1 %v2249_v63, 264  ;;  %2251 = vbcast.lane.b32.xlu0 %v2249_v63, 256  ;;  %v1175_v63 = vadd.f32 %v1174_v52, %v1173_v45  ;;  %v1182_v6 = vadd.f32 %v1181_v54, %v1180_v57  ;;  %v7390_v23 = vadd.f32 %v1167_v61, %v1166_v50  ;;  %v7417_v52 = vld [vmem:[%s9780_s26 + $0x28] sm:$0x1] }
 0x261   : > { %v1007_v5 = vpop.permute.xlu0 %1006  ;;  %v7408_v45 = vrot.slane %v7282_v56, %v7257_v37  ;;  %v7427_v54 = vld [vmem:[%s9780_s26 + $0xc8] sm:$0x1]  ;;  %v7431_v61 = vrot.slane %v7282_v56, %v7261_v39  ;;  %v7465_v39 = vld [vmem:[%s9780_s26 + $0xd0] sm:$0xff] }
 0x262   : > { %v1078_v18 = vmul.f32 %v1007_v5, %v7374_v59  ;;  %v1176_v5 = vrot.slane %v1175_v63, 2  ;;  %9785 = vst [vmem:[#allocation24_spill] sm:$0xff] %v7465_v39 }
 0x263   : > { %v7308_v9 = vpop.f32.mrb[4].mxu1 }
 0x264   : > { %9781 = vst [vmem:[#allocation20_spill] sm:$0xff] %v7308_v9  ;;  %v7320_v15 = vpop.permute.xlu1 %1021  ;;  %v7322_v16 = vpop.f32.mrb[5].mxu1  ;;  %2266 = vbcast.lane.b32.xlu1 %v2260_v8, 264  ;;  %2262 = vbcast.lane.b32.xlu0 %v2260_v8, 256  ;;  %v1079_v8 = vmul.f32 %v1011_v4, %v7369_v58  ;;  %v2161_v4 = vrot.slane %v7282_v56, %v7249_v33  ;;  %v1189_v47 = vsel %vm1088_vm5, %v1078_v18, 0.0 }
 0x265   : > { %9782 = vst [vmem:[#allocation21_spill] sm:$0xff] %v7322_v16  ;;  %v7324_v17 = vpop.permute.xlu0 %1017 }
 0x268   : > { %v7332_v24 = vpop.permute.xlu1 %1032  ;;  %2277 = vbcast.lane.b32.xlu1 %v2271_v21, 264  ;;  %2273 = vbcast.lane.b32.xlu0 %v2271_v21, 256 }
 0x269   : > { %v7334_v29 = vpop.permute.xlu0 %1028 }
 0x26c   : > { %v7350_v40 = vpop.permute.xlu1 %1043  ;;  %2288 = vbcast.lane.b32.xlu1 %v2282_v30, 264  ;;  %2284 = vbcast.lane.b32.xlu0 %v2282_v30, 256  ;;  %v1183_v30 = vrot.slane %v1182_v6, 4 }
 0x26d   : > { %v7352_v44 = vpop.permute.xlu0 %1039 }
 0x26e   : > { %v7458_v18 = vadd.f32 %v1183_v30, %v1182_v6  ;;  %v1081_v6 = vmul.f32 %v7320_v15, %v7427_v54  ;;  %v7481_v30 = vld [vmem:[%s9780_s26 + $0xe8] sm:$0x1] }
 0x26f   : > { %9787 = vst [vmem:[#allocation26_spill] sm:$0xff] %v7481_v30 }
 0x270   : > { %v7358_v49 = vpop.permute.xlu1 %1054  ;;  %2299 = vbcast.lane.b32.xlu1 %v2293_v46, 264  ;;  %2295 = vbcast.lane.b32.xlu0 %v2293_v46, 256  ;;  %v1190_v46 = vsel %vm1090_vm4, %v1079_v8, 0.0  ;;  %v7439_v8 = vrot.slane %v7282_v56, %v7269_v43 }
 0x271   : > { %v7360_v51 = vpop.permute.xlu0 %1050 }
 0x274   : > { %2145 = vbcast.lane.b32.xlu1 %v2139_v53, 264  ;;  %v890_v60 = vpop.permute.xlu1 %889  ;;  %2141 = vbcast.lane.b32.xlu0 %v2139_v53, 256  ;;  %v7422_v53 = vld [vmem:[%s9780_s26 + $0x20] sm:$0xff] }
 0x275   : > { %v886_v62 = vpop.permute.xlu0 %885  ;;  %9783 = vst [vmem:[#allocation22_spill] sm:$0xff] %v7422_v53 }
 0x276   : > { %v1056_v25 = vmul.f32 %v886_v62, %v7402_v34  ;;  %v7472_v62 = vld [vmem:[%s9780_s26 + $0x38] sm:$0x1] }
 0x277   : > { %9786 = vst [vmem:[#allocation25_spill] sm:$0xff] %v7472_v62 }
 0x278   : > { %2156 = vbcast.lane.b32.xlu1 %v2150_v7, 264  ;;  %v901_v21 = vpop.permute.xlu1 %900  ;;  %2152 = vbcast.lane.b32.xlu0 %v2150_v7, 256  ;;  %v7435_v7 = vrot.slane %v7282_v56, %v7265_v41  ;;  %v7456_v56 = vrot.slane %v7280_v55, %v7269_v43  ;;  %v7460_v41 = vadd.f32 %v1190_v46, %v1189_v47  ;;  %v1089_v35 = vsel %vm1088_vm5, %v1056_v25, 0.0 }
 0x279   : > { %v897_v28 = vpop.permute.xlu0 %896  ;;  %v1059_v48 = vmul.f32 %v901_v21, %v7383_v20  ;;  %v7445_v21 = vld [vmem:[%s9780_s26 + $0xc0] sm:$0xff]  ;;  %v7474_v55 = vadd.f32 %v1176_v5, %v1175_v63  ;;  %v1082_v43 = vmul.f32 %v7334_v29, %v7465_v39  ;;  %v1085_v29 = vmul.f32 %v7350_v40, %v7481_v30 }
 0x27a   : > { %v1058_v50 = vmul.f32 %v897_v28, %v7388_v22  ;;  %v7450_v28 = vld [vmem:[%s9780_s26 + $0xd8] sm:$0x1]  ;;  %v1080_v63 = vmul.f32 %v7324_v17, %v7445_v21  ;;  %v7497_v5 = vld [vmem:[%s9780_s26 + $0xe0] sm:$0xff]  ;;  %v1192_v27 = vrot.slane %v7460_v41, 4  ;;  %v1199_v40 = vsel %vm1090_vm4, %v1081_v6, 0.0 }
 0x27b   : > { %9784 = vst [vmem:[#allocation23_spill] sm:$0xff] %v7450_v28  ;;  %v1100_v46 = vsel %vm1090_vm4, %v1059_v48, 0.0  ;;  %v1083_v15 = vmul.f32 %v7332_v24, %v7450_v28  ;;  %9789 = vst [vmem:[#allocation28_spill] sm:$0xff] %v7497_v5  ;;  %v1084_v25 = vmul.f32 %v7352_v44, %v7497_v5 }
 0x27c   : > { %2167 = vbcast.lane.b32.xlu1 %v2161_v4, 264  ;;  %v912_v57 = vpop.permute.xlu1 %911  ;;  %2163 = vbcast.lane.b32.xlu0 %v2161_v4, 256  ;;  %v1057_v4 = vmul.f32 %v890_v60, %v7397_v32  ;;  %v1099_v47 = vsel %vm1088_vm5, %v1058_v50, 0.0  ;;  %v1198_v44 = vsel %vm1088_vm5, %v1080_v63, 0.0 }
 0x27d   : > { %v908_v19 = vpop.permute.xlu0 %907  ;;  %v1061_v37 = vmul.f32 %v912_v57, %v7417_v52 }
 0x27e   : > { %v1060_v60 = vmul.f32 %v908_v19, %v7422_v53  ;;  %v7488_v19 = vld [vmem:[%s9780_s26 + $0x30] sm:$0xff]  ;;  %v1091_v17 = vsel %vm1090_vm4, %v1057_v4, 0.0 }
 0x27f   : > { %9788 = vst [vmem:[#allocation27_spill] sm:$0xff] %v7488_v19  ;;  %v1109_v48 = vsel %vm1090_vm4, %v1061_v37, 0.0  ;;  %v7511_v37 = vld [vmem:[%s9780_s26 + $0xf8] sm:$0x1]  ;;  %v7521_v4 = vld [vmem:[%s9780_s26 + $0xf0] sm:$0xff] }
 0x280   : > { %v1108_v50 = vsel %vm1088_vm5, %v1060_v60, 0.0  ;;  %2178 = vbcast.lane.b32.xlu1 %v2172_v42, 264  ;;  %v923_v57 = vpop.permute.xlu1 %922  ;;  %2174 = vbcast.lane.b32.xlu0 %v2172_v42, 256  ;;  %9790 = vst [vmem:[#allocation29_spill] sm:$0xff] %v7511_v37  ;;  %v1101_v42 = vadd.f32 %v1100_v46, %v1099_v47  ;;  %9791 = vst [vmem:[#allocation30_spill] sm:$0xff] %v7521_v4  ;;  %v1092_v47 = vadd.f32 %v1091_v17, %v1089_v35 }
 0x281   : > { %v1063_v24 = vmul.f32 %v923_v57, %v7472_v62  ;;  %v919_v33 = vpop.permute.xlu0 %918  ;;  %v1110_v57 = vadd.f32 %v1109_v48, %v1108_v50  ;;  %v7527_v46 = vld [vmem:[%s9780_s26 + $0x48] sm:$0x1]  ;;  %v1208_v50 = vsel %vm1090_vm4, %v1083_v15, 0.0  ;;  %v1087_v11 = vmul.f32 %v7358_v49, %v7511_v37 }
 0x282   : > { %v1062_v60 = vmul.f32 %v919_v33, %v7488_v19  ;;  %9792 = vst [vmem:[#allocation31_spill] sm:$0xff] %v7527_v46  ;;  %v7532_v33 = vld [vmem:[%s9780_s26 + $0x40] sm:$0xff]  ;;  %v1086_v6 = vmul.f32 %v7360_v51, %v7521_v4  ;;  %v1102_v35 = vrot.slane %v1101_v42, 4  ;;  %v1216_v15 = vsel %vm1088_vm5, %v1084_v25, 0.0 }
 0x283   : > { %v1118_v31 = vsel %vm1090_vm4, %v1063_v24, 0.0  ;;  %9793 = vst [vmem:[#allocation32_spill] sm:$0xff] %v7532_v33  ;;  %v1207_v24 = vsel %vm1088_vm5, %v1082_v43, 0.0  ;;  %v1111_v19 = vrot.slane %v1110_v57, 4  ;;  %v7552_v43 = vld [vmem:[%s9780_s26 + $0x58] sm:$0x1]  ;;  %v7564_v25 = vadd.f32 %v1192_v27, %v7460_v41 }
 0x284   : > { %v1117_v26 = vsel %vm1088_vm5, %v1062_v60, 0.0  ;;  %2189 = vbcast.lane.b32.xlu1 %v7408_v45, 264  ;;  %v934_v48 = vpop.permute.xlu1 %933  ;;  %2185 = vbcast.lane.b32.xlu0 %v7408_v45, 256  ;;  %v1200_v60 = vadd.f32 %v1199_v40, %v1198_v44  ;;  %v1217_v45 = vsel %vm1090_vm4, %v1085_v29, 0.0  ;;  %9794 = vst [vmem:[#allocation33_spill] sm:$0xff] %v7552_v43  ;;  %v1209_v40 = vadd.f32 %v1208_v50, %v1207_v24 }
 0x285   : > { %v1119_v9 = vadd.f32 %v1118_v31, %v1117_v26  ;;  %v930_v16 = vpop.permute.xlu0 %929  ;;  %v1065_v63 = vmul.f32 %v934_v48, %v7527_v46  ;;  %v7557_v26 = vld [vmem:[%s9780_s26 + $0x50] sm:$0xff]  ;;  %v1093_v31 = vrot.slane %v1092_v47, 4  ;;  %v1226_v44 = vsel %vm1090_vm4, %v1087_v11, 0.0  ;;  %v7573_v27 = vld [vmem:[%s9780_s26 + $0x68] sm:$0x1]  ;;  %v7578_v11 = vld [vmem:[%s9780_s26 + $0x60] sm:$0xff] }
 0x286   : > { %v1064_v17 = vmul.f32 %v930_v16, %v7532_v33  ;;  %9795 = vst [vmem:[#allocation34_spill] sm:$0xff] %v7557_v26  ;;  %v1225_v37 = vsel %vm1088_vm5, %v1086_v6, 0.0  ;;  %v1103_v33 = vadd.f32 %v1102_v35, %v1101_v42  ;;  %v1201_v46 = vrot.slane %v1200_v60, 4  ;;  %9796 = vst [vmem:[#allocation35_spill] sm:$0xff] %v7573_v27 }
 0x287   : > { %v1120_v49 = vrot.slane %v1119_v9, 4  ;;  %v1127_v16 = vsel %vm1090_vm4, %v1065_v63, 0.0  ;;  %v1218_v62 = vadd.f32 %v1217_v45, %v1216_v15  ;;  %v1112_v5 = vadd.f32 %v1111_v19, %v1110_v57  ;;  %9797 = vst [vmem:[#allocation36_spill] sm:$0xff] %v7578_v11 }
 0x288   : > { %v1126_v51 = vsel %vm1088_vm5, %v1064_v17, 0.0  ;;  %2200 = vbcast.lane.b32.xlu1 %v7431_v61, 264  ;;  %v945_v29 = vpop.permute.xlu1 %944  ;;  %2196 = vbcast.lane.b32.xlu0 %v7431_v61, 256  ;;  %v1094_v41 = vadd.f32 %v1093_v31, %v1092_v47  ;;  %v1194_v57 = vrot.slane %v7564_v25, 2  ;;  %v1227_v50 = vadd.f32 %v1226_v44, %v1225_v37 }
 0x289   : > { %v1128_v48 = vadd.f32 %v1127_v16, %v1126_v51  ;;  %v941_v4 = vpop.permute.xlu0 %940  ;;  %v1067_v63 = vmul.f32 %v945_v29, %v7552_v43  ;;  %v1121_v61 = vadd.f32 %v1120_v49, %v1119_v9  ;;  %v1210_v45 = vrot.slane %v1209_v40, 4 }
 0x28a   : > { %v1066_v17 = vmul.f32 %v941_v4, %v7557_v26  ;;  %v1104_v15 = vrot.slane %v1103_v33, 2  ;;  %v1202_v31 = vadd.f32 %v1201_v46, %v1200_v60  ;;  %v1219_v49 = vrot.slane %v1218_v62, 4 }
 0x28b   : > { %v1129_v30 = vrot.slane %v1128_v48, 4  ;;  %v1136_v42 = vsel %vm1090_vm4, %v1067_v63, 0.0  ;;  %v1113_v16 = vrot.slane %v1112_v5, 2  ;;  %v1095_v37 = vrot.slane %v1094_v41, 2 }
 0x28c   : > { %v1135_v4 = vsel %vm1088_vm5, %v1066_v17, 0.0  ;;  %2211 = vbcast.lane.b32.xlu1 %v7435_v7, 264  ;;  %v956_v19 = vpop.permute.xlu1 %955  ;;  %2207 = vbcast.lane.b32.xlu0 %v7435_v7, 256  ;;  %v7590_v7 = vld [vmem:[%s9780_s26 + $0x78] sm:$0x1]  ;;  %v1122_v29 = vrot.slane %v1121_v61, 2  ;;  %v1220_v26 = vadd.f32 %v1219_v49, %v1218_v62 }
 0x28d   : > { %v1130_v24 = vadd.f32 %v1129_v30, %v1128_v48  ;;  %v1137_v6 = vadd.f32 %v1136_v42, %v1135_v4  ;;  %v952_v35 = vpop.permute.xlu0 %951  ;;  %v1069_v47 = vmul.f32 %v956_v19, %v7573_v27  ;;  %9798 = vst [vmem:[#allocation37_spill] sm:$0xff] %v7590_v7  ;;  %v7595_v30 = vld [vmem:[%s9780_s26 + $0x70] sm:$0xff]  ;;  %v1228_v60 = vrot.slane %v1227_v50, 4 }
 0x28e   : > { %v1068_v9 = vmul.f32 %v952_v35, %v7578_v11  ;;  %9799 = vst [vmem:[#allocation38_spill] sm:$0xff] %v7595_v30  ;;  %v1211_v19 = vadd.f32 %v1210_v45, %v1209_v40  ;;  %v1105_v35 = vadd.f32 %v1104_v15, %v1103_v33  ;;  %v1096_v39 = vadd.f32 %v1095_v37, %v1094_v41 }
 0x28f   : > { %v1138_v51 = vrot.slane %v1137_v6, 4  ;;  %v1145_v44 = vsel %vm1090_vm4, %v1069_v47, 0.0  ;;  %v1131_v63 = vrot.slane %v1130_v24, 2  ;;  %v1114_v47 = vadd.f32 %v1113_v16, %v1112_v5 }
 0x290   : > { %v1144_v48 = vsel %vm1088_vm5, %v1068_v9, 0.0  ;;  %2222 = vbcast.lane.b32.xlu1 %v7439_v8, 264  ;;  %v967_v46 = vpop.permute.xlu1 %966  ;;  %2218 = vbcast.lane.b32.xlu0 %v7439_v8, 256  ;;  %v1123_v28 = vadd.f32 %v1122_v29, %v1121_v61  ;;  %v1229_v33 = vadd.f32 %v1228_v60, %v1227_v50  ;;  %v9800_v62 = vrot.slane %v7458_v18, 2 }
 0x291   : > { %v1139_v17 = vadd.f32 %v1138_v51, %v1137_v6  ;;  %v1146_v42 = vadd.f32 %v1145_v44, %v1144_v48  ;;  %v963_v4 = vpop.permute.xlu0 %962  ;;  %v1071_v11 = vmul.f32 %v967_v46, %v7590_v7  ;;  %v1132_v40 = vadd.f32 %v1131_v63, %v1130_v24 }
 0x292   : > { %v1070_v27 = vmul.f32 %v963_v4, %v7595_v30  ;;  %v1186_v5 = vadd.f32 %v9800_v62, %v7458_v18  ;;  %v1203_v41 = vrot.slane %v1202_v31, 2  ;;  %v1106_v61 = vrot.slane %v1105_v35, 1 }
 0x293   : > { %v1140_v43 = vrot.slane %v1139_v17, 2  ;;  %v1147_v9 = vrot.slane %v1146_v42, 4  ;;  %v1154_v53 = vsel %vm1090_vm4, %v1071_v11, 0.0  ;;  %v1212_v11 = vrot.slane %v1211_v19, 2 }
 0x294   : > { %v1153_v8 = vsel %vm1088_vm5, %v1070_v27, 0.0  ;;  %2310 = vbcast.lane.b32.xlu1 %v7456_v56, 264  ;;  %2306 = vbcast.lane.b32.xlu0 %v7456_v56, 256  ;;  %v1115_v49 = vrot.slane %v1114_v47, 1  ;;  %v1195_v56 = vadd.f32 %v1194_v57, %v7564_v25  ;;  %v1221_v51 = vrot.slane %v1220_v26, 2 }
 0x295   : > { %v1148_v6 = vadd.f32 %v1147_v9, %v1146_v42  ;;  %v1155_v45 = vadd.f32 %v1154_v53, %v1153_v8  ;;  %v1141_v15 = vadd.f32 %v1140_v43, %v1139_v17  ;;  %v1097_v50 = vrot.slane %v1096_v39, 1 }
 0x296   : > { %v1124_v24 = vrot.slane %v1123_v28, 1  ;;  %v1230_v53 = vrot.slane %v1229_v33, 2  ;;  %v1133_v37 = vrot.slane %v1132_v40, 1  ;;  %v1178_v18 = vrot.slane %v7474_v55, 1 }
 0x297   : > { %v1149_v27 = vrot.slane %v1148_v6, 2  ;;  %v1156_v16 = vrot.slane %v1155_v45, 4  ;;  %v1204_v48 = vadd.f32 %v1203_v41, %v1202_v31  ;;  %v1107_v43 = vadd.f32 %v1106_v61, %v1105_v35 }
 0x298   : > { %v1142_v46 = vrot.slane %v1141_v15, 1  ;;  %v1213_v60 = vadd.f32 %v1212_v11, %v1211_v19  ;;  %v1116_v63 = vadd.f32 %v1115_v49, %v1114_v47  ;;  %v1187_v4 = vrot.slane %v1186_v5, 1 }
 0x299   : > { %v1150_v29 = vadd.f32 %v1149_v27, %v1148_v6  ;;  %v1157_v44 = vadd.f32 %v1156_v16, %v1155_v45  ;;  %v1222_v25 = vadd.f32 %v1221_v51, %v1220_v26  ;;  %v1098_v57 = vadd.f32 %v1097_v50, %v1096_v39 }
 0x29a   : > { %v1125_v9 = vadd.f32 %v1124_v24, %v1123_v28  ;;  %v1196_v8 = vrot.slane %v1195_v56, 1  ;;  %v1231_v62 = vadd.f32 %v1230_v53, %v1229_v33  ;;  %v1134_v30 = vadd.f32 %v1133_v37, %v1132_v40 }
 0x29b   : > { %v1151_v17 = vrot.slane %v1150_v29, 1  ;;  %v1158_v42 = vrot.slane %v1157_v44, 2  ;;  %v1179_v6 = vadd.f32 %v1178_v18, %v7474_v55  ;;  %v1205_v45 = vrot.slane %v1204_v48, 1  ;;  %v7633_v18 = vld [vmem:[%s9802_s17] sm:$0xff] }
 0x29c   : > { %v1255_v27 = vsel %vm1254_vm6, %v1107_v43, %v1098_v57  ;;  %v1143_v31 = vadd.f32 %v1142_v46, %v1141_v15  ;;  %v1214_v35 = vrot.slane %v1213_v60, 1  ;;  %v9801_v26 = vrot.slane %v7390_v23, 1 }
 0x29d   : > { %v1159_v7 = vadd.f32 %v1158_v42, %v1157_v44  ;;  %v1257_v19 = vsel %vm1256_vm7, %v1116_v63, %v1255_v27  ;;  %v1152_v47 = vadd.f32 %v1151_v17, %v1150_v29  ;;  %v1188_v28 = vadd.f32 %v1187_v4, %v1186_v5 }
 0x29e   : > { %v1170_v39 = vadd.f32 %v9801_v26, %v7390_v23  ;;  %v1223_v61 = vrot.slane %v1222_v25, 1  ;;  %v1259_v33 = vsel %vm1258_vm8, %v1125_v9, %v1257_v19  ;;  %v1197_v40 = vadd.f32 %v1196_v8, %v1195_v56  ;;  %v760_v8 = vld [vmem:[%s7152_s14] sm:$0xff] }
 0x29f   : > { %v1160_v41 = vrot.slane %v1159_v7, 1  ;;  %v1232_v11 = vrot.slane %v1231_v62, 1  ;;  %v1261_v49 = vsel %vm1260_vm9, %v1134_v30, %v1259_v33  ;;  %v1206_v16 = vadd.f32 %v1205_v45, %v1204_v48 }
 0x2a0   : > { %v1263_v15 = vsel %vm1262_vm10, %v1143_v31, %v1261_v49  ;;  %v1268_v51 = vsel %vm1254_vm6, %v1179_v6, %v1170_v39  ;;  %v1215_v50 = vadd.f32 %v1214_v35, %v1213_v60  ;;  %v1224_v5 = vadd.f32 %v1223_v61, %v1222_v25 }
 0x2a1   : > { %v1161_v55 = vadd.f32 %v1160_v41, %v1159_v7  ;;  %v1265_v24 = vsel %vm1264_vm11, %v1152_v47, %v1263_v15  ;;  %v1269_v23 = vsel %vm1256_vm7, %v1188_v28, %v1268_v51  ;;  %v1233_v56 = vadd.f32 %v1232_v11, %v1231_v62  ;;  %v761_v62 = vld [vmem:[%s7152_s14 + $0x8] sm:$0x1]  ;;  %s7030_s14 = smov 104  }
 0x2a2   : > { %v1270_v7 = vsel %vm1258_vm8, %v1197_v40, %v1269_v23  ;;  %vm796_vm13 = vcmp.gt.f32.partialorder %v7633_v18, 0.5  ;;  %v7661_v6 = vpack.c.bf16 %v761_v62, %v760_v8 }
 0x2a3   : > { %v1267_v53 = vsel %vm1266_vm12, %v1161_v55, %v1265_v24  ;;  %v1271_v30 = vsel %vm1260_vm9, %v1206_v16, %v1270_v7 }
 0x2a4   : > { %v1348_v37 = vadd.f32 %v7302_v3, %v1267_v53  ;;  %v1272_v29 = vsel %vm1262_vm10, %v1215_v50, %v1271_v30  ;;  %v7641_v3 = vld [vmem:[%s9802_s17 + $0x8] sm:$0xff]  ;;  %6676 = vmatprep.subr.msk.bf16.mxu0 %vm7663_vm1, %v7661_v6  ;;  %6708 = vmatprep.subr.msk.bf16.mxu1 %vm7663_vm1, %v7661_v6 }
 0x2a5   : > { %v1273_v44 = vsel %vm1264_vm11, %v1224_v5, %v1272_v29  ;;  %vm797_vm14 = vcmp.gt.f32.partialorder %v7641_v3, 0.5  ;;  %6679 = vmatpush3.bf16.msk.msra.mxu0 %vm7663_vm1, %v7661_v6 }
 0x2a6   : > { %v1274_v48 = vsel %vm1266_vm12, %v1233_v56, %v1273_v44  ;;  %v1356_v43 = vmul.f32 0.35355338, %v1348_v37 }
 0x2a7   : > { %v1353_v46 = vadd.f32 %v7300_v2, %v1274_v48 }
 0x2a8   : > { %v7645_v60 = vsel %vm796_vm13, %v1356_v43, -1000000.0 }
 0x2a9   : > { %v1357_v63 = vmul.f32 0.35355338, %v1353_v46  ;;  %v1360_v17 = vsel %vm1088_vm5, %v7645_v60, -inf }
 0x2ab   : > { %v7652_v2 = vsel %vm797_vm14, %v1357_v63, -1000000.0 }
 0x2ac   : > { %v1363_v42 = vsel %vm1088_vm5, %v7652_v2, -inf }
 0x2b3   : > { %1361 = vmax.xlane.f32.xlu0 %v1360_v17 }
 0x2b8   : > { %1364 = vmax.xlane.f32.xlu1 %v1363_v42 }
 0x2c9   : > { %3291 = vrot.lane.b32.xlu1 %v7201_v12, %s7024_s13 }
 0x2ca   : > { %v2234_v4 = vpop.permute.xlu1 %2233  ;;  %v2230_v25 = vpop.permute.xlu0 %2229 }
 0x2cb   : > { %v2329_v35 = vmul.f32 %v2234_v4, %v7293_v0  ;;  %v2328_v19 = vmul.f32 %v2230_v25, %v7298_v1 }
 0x2cd   : > { %6815 = vrot.lane.b32.xlu1 %v7208_v13, %s7025_s21  ;;  %v2417_v26 = vsel %vm1090_vm4, %v2329_v35, 0.0  ;;  %v2416_v39 = vsel %vm1088_vm5, %v2328_v19, 0.0  ;;  %v9806_v19 = vld [vmem:[#allocation23_spill] sm:$0xff] }
 0x2ce   : > { %v2245_v57 = vpop.permute.xlu1 %2244  ;;  %v2241_v9 = vpop.permute.xlu0 %2240  ;;  %v2418_v11 = vadd.f32 %v2417_v26, %v2416_v39  ;;  %v9807_v39 = vld [vmem:[#allocation24_spill] sm:$0xff] }
 0x2cf   : > { %v2331_v33 = vmul.f32 %v2245_v57, %v7313_v10  ;;  %v2330_v40 = vmul.f32 %v2241_v9, %v7318_v14 }
 0x2d0   : > { %v2419_v51 = vrot.slane %v2418_v11, 4 }
 0x2d1   : > { %v2426_v16 = vsel %vm1090_vm4, %v2331_v33, 0.0  ;;  %v2425_v0 = vsel %vm1088_vm5, %v2330_v40, 0.0 }
 0x2d2   : > { %v2256_v27 = vpop.permute.xlu1 %2255  ;;  %v2252_v31 = vpop.permute.xlu0 %2251  ;;  %v2427_v50 = vadd.f32 %v2426_v16, %v2425_v0  ;;  %v2420_v14 = vadd.f32 %v2419_v51, %v2418_v11  ;;  %v9808_v0 = vld [vmem:[#allocation26_spill] sm:$0xff] }
 0x2d3   : > { %v2333_v1 = vmul.f32 %v2256_v27, %v7343_v36  ;;  %v2332_v15 = vmul.f32 %v2252_v31, %v7348_v38 }
 0x2d4   : > { %v2428_v53 = vrot.slane %v2427_v50, 4  ;;  %v2421_v37 = vrot.slane %v2420_v14, 2 }
 0x2d5   : > { %v2435_v5 = vsel %vm1090_vm4, %v2333_v1, 0.0  ;;  %v2434_v10 = vsel %vm1088_vm5, %v2332_v15, 0.0  ;;  %v9809_v1 = vld [vmem:[#allocation28_spill] sm:$0xff] }
 0x2d6   : > { %v2267_v47 = vpop.permute.xlu1 %2266  ;;  %v2263_v41 = vpop.permute.xlu0 %2262  ;;  %v2436_v56 = vadd.f32 %v2435_v5, %v2434_v10  ;;  %v2429_v44 = vadd.f32 %v2428_v53, %v2427_v50  ;;  %v2422_v57 = vadd.f32 %v2421_v37, %v2420_v14  ;;  %v9810_v10 = vld [vmem:[#allocation25_spill] sm:$0xff]  ;;  %v9811_v53 = vld [vmem:[#allocation27_spill] sm:$0xff] }
 0x2d7   : > { %v2335_v29 = vmul.f32 %v2267_v47, %v7369_v58  ;;  %v2334_v36 = vmul.f32 %v2263_v41, %v7374_v59 }
 0x2d8   : > { %v2437_v38 = vrot.slane %v2436_v56, 4  ;;  %v2430_v9 = vrot.slane %v2429_v44, 2  ;;  %v2423_v11 = vrot.slane %v2422_v57, 1 }
 0x2d9   : > { %v2444_v58 = vsel %vm1090_vm4, %v2335_v29, 0.0  ;;  %v2443_v59 = vsel %vm1088_vm5, %v2334_v36, 0.0 }
 0x2da   : > { %v2278_v28 = vpop.permute.xlu1 %2277  ;;  %v2274_v61 = vpop.permute.xlu0 %2273  ;;  %v2438_v8 = vadd.f32 %v2437_v38, %v2436_v56  ;;  %v2445_v35 = vadd.f32 %v2444_v58, %v2443_v59  ;;  %v9813_v58 = vld [vmem:[#allocation32_spill] sm:$0xff] }
 0x2db   : > { %v2337_v46 = vmul.f32 %v2278_v28, %v7427_v54  ;;  %v2336_v63 = vmul.f32 %v2274_v61, %v7445_v21 }
 0x2de   : > { %v2289_v55 = vpop.permute.xlu1 %2288  ;;  %v2285_v49 = vpop.permute.xlu0 %2284 }
 0x2df   : > { %v2339_v47 = vmul.f32 %v2289_v55, %v9806_v19  ;;  %v2338_v28 = vmul.f32 %v2285_v49, %v9807_v39  ;;  %v7714_v49 = vadd.f32 %v2430_v9, %v2429_v44  ;;  %v7724_v9 = vadd.f32 %v2423_v11, %v2422_v57 }
 0x2e1   : > { %v2462_v37 = vsel %vm1090_vm4, %v2339_v47, 0.0  ;;  %v2461_v29 = vsel %vm1088_vm5, %v2338_v28, 0.0  ;;  %v9814_v28 = vld [vmem:[#allocation33_spill] sm:$0xff] }
 0x2e2   : > { %v2300_v24 = vpop.permute.xlu1 %2299  ;;  %v2296_v23 = vpop.permute.xlu0 %2295 }
 0x2e3   : > { %v2340_v15 = vmul.f32 %v2296_v23, %v9809_v1 }
 0x2e6   : > { %v2146_v7 = vpop.permute.xlu1 %2145  ;;  %v2142_v30 = vpop.permute.xlu0 %2141 }
 0x2e7   : > { %v2313_v4 = vmul.f32 %v2146_v7, %v7397_v32  ;;  %v2312_v25 = vmul.f32 %v2142_v30, %v7402_v34  ;;  %v9805_v34 = vld [vmem:[#allocation22_spill] sm:$0xff]  ;;  %v2439_v7 = vrot.slane %v2438_v8, 2  ;;  %v2446_v30 = vrot.slane %v2445_v35, 4 }
 0x2e9   : > { %v2345_v41 = vsel %vm1090_vm4, %v2313_v4, 0.0  ;;  %v2344_v26 = vsel %vm1088_vm5, %v2312_v25, 0.0  ;;  %v9812_v4 = vld [vmem:[#allocation31_spill] sm:$0xff] }
 0x2ea   : > { %v2157_v48 = vpop.permute.xlu1 %2156  ;;  %v2153_v43 = vpop.permute.xlu0 %2152  ;;  %v2346_v55 = vadd.f32 %v2345_v41, %v2344_v26 }
 0x2eb   : > { %v2315_v17 = vmul.f32 %v2157_v48, %v7383_v20  ;;  %v2314_v42 = vmul.f32 %v2153_v43, %v7388_v22  ;;  %v2453_v20 = vsel %vm1090_vm4, %v2337_v46, 0.0  ;;  %v2452_v22 = vsel %vm1088_vm5, %v2336_v63, 0.0 }
 0x2ec   : > { %v2454_v16 = vadd.f32 %v2453_v20, %v2452_v22  ;;  %v2470_v43 = vsel %vm1088_vm5, %v2340_v15, 0.0 }
 0x2ed   : > { %v2354_v62 = vsel %vm1090_vm4, %v2315_v17, 0.0  ;;  %v2353_v54 = vsel %vm1088_vm5, %v2314_v42, 0.0  ;;  %v2347_v17 = vrot.slane %v2346_v55, 4 }
 0x2ee   : > { %v2168_v21 = vpop.permute.xlu1 %2167  ;;  %v2164_v27 = vpop.permute.xlu0 %2163  ;;  %v2355_v61 = vadd.f32 %v2354_v62, %v2353_v54  ;;  %v2455_v38 = vrot.slane %v2454_v16, 4  ;;  %v2447_v62 = vadd.f32 %v2446_v30, %v2445_v35  ;;  %v2463_v54 = vadd.f32 %v2462_v37, %v2461_v29  ;;  %v9817_v37 = vld [vmem:[#allocation36_spill] sm:$0xff] }
 0x2ef   : > { %v2317_v32 = vmul.f32 %v2168_v21, %v7417_v52  ;;  %v2316_v31 = vmul.f32 %v2164_v27, %v9805_v34  ;;  %v2341_v52 = vmul.f32 %v2300_v24, %v9808_v0  ;;  %v7726_v27 = vadd.f32 %v2439_v7, %v2438_v8  ;;  %v9816_v7 = vld [vmem:[#allocation35_spill] sm:$0xff] }
 0x2f0   : > { %v2356_v36 = vrot.slane %v2355_v61, 4  ;;  %v2432_v34 = vrot.slane %v7714_v49, 1  ;;  %v2348_v39 = vadd.f32 %v2347_v17, %v2346_v55  ;;  %v2448_v8 = vrot.slane %v2447_v62, 2 }
 0x2f1   : > { %v2363_v33 = vsel %vm1090_vm4, %v2317_v32, 0.0  ;;  %v2362_v40 = vsel %vm1088_vm5, %v2316_v31, 0.0  ;;  %v2471_v48 = vsel %vm1090_vm4, %v2341_v52, 0.0  ;;  %v2456_v31 = vadd.f32 %v2455_v38, %v2454_v16 }
 0x2f2   : > { %v2179_v51 = vpop.permute.xlu1 %2178  ;;  %v2175_v50 = vpop.permute.xlu0 %2174  ;;  %v2364_v5 = vadd.f32 %v2363_v33, %v2362_v40  ;;  %v2357_v20 = vadd.f32 %v2356_v36, %v2355_v61  ;;  %v2472_v19 = vadd.f32 %v2471_v48, %v2470_v43  ;;  %v9815_v33 = vld [vmem:[#allocation34_spill] sm:$0xff]  ;;  %v2464_v11 = vrot.slane %v2463_v54, 4 }
 0x2f3   : > { %v2319_v14 = vmul.f32 %v2179_v51, %v9810_v10  ;;  %v2318_v56 = vmul.f32 %v2175_v50, %v9811_v53  ;;  %v2441_v52 = vrot.slane %v7726_v27, 1  ;;  %v2457_v51 = vrot.slane %v2456_v31, 2 }
 0x2f4   : > { %v2365_v42 = vrot.slane %v2364_v5, 4  ;;  %v2358_v1 = vrot.slane %v2357_v20, 2  ;;  %v2473_v50 = vrot.slane %v2472_v19, 4  ;;  %v2349_v53 = vrot.slane %v2348_v39, 2 }
 0x2f5   : > { %v2372_v24 = vsel %vm1090_vm4, %v2319_v14, 0.0  ;;  %v2371_v23 = vsel %vm1088_vm5, %v2318_v56, 0.0  ;;  %v7738_v36 = vadd.f32 %v2448_v8, %v2447_v62  ;;  %v9818_v62 = vld [vmem:[#allocation37_spill] sm:$0xff] }
 0x2f6   : > { %v2373_v46 = vadd.f32 %v2372_v24, %v2371_v23  ;;  %v2190_v63 = vpop.permute.xlu1 %2189  ;;  %v2186_v44 = vpop.permute.xlu0 %2185  ;;  %v2366_v57 = vadd.f32 %v2365_v42, %v2364_v5  ;;  %v2465_v24 = vadd.f32 %v2464_v11, %v2463_v54  ;;  %v2359_v48 = vadd.f32 %v2358_v1, %v2357_v20  ;;  %v9819_v54 = vld [vmem:[#allocation38_spill] sm:$0xff] }
 0x2f7   : > { %v2321_v25 = vmul.f32 %v2190_v63, %v9812_v4  ;;  %v2320_v59 = vmul.f32 %v2186_v44, %v9813_v58  ;;  %v7742_v44 = vadd.f32 %v2457_v51, %v2456_v31  ;;  %v2474_v17 = vadd.f32 %v2473_v50, %v2472_v19  ;;  %v9821_v51 = vld [vmem:[#allocation30_spill] sm:$0xff] }
 0x2f8   : > { %v2374_v21 = vrot.slane %v2373_v46, 4  ;;  %v2367_v56 = vrot.slane %v2366_v57, 2 }
 0x2f9   : > { %v2381_v22 = vsel %vm1090_vm4, %v2321_v25, 0.0  ;;  %v2380_v32 = vsel %vm1088_vm5, %v2320_v59, 0.0  ;;  %v2350_v59 = vadd.f32 %v2349_v53, %v2348_v39 }
 0x2fa   : > { %v2382_v47 = vadd.f32 %v2381_v22, %v2380_v32  ;;  %v2201_v41 = vpop.permute.xlu1 %2200  ;;  %v2197_v26 = vpop.permute.xlu0 %2196  ;;  %v2375_v61 = vadd.f32 %v2374_v21, %v2373_v46  ;;  %v2368_v21 = vadd.f32 %v2367_v56, %v2366_v57 }
 0x2fb   : > { %v2323_v35 = vmul.f32 %v2201_v41, %v9814_v28  ;;  %v2322_v40 = vmul.f32 %v2197_v26, %v9815_v33  ;;  %v2360_v28 = vrot.slane %v2359_v48, 1  ;;  %v2475_v33 = vrot.slane %v2474_v17, 2 }
 0x2fc   : > { %v2383_v0 = vrot.slane %v2382_v47, 4  ;;  %v2376_v23 = vrot.slane %v2375_v61, 2  ;;  %v2369_v1 = vrot.slane %v2368_v21, 1 }
 0x2fd   : > { %v2390_v15 = vsel %vm1090_vm4, %v2323_v35, 0.0  ;;  %v2389_v16 = vsel %vm1088_vm5, %v2322_v40, 0.0 }
 0x2fe   : > { %v2384_v10 = vadd.f32 %v2383_v0, %v2382_v47  ;;  %v2391_v55 = vadd.f32 %v2390_v15, %v2389_v16  ;;  %v2212_v5 = vpop.permute.xlu1 %2211  ;;  %v2208_v14 = vpop.permute.xlu0 %2207  ;;  %v2466_v47 = vrot.slane %v2465_v24, 2  ;;  %v2377_v20 = vadd.f32 %v2376_v23, %v2375_v61  ;;  %v9820_v15 = vld [vmem:[#allocation29_spill] sm:$0xff] }
 0x2ff   : > { %v2325_v30 = vmul.f32 %v2212_v5, %v9816_v7  ;;  %v2324_v29 = vmul.f32 %v2208_v14, %v9817_v37  ;;  %v2351_v0 = vrot.slane %v2350_v59, 1  ;;  %v2361_v14 = vadd.f32 %v2360_v28, %v2359_v48 }
 0x300   : > { %v2392_v38 = vrot.slane %v2391_v55, 4  ;;  %v2385_v43 = vrot.slane %v2384_v10, 2  ;;  %v2467_v50 = vadd.f32 %v2466_v47, %v2465_v24  ;;  %v2433_v48 = vadd.f32 %v2432_v34, %v7714_v49 }
 0x301   : > { %v2399_v46 = vsel %vm1090_vm4, %v2325_v30, 0.0  ;;  %v2398_v63 = vsel %vm1088_vm5, %v2324_v29, 0.0 }
 0x302   : > { %v2393_v42 = vadd.f32 %v2392_v38, %v2391_v55  ;;  %v2400_v4 = vadd.f32 %v2399_v46, %v2398_v63  ;;  %v2223_v25 = vpop.permute.xlu1 %2222  ;;  %v2219_v58 = vpop.permute.xlu0 %2218  ;;  %v2386_v35 = vadd.f32 %v2385_v43, %v2384_v10  ;;  %v2378_v55 = vrot.slane %v2377_v20, 1 }
 0x303   : > { %v2327_v22 = vmul.f32 %v2223_v25, %v9818_v62  ;;  %v2326_v32 = vmul.f32 %v2219_v58, %v9819_v54  ;;  %v2450_v38 = vrot.slane %v7738_v36, 1  ;;  %v2476_v43 = vadd.f32 %v2475_v33, %v2474_v17 }
 0x304   : > { %v2394_v41 = vrot.slane %v2393_v42, 2  ;;  %v2401_v26 = vrot.slane %v2400_v4, 4  ;;  %v2387_v53 = vrot.slane %v2386_v35, 1  ;;  %v2352_v46 = vadd.f32 %v2351_v0, %v2350_v59 }
 0x305   : > { %v2408_v31 = vsel %vm1090_vm4, %v2327_v22, 0.0  ;;  %v2407_v19 = vsel %vm1088_vm5, %v2326_v32, 0.0  ;;  %v2370_v63 = vadd.f32 %v2369_v1, %v2368_v21  ;;  %v2459_v58 = vrot.slane %v7742_v44, 1 }
 0x306   : > { %v2395_v40 = vadd.f32 %v2394_v41, %v2393_v42  ;;  %v2402_v8 = vadd.f32 %v2401_v26, %v2400_v4  ;;  %v2409_v11 = vadd.f32 %v2408_v31, %v2407_v19  ;;  %v2311_v39 = vpop.permute.xlu1 %2310  ;;  %v2307_v57 = vpop.permute.xlu0 %2306  ;;  %v2379_v42 = vadd.f32 %v2378_v55, %v2377_v20 }
 0x307   : > { %v2343_v16 = vmul.f32 %v2311_v39, %v9820_v15  ;;  %v2342_v61 = vmul.f32 %v2307_v57, %v9821_v51  ;;  %v2468_v62 = vrot.slane %v2467_v50, 1  ;;  %v2388_v22 = vadd.f32 %v2387_v53, %v2386_v35 }
 0x308   : > { %v2403_v5 = vrot.slane %v2402_v8, 2  ;;  %v2410_v10 = vrot.slane %v2409_v11, 4  ;;  %v2396_v30 = vrot.slane %v2395_v40, 1  ;;  %v2508_v54 = vsel %vm1254_vm6, %v2361_v14, %v2352_v46 }
 0x309   : > { %v2480_v56 = vsel %vm1090_vm4, %v2343_v16, 0.0  ;;  %v2479_v7 = vsel %vm1088_vm5, %v2342_v61, 0.0  ;;  %v2442_v17 = vadd.f32 %v2441_v52, %v7726_v27  ;;  %v2477_v59 = vrot.slane %v2476_v43, 1  ;;  %v9822_v16 = vld [vmem:[#allocation21_spill] sm:$0xff] }
 0x30a   : > { %v2404_v37 = vadd.f32 %v2403_v5, %v2402_v8  ;;  %v2411_v29 = vadd.f32 %v2410_v10, %v2409_v11  ;;  %v2481_v23 = vadd.f32 %v2480_v56, %v2479_v7  ;;  %v2397_v32 = vadd.f32 %v2396_v30, %v2395_v40  ;;  %v9824_v30 = vld [vmem:[#allocation7_spill] sm:$0xff] }
 0x30b   : > { %v2509_v21 = vsel %vm1256_vm7, %v2370_v63, %v2508_v54  ;;  %v2451_v26 = vadd.f32 %v2450_v38, %v7738_v36  ;;  %v2515_v35 = vsel %vm1254_vm6, %v2433_v48, %v7724_v9  ;;  %v2460_v31 = vadd.f32 %v2459_v58, %v7742_v44 }
 0x30c   : > { %v2405_v24 = vrot.slane %v2404_v37, 1  ;;  %v2412_v4 = vrot.slane %v2411_v29, 2  ;;  %v2482_v25 = vrot.slane %v2481_v23, 4  ;;  %v2510_v28 = vsel %vm1258_vm8, %v2379_v42, %v2509_v21 }
 0x30d   : > { %v2511_v19 = vsel %vm1260_vm9, %v2388_v22, %v2510_v28  ;;  %v2469_v33 = vadd.f32 %v2468_v62, %v2467_v50  ;;  %v2516_v8 = vsel %vm1256_vm7, %v2442_v17, %v2515_v35  ;;  %v2478_v11 = vadd.f32 %v2477_v59, %v2476_v43  ;;  %v9823_v50 = vld [vmem:[#allocation20_spill] sm:$0xff] }
 0x30e   : > { %v2413_v47 = vadd.f32 %v2412_v4, %v2411_v29  ;;  %v2483_v41 = vadd.f32 %v2482_v25, %v2481_v23  ;;  %v2406_v20 = vadd.f32 %v2405_v24, %v2404_v37  ;;  %v2512_v52 = vsel %vm1262_vm10, %v2397_v32, %v2511_v19 }
 0x30f   : > { %v2517_v57 = vsel %vm1258_vm8, %v2451_v26, %v2516_v8 }
 0x310   : > { %v2414_v49 = vrot.slane %v2413_v47, 1  ;;  %v2484_v34 = vrot.slane %v2483_v41, 2  ;;  %v2513_v36 = vsel %vm1264_vm11, %v2406_v20, %v2512_v52  ;;  %v2518_v9 = vsel %vm1260_vm9, %v2460_v31, %v2517_v57 }
 0x311   : > { %v2519_v1 = vsel %vm1262_vm10, %v2469_v33, %v2518_v9  ;;  %v9826_v9 = vld [vmem:[#allocation12_spill] sm:$0xff] }
 0x312   : > { %v2485_v40 = vadd.f32 %v2484_v34, %v2483_v41  ;;  %v2415_v27 = vadd.f32 %v2414_v49, %v2413_v47  ;;  %v2520_v15 = vsel %vm1264_vm11, %v2478_v11, %v2519_v1  ;;  %v7027_v34 = vmov 1966171168  }
 0x313   : > { %v1386_v28 = vunpack.c.l.s4 %v7027_v34 }
 0x314   : > { %v2486_v39 = vrot.slane %v2485_v40, 1  ;;  %v2514_v0 = vsel %vm1266_vm12, %v2415_v27, %v2513_v36 }
 0x315   : > { %v2595_v51 = vadd.f32 %v9822_v16, %v2514_v0  ;;  %v1387_v31 = vunpack.c.0.s8 %v1386_v28 }
 0x316   : > { %v2487_v44 = vadd.f32 %v2486_v39, %v2485_v40  ;;  %v9825_v40 = vld [vmem:[#allocation11_spill] sm:$0xff] }
 0x317   : > { %v2603_v10 = vmul.f32 0.35355338, %v2595_v51  ;;  %v7816_v27 = vsub.s32 %v1387_v31, %v9825_v40  ;;  %v7836_v51 = vld [vmem:[%s9780_s26 + $0x88] sm:$0x1] }
 0x318   : > { %v2521_v61 = vsel %vm1266_vm12, %v2487_v44, %v2520_v15 }
 0x319   : > { %v2600_v55 = vadd.f32 %v9823_v50, %v2521_v61  ;;  %v2605_v56 = vsel %vm796_vm13, %v2603_v10, -1000000.0  ;;  %v7842_v50 = vld [vmem:[%s9780_s26 + $0x80] sm:$0xff] }
 0x31a   : > { %v2607_v7 = vsel %vm1088_vm5, %v2605_v56, -inf }
 0x31b   : > { %v2604_v5 = vmul.f32 0.35355338, %v2600_v55 }
 0x31d   : > { %v2606_v14 = vsel %vm797_vm14, %v2604_v5, -1000000.0  ;;  %v7848_v5 = vld [vmem:[%s9780_s26 + $0x8] sm:$0x1] }
 0x31e   : > { %v2610_v53 = vsel %vm1088_vm5, %v2606_v14, -inf }
 0x31f   : > { %2611 = vmax.xlane.f32.xlu0 %v2610_v53 }
 0x323   : > { %2608 = vmax.xlane.f32.xlu0 %v2607_v7 }
 0x339   : > { %3293 = vrot.lane.b32.xlu0 %v9824_v30, %s7024_s13 }
 0x340   : > { %v1362_v37 = vpop.xlane.xlu0 %1361 }
 0x341   : > { %v1366_v29 = vsub.f32 %v7645_v60, %v1362_v37 }
 0x343   : > { %v1368_v23 = vmul.f32 1.442695, %v1366_v29 }
 0x345   : > { %6844 = vpow2.f32 %v1368_v23  ;;  %v1365_v38 = vpop.xlane.xlu1 %1364 }
 0x346   : > { %v1367_v43 = vsub.f32 %v7652_v2, %v1365_v38 }
 0x348   : > { %v1370_v46 = vmul.f32 1.442695, %v1367_v43 }
 0x349   : > { %v7789_v63 = vpop.permute.xlu1 %3291 }
 0x34a   : > { %6846 = vpow2.f32 %v1370_v46  ;;  %6569 = vmatprep.mubr.msk.f32.mxu1 %vm798_vm2, %v7789_v63 }
 0x34d   : > { %v6816_v42 = vpop.permute.xlu1 %6815 }
 0x34e   : > { %v6818_v24 = vunpack.i.h.bf16 %v6816_v42  ;;  %v6817_v4 = vunpack.i.l.bf16 %v6816_v42 }
 0x34f   : > { %v6845_v25 = vpop.eup %6844 }
 0x350   : > { %v1372_v48 = vsel %vm1088_vm5, %v6845_v25, 0.0  ;;  %v7794_v58 = vpack.c.bf16 %v6818_v24, %v6817_v4  ;;  %v7873_v24 = vld [vmem:[%s9780_s26 + $0x98] sm:$0x1] }
 0x351   : > { %1373 = vadd.xlane.f32.xlu1 %v1372_v48 }
 0x352   : > { %6681 = vmatprep.subr.bf16.mxu0 %v7794_v58 }
 0x354   : > { %v6847_v60 = vpop.eup %6846 }
 0x355   : > { %v1375_v2 = vsel %vm1088_vm5, %v6847_v60, 0.0 }
 0x358   : > { %1376 = vadd.xlane.f32.xlu0 %v1375_v2 }
 0x3ac   : > { %v2612_v62 = vpop.xlane.xlu0 %2611 }
 0x3ad   : > { %v2614_v22 = vsub.f32 %v2606_v14, %v2612_v62  ;;  %v7854_v14 = vld [vmem:[%s9780_s26] sm:$0xff] }
 0x3af   : > { %v2617_v54 = vmul.f32 1.442695, %v2614_v22 }
 0x3b0   : > { %v2609_v32 = vpop.xlane.xlu0 %2608 }
 0x3b1   : > { %6848 = vpow2.f32 %v2617_v54  ;;  %v2613_v47 = vsub.f32 %v2605_v56, %v2609_v32 }
 0x3b3   : > { %v2615_v41 = vmul.f32 1.442695, %v2613_v47  ;;  %v7895_v47 = vld [vmem:[%s9780_s26 + $0xa8] sm:$0x1] }
 0x3b4   : > { %v7798_v17 = vpop.permute.xlu0 %3293 }
 0x3b5   : > { %6850 = vpow2.f32 %v2615_v41  ;;  %6570 = vmatmul.mubr.msk.f32.vlgmr.msra.gmra.mrb[6].mxu1 %vm798_vm2, %v7798_v17 }
 0x3b6   : > { %6711 = vmatpush3.bf16.msk.msra.mxu1 %vm7663_vm1, %v7661_v6 }
 0x3bb   : > { %v7805_v59 = vpop.eup %6848 }
 0x3bc   : > { %v2622_v21 = vsel %vm1088_vm5, %v7805_v59, 0.0 }
 0x3bd   : > { %2623 = vadd.xlane.f32.xlu0 %v2622_v21  ;;  %v7901_v21 = vld [vmem:[%s9780_s26 + $0xa0] sm:$0xff] }
 0x3bf   : > { %v7809_v20 = vpop.eup %6850 }
 0x3c0   : > { %v2619_v26 = vsel %vm1088_vm5, %v7809_v20, 0.0 }
 0x3c1   : > { %2620 = vadd.xlane.f32.xlu1 %v2619_v26 }
 0x3de   : > { %v1374_v49 = vpop.xlane.xlu1 %1373 }
 0x3df   : > { %6852 = vrcp.f32 %v1374_v49 }
 0x3e5   : > { %v1377_v35 = vpop.xlane.xlu0 %1376 }
 0x3e6   : > { %6854 = vrcp.f32 %v1377_v35 }
 0x3e9   : > { %v6853_v19 = vpop.eup %6852 }
 0x3ea   : > { %v7813_v33 = vmul.f32 %v6853_v19, %v6845_v25  ;;  %v7879_v25 = vld [vmem:[%s9780_s26 + $0x90] sm:$0xff]  ;;  %v7914_v19 = vld [vmem:[%s9780_s26 + $0xc8] sm:$0x1] }
 0x3ec   : > { %v1391_v52 = vrot.slane %v7813_v33, %v7816_v27  ;;  %v1384_v22 = vcombine.high %v7813_v33, %v7813_v33 }
 0x3ee   : > { %v1407_v36 = vrot.slane %v1391_v52, %v7816_v27  ;;  %v1399_v46 = vcombine.high %v1391_v52, %v1391_v52  ;;  %v7907_v28 = vrot.slane %v1384_v22, %v7816_v27  ;;  %v7974_v22 = vld [vmem:[%s9780_s26 + $0x40] sm:$0xff] }
 0x3f0   : > { %v6855_v8 = vpop.eup %6854  ;;  %v1485_v44 = vrot.slane %v1407_v36, %v9826_v9  ;;  %v7886_v62 = vrot.slane %v1399_v46, %v7816_v27  ;;  %v1429_v34 = vcombine.high %v1407_v36, %v1407_v36 }
 0x3f1   : > { %v7820_v11 = vmul.f32 %v6855_v8, %v6847_v60  ;;  %v7920_v8 = vld [vmem:[%s9780_s26 + $0xc0] sm:$0xff] }
 0x3f2   : > { %v1563_v10 = vmul.f32 %v7848_v5, %v1485_v44  ;;  %v1562_v53 = vmul.f32 %v7854_v14, %v1485_v44  ;;  %v1489_v49 = vrot.slane %v7886_v62, %v9826_v9 }
 0x3f3   : > { %v1440_v39 = vrot.slane %v7820_v11, %v7816_v27  ;;  %v1433_v1 = vcombine.high %v7820_v11, %v7820_v11 }
 0x3f4   : > { %v1597_v38 = vsel %vm1090_vm4, %v1563_v10, 0.0  ;;  %v1594_v42 = vsel %vm1088_vm5, %v1562_v53, 0.0  ;;  %v7945_v10 = vld [vmem:[%s9780_s26 + $0x28] sm:$0x1] }
 0x3f5   : > { %v1456_v57 = vrot.slane %v1440_v39, %v7816_v27  ;;  %v1448_v0 = vcombine.high %v1440_v39, %v1440_v39  ;;  %v7858_v56 = vrot.slane %v1433_v1, %v7816_v27  ;;  %v1493_v39 = vrot.slane %v1429_v34, %v9826_v9  ;;  %v7933_v1 = vld [vmem:[%s9780_s26 + $0x18] sm:$0x1]  ;;  %v7989_v34 = vld [vmem:[%s9780_s26 + $0xb0] sm:$0xff] }
 0x3f7   : > { %v1517_v15 = vrot.slane %v1456_v57, %v9826_v9  ;;  %v7831_v16 = vrot.slane %v1448_v0, %v7816_v27  ;;  %v1478_v23 = vcombine.high %v1456_v57, %v1456_v57  ;;  %v7867_v43 = vrot.slane %v7858_v56, %v7816_v27 }
 0x3f8   : > { %v7926_v57 = vrot.slane %v7907_v28, %v7816_v27  ;;  %v1567_v53 = vmul.f32 %v7945_v10, %v1493_v39 }
 0x3f9   : > { %v1579_v61 = vmul.f32 %v7836_v51, %v1517_v15  ;;  %v1578_v55 = vmul.f32 %v7842_v50, %v1517_v15  ;;  %v1521_v29 = vrot.slane %v7831_v16, %v9826_v9  ;;  %v1525_v60 = vrot.slane %v1478_v23, %v9826_v9 }
 0x3fa   : > { %v1533_v2 = vrot.slane %v7867_v43, %v9826_v9  ;;  %v1565_v15 = vmul.f32 %v7933_v1, %v1489_v49 }
 0x3fb   : > { %v1645_v7 = vsel %vm1090_vm4, %v1579_v61, 0.0  ;;  %v1642_v37 = vsel %vm1088_vm5, %v1578_v55, 0.0  ;;  %v1581_v4 = vmul.f32 %v7873_v24, %v1521_v29  ;;  %v1580_v48 = vmul.f32 %v7879_v25, %v1521_v29  ;;  %v7939_v61 = vld [vmem:[%s9780_s26 + $0x10] sm:$0xff] }
 0x3fc   : > { %1646 = vadd.xlane.f32.xlu0 %v1645_v7  ;;  %1643 = vadd.xlane.f32.xlu1 %v1642_v37  ;;  %v1583_v41 = vmul.f32 %v7895_v47, %v1525_v60  ;;  %v1582_v26 = vmul.f32 %v7901_v21, %v1525_v60  ;;  %v1587_v52 = vmul.f32 %v7914_v19, %v1533_v2  ;;  %v1603_v29 = vsel %vm1090_vm4, %v1565_v15, 0.0  ;;  %v8004_v15 = vld [vmem:[%s9780_s26 + $0xd8] sm:$0x1] }
 0x3fd   : > { %v1651_v54 = vsel %vm1090_vm4, %v1581_v4, 0.0  ;;  %v1648_v32 = vsel %vm1088_vm5, %v1580_v48, 0.0  ;;  %v1586_v36 = vmul.f32 %v7920_v8, %v1533_v2  ;;  %v1564_v55 = vmul.f32 %v7939_v61, %v1489_v49 }
 0x3fe   : > { %v1657_v35 = vsel %vm1090_vm4, %v1583_v41, 0.0  ;;  %v1654_v31 = vsel %vm1088_vm5, %v1582_v26, 0.0  ;;  %v1669_v0 = vsel %vm1090_vm4, %v1587_v52, 0.0  ;;  %v1501_v7 = vrot.slane %v7926_v57, %v9826_v9  ;;  %v7982_v41 = vld [vmem:[%s9780_s26 + $0xb8] sm:$0x1] }
 0x3ff   : > { %v1666_v44 = vsel %vm1088_vm5, %v1586_v36, 0.0  ;;  %v1480_v37 = vcombine.high %v7831_v16, %v7831_v16  ;;  %v1600_v23 = vsel %vm1088_vm5, %v1564_v55, 0.0  ;;  %v7965_v16 = vld [vmem:[%s9780_s26 + $0x48] sm:$0x1]  ;;  %v1609_v60 = vsel %vm1090_vm4, %v1567_v53, 0.0 }
 0x400   : > { %1598 = vadd.xlane.f32.xlu0 %v1597_v38  ;;  %1595 = vadd.xlane.f32.xlu1 %v1594_v42  ;;  %v7957_v38 = vld [vmem:[%s9780_s26 + $0x20] sm:$0xff]  ;;  %v1449_v42 = vcombine.high %v7858_v56, %v7858_v56  ;;  %v1571_v4 = vmul.f32 %v7965_v16, %v1501_v7  ;;  %v1570_v56 = vmul.f32 %v7974_v22, %v1501_v7 }
 0x401   : > { %v1566_v46 = vmul.f32 %v7957_v38, %v1493_v39  ;;  %v1529_v48 = vrot.slane %v1480_v37, %v9826_v9  ;;  %v1479_v52 = vcombine.high %v7867_v43, %v7867_v43  ;;  %v1431_v39 = vcombine.high %v7886_v62, %v7886_v62  ;;  %v8010_v43 = vld [vmem:[%s9780_s26 + $0xd0] sm:$0xff] }
 0x402   : > { %v1618_v49 = vsel %vm1088_vm5, %v1570_v56, 0.0 }
 0x403   : > { %v1606_v2 = vsel %vm1088_vm5, %v1566_v46, 0.0  ;;  %v1585_v26 = vmul.f32 %v7982_v41, %v1529_v48  ;;  %v1541_v62 = vrot.slane %v1479_v52, %v9826_v9 }
 0x404   : > { %1652 = vadd.xlane.f32.xlu0 %v1651_v54  ;;  %1649 = vadd.xlane.f32.xlu1 %v1648_v32  ;;  %v1477_v54 = vrot.slane %v1449_v42, %v7816_v27  ;;  %v1621_v32 = vsel %vm1090_vm4, %v1571_v4, 0.0  ;;  %v8027_v42 = vld [vmem:[%s9780_s26 + $0xe0] sm:$0xff] }
 0x405   : > { %v1663_v36 = vsel %vm1090_vm4, %v1585_v26, 0.0  ;;  %v1590_v4 = vmul.f32 %v8027_v42, %v1541_v62  ;;  %v8043_v26 = vld [vmem:[%s9780_s26 + $0x30] sm:$0xff] }
 0x408   : > { %1658 = vadd.xlane.f32.xlu0 %v1657_v35  ;;  %1655 = vadd.xlane.f32.xlu1 %v1654_v31  ;;  %v1584_v35 = vmul.f32 %v7989_v34, %v1529_v48  ;;  %v1537_v31 = vrot.slane %v1477_v54, %v9826_v9  ;;  %v8033_v48 = vld [vmem:[%s9780_s26 + $0x38] sm:$0x1] }
 0x40a   : > { %v1589_v55 = vmul.f32 %v8004_v15, %v1537_v31  ;;  %v1588_v53 = vmul.f32 %v8010_v43, %v1537_v31 }
 0x40c   : > { %1670 = vadd.xlane.f32.xlu0 %v1669_v0  ;;  %1667 = vadd.xlane.f32.xlu1 %v1666_v44  ;;  %v1400_v0 = vcombine.high %v7907_v28, %v7907_v28  ;;  %v1660_v44 = vsel %vm1088_vm5, %v1584_v35, 0.0  ;;  %v1497_v28 = vrot.slane %v1431_v39, %v9826_v9  ;;  %v1675_v37 = vsel %vm1090_vm4, %v1589_v55, 0.0 }
 0x40d   : > { %v1481_v55 = vcombine.high %v1477_v54, %v1477_v54 }
 0x40e   : > { %v1428_v7 = vrot.slane %v1400_v0, %v7816_v27  ;;  %v8059_v0 = vld [vmem:[%s9780_s26 + $0x50] sm:$0xff] }
 0x410   : > { %1604 = vadd.xlane.f32.xlu0 %v1603_v29  ;;  %1601 = vadd.xlane.f32.xlu1 %v1600_v23  ;;  %v1672_v29 = vsel %vm1088_vm5, %v1588_v53, 0.0  ;;  %v8021_v23 = vld [vmem:[%s9780_s26 + $0xe8] sm:$0x1]  ;;  %v1505_v35 = vrot.slane %v1428_v7, %v9826_v9 }
 0x411   : > { %v1591_v46 = vmul.f32 %v8021_v23, %v1541_v62  ;;  %v8065_v53 = vld [vmem:[%s9780_s26 + $0x68] sm:$0x1] }
 0x413   : > { %v1681_v56 = vsel %vm1090_vm4, %v1591_v46, 0.0  ;;  %v1545_v46 = vrot.slane %v1481_v55, %v9826_v9 }
 0x414   : > { %1610 = vadd.xlane.f32.xlu0 %v1609_v60  ;;  %1607 = vadd.xlane.f32.xlu1 %v1606_v2  ;;  %v1569_v60 = vmul.f32 %v8033_v48, %v1497_v28  ;;  %v1430_v2 = vcombine.high %v7926_v57, %v7926_v57 }
 0x416   : > { %v1615_v31 = vsel %vm1090_vm4, %v1569_v60, 0.0  ;;  %v1509_v52 = vrot.slane %v1430_v2, %v9826_v9 }
 0x418   : > { %1622 = vadd.xlane.f32.xlu0 %v1621_v32  ;;  %1619 = vadd.xlane.f32.xlu1 %v1618_v49  ;;  %v1678_v32 = vsel %vm1088_vm5, %v1590_v4, 0.0  ;;  %v1568_v49 = vmul.f32 %v8043_v26, %v1497_v28  ;;  %v1575_v62 = vmul.f32 %v8065_v53, %v1509_v52  ;;  %v8071_v28 = vld [vmem:[%s9780_s26 + $0x60] sm:$0xff]  ;;  %v1432_v4 = vcombine.high %v1428_v7, %v1428_v7 }
 0x41a   : > { %v1612_v57 = vsel %vm1088_vm5, %v1568_v49, 0.0  ;;  %v1633_v60 = vsel %vm1090_vm4, %v1575_v62, 0.0  ;;  %v8088_v49 = vld [vmem:[%s9780_s26 + $0xf0] sm:$0xff] }
 0x41b   : > { %v1592_v7 = vmul.f32 %v8088_v49, %v1545_v46 }
 0x41c   : > { %1664 = vadd.xlane.f32.xlu0 %v1663_v36  ;;  %1661 = vadd.xlane.f32.xlu1 %v1660_v44  ;;  %v8053_v36 = vld [vmem:[%s9780_s26 + $0x58] sm:$0x1]  ;;  %v1572_v44 = vmul.f32 %v8059_v0, %v1505_v35 }
 0x41d   : > { %v1573_v39 = vmul.f32 %v8053_v36, %v1505_v35  ;;  %v1513_v35 = vrot.slane %v1432_v4, %v9826_v9 }
 0x41e   : > { %v1624_v54 = vsel %vm1088_vm5, %v1572_v44, 0.0  ;;  %v8103_v44 = vld [vmem:[%s9780_s26 + $0x70] sm:$0xff] }
 0x41f   : > { %v1576_v55 = vmul.f32 %v8103_v44, %v1513_v35 }
 0x420   : > { %1676 = vadd.xlane.f32.xlu0 %v1675_v37  ;;  %1673 = vadd.xlane.f32.xlu1 %v1672_v29  ;;  %v1574_v37 = vmul.f32 %v8071_v28, %v1509_v52  ;;  %v1627_v29 = vsel %vm1090_vm4, %v1573_v39, 0.0  ;;  %v1684_v52 = vsel %vm1088_vm5, %v1592_v7, 0.0 }
 0x422   : > { %v1630_v2 = vsel %vm1088_vm5, %v1574_v37, 0.0  ;;  %v1636_v37 = vsel %vm1088_vm5, %v1576_v55, 0.0 }
 0x424   : > { %1682 = vadd.xlane.f32.xlu0 %v1681_v56  ;;  %1679 = vadd.xlane.f32.xlu1 %v1678_v32  ;;  %v8082_v56 = vld [vmem:[%s9780_s26 + $0xf8] sm:$0x1] }
 0x425   : > { %v1593_v32 = vmul.f32 %v8082_v56, %v1545_v46 }
 0x428   : > { %1616 = vadd.xlane.f32.xlu0 %v1615_v31  ;;  %1613 = vadd.xlane.f32.xlu1 %v1612_v57  ;;  %v1687_v31 = vsel %vm1090_vm4, %v1593_v32, 0.0  ;;  %v8097_v57 = vld [vmem:[%s9780_s26 + $0x78] sm:$0x1] }
 0x429   : > { %v1577_v39 = vmul.f32 %v8097_v57, %v1513_v35 }
 0x42b   : > { %v1639_v62 = vsel %vm1090_vm4, %v1577_v39, 0.0 }
 0x42c   : > { %1628 = vadd.xlane.f32.xlu0 %v1627_v29  ;;  %1625 = vadd.xlane.f32.xlu1 %v1624_v54 }
 0x430   : > { %1634 = vadd.xlane.f32.xlu0 %v1633_v60  ;;  %1631 = vadd.xlane.f32.xlu1 %v1630_v2 }
 0x434   : > { %1688 = vadd.xlane.f32.xlu0 %v1687_v31  ;;  %1685 = vadd.xlane.f32.xlu1 %v1684_v52 }
 0x438   : > { %1640 = vadd.xlane.f32.xlu0 %v1639_v62  ;;  %1637 = vadd.xlane.f32.xlu1 %v1636_v37 }
 0x44a   : > { %v2624_v29 = vpop.xlane.xlu0 %2623 }
 0x44b   : > { %6856 = vrcp.f32 %v2624_v29 }
 0x44e   : > { %v2621_v54 = vpop.xlane.xlu1 %2620 }
 0x44f   : > { %6858 = vrcp.f32 %v2621_v54 }
 0x455   : > { %v6857_v46 = vpop.eup %6856 }
 0x456   : > { %v8109_v4 = vmul.f32 %v6857_v46, %v7805_v59 }
 0x458   : > { %v2687_v60 = vrot.slane %v8109_v4, %v7816_v27  ;;  %v2680_v31 = vcombine.high %v8109_v4, %v8109_v4 }
 0x459   : > { %v6859_v2 = vpop.eup %6858 }
 0x45a   : > { %v8114_v32 = vmul.f32 %v6859_v2, %v7809_v20  ;;  %v2703_v7 = vrot.slane %v2687_v60, %v7816_v27  ;;  %v2695_v35 = vcombine.high %v2687_v60, %v2687_v60  ;;  %v2694_v29 = vrot.slane %v2680_v31, %v7816_v27 }
 0x45c   : > { %v2764_v52 = vrot.slane %v2703_v7, %v9826_v9  ;;  %v2638_v39 = vrot.slane %v8114_v32, %v7816_v27  ;;  %v2717_v59 = vrot.slane %v2695_v35, %v7816_v27  ;;  %v2725_v37 = vcombine.high %v2703_v7, %v2703_v7 }
 0x45d   : > { %v2710_v7 = vrot.slane %v2694_v29, %v7816_v27 }
 0x45e   : > { %v2826_v55 = vmul.f32 %v7836_v51, %v2764_v52  ;;  %v2825_v62 = vmul.f32 %v7842_v50, %v2764_v52  ;;  %v2654_v20 = vrot.slane %v2638_v39, %v7816_v27  ;;  %v2768_v2 = vrot.slane %v2717_v59, %v9826_v9 }
 0x45f   : > { %v2772_v50 = vrot.slane %v2725_v37, %v9826_v9  ;;  %v2646_v52 = vcombine.high %v2638_v39, %v2638_v39 }
 0x460   : > { %v2892_v54 = vsel %vm1090_vm4, %v2826_v55, 0.0  ;;  %v2889_v46 = vsel %vm1088_vm5, %v2825_v62, 0.0  ;;  %v2732_v60 = vrot.slane %v2654_v20, %v9826_v9  ;;  %v2828_v62 = vmul.f32 %v7873_v24, %v2768_v2 }
 0x461   : > { %2893 = vadd.xlane.f32.xlu0 %v2892_v54  ;;  %2890 = vadd.xlane.f32.xlu1 %v2889_v46  ;;  %v2827_v12 = vmul.f32 %v7879_v25, %v2768_v2  ;;  %v2830_v54 = vmul.f32 %v7895_v47, %v2772_v50  ;;  %v2829_v46 = vmul.f32 %v7901_v21, %v2772_v50 }
 0x462   : > { %v2810_v35 = vmul.f32 %v7848_v5, %v2732_v60  ;;  %v2809_v51 = vmul.f32 %v7854_v14, %v2732_v60  ;;  %v2780_v5 = vrot.slane %v2710_v7, %v9826_v9  ;;  %v2631_v14 = vcombine.high %v8114_v32, %v8114_v32 }
 0x463   : > { %v2898_v37 = vsel %vm1090_vm4, %v2828_v62, 0.0  ;;  %v2895_v39 = vsel %vm1088_vm5, %v2827_v12, 0.0  ;;  %v2668_v60 = vrot.slane %v2646_v52, %v7816_v27  ;;  %v2904_v24 = vsel %vm1090_vm4, %v2830_v54, 0.0 }
 0x464   : > { %v2844_v31 = vsel %vm1090_vm4, %v2810_v35, 0.0  ;;  %v2841_v55 = vsel %vm1088_vm5, %v2809_v51, 0.0  ;;  %v2834_v25 = vmul.f32 %v7914_v19, %v2780_v5  ;;  %v2645_v47 = vrot.slane %v2631_v14, %v7816_v27 }
 0x465   : > { %2845 = vadd.xlane.f32.xlu0 %v2844_v31  ;;  %2842 = vadd.xlane.f32.xlu1 %v2841_v55  ;;  %v2901_v2 = vsel %vm1088_vm5, %v2829_v46, 0.0  ;;  %v2833_v35 = vmul.f32 %v7920_v8, %v2780_v5  ;;  %v2736_v51 = vrot.slane %v2668_v60, %v9826_v9  ;;  %v2676_v31 = vcombine.high %v2654_v20, %v2654_v20 }
 0x466   : > { %v2916_v12 = vsel %vm1090_vm4, %v2834_v25, 0.0  ;;  %v2661_v21 = vrot.slane %v2645_v47, %v7816_v27  ;;  %v2727_v62 = vcombine.high %v2717_v59, %v2717_v59  ;;  %v2696_v20 = vcombine.high %v2694_v29, %v2694_v29 }
 0x467   : > { %v2913_v50 = vsel %vm1088_vm5, %v2833_v35, 0.0  ;;  %v2812_v52 = vmul.f32 %v7933_v1, %v2736_v51  ;;  %v2811_v19 = vmul.f32 %v7939_v61, %v2736_v51  ;;  %v2740_v55 = vrot.slane %v2676_v31, %v9826_v9 }
 0x468   : > { %v2748_v8 = vrot.slane %v2661_v21, %v9826_v9  ;;  %v2776_v1 = vrot.slane %v2727_v62, %v9826_v9  ;;  %v2724_v61 = vrot.slane %v2696_v20, %v7816_v27  ;;  %v2647_v31 = vcombine.high %v2645_v47, %v2645_v47 }
 0x469   : > { %2899 = vadd.xlane.f32.xlu0 %v2898_v37  ;;  %2896 = vadd.xlane.f32.xlu1 %v2895_v39  ;;  %v2850_v54 = vsel %vm1090_vm4, %v2812_v52, 0.0  ;;  %v2847_v5 = vsel %vm1088_vm5, %v2811_v19, 0.0  ;;  %v2814_v14 = vmul.f32 %v7945_v10, %v2740_v55  ;;  %v2813_v37 = vmul.f32 %v7957_v38, %v2740_v55 }
 0x46a   : > { %v2818_v59 = vmul.f32 %v7965_v16, %v2748_v8  ;;  %v2817_v29 = vmul.f32 %v7974_v22, %v2748_v8  ;;  %v2784_v10 = vrot.slane %v2724_v61, %v9826_v9  ;;  %v2831_v35 = vmul.f32 %v7989_v34, %v2776_v1 }
 0x46b   : > { %v2856_v39 = vsel %vm1090_vm4, %v2814_v14, 0.0  ;;  %v2853_v46 = vsel %vm1088_vm5, %v2813_v37, 0.0  ;;  %v2678_v16 = vcombine.high %v2668_v60, %v2668_v60  ;;  %v2675_v47 = vrot.slane %v2647_v31, %v7816_v27 }
 0x46c   : > { %v2868_v38 = vsel %vm1090_vm4, %v2818_v59, 0.0  ;;  %v2865_v25 = vsel %vm1088_vm5, %v2817_v29, 0.0  ;;  %v2677_v55 = vcombine.high %v2661_v21, %v2661_v21  ;;  %v2728_v14 = vcombine.high %v2724_v61, %v2724_v61 }
 0x46d   : > { %2905 = vadd.xlane.f32.xlu0 %v2904_v24  ;;  %2902 = vadd.xlane.f32.xlu1 %v2901_v2  ;;  %v2726_v24 = vcombine.high %v2710_v7, %v2710_v7  ;;  %v2832_v2 = vmul.f32 %v7982_v41, %v2776_v1  ;;  %v2836_v7 = vmul.f32 %v8004_v15, %v2784_v10 }
 0x46e   : > { %v2744_v60 = vrot.slane %v2678_v16, %v9826_v9  ;;  %v2752_v62 = vrot.slane %v2675_v47, %v9826_v9  ;;  %v2756_v21 = vrot.slane %v2677_v55, %v9826_v9 }
 0x46f   : > { %v2788_v51 = vrot.slane %v2726_v24, %v9826_v9  ;;  %v2910_v22 = vsel %vm1090_vm4, %v2832_v2, 0.0  ;;  %v2922_v52 = vsel %vm1090_vm4, %v2836_v7, 0.0  ;;  %v2679_v24 = vcombine.high %v2675_v47, %v2675_v47 }
 0x470   : > { %v2792_v2 = vrot.slane %v2728_v14, %v9826_v9 }
 0x471   : > { %2917 = vadd.xlane.f32.xlu0 %v2916_v12  ;;  %2914 = vadd.xlane.f32.xlu1 %v2913_v50  ;;  %v2907_v12 = vsel %vm1088_vm5, %v2831_v35, 0.0  ;;  %v2835_v50 = vmul.f32 %v8010_v43, %v2784_v10  ;;  %v2838_v41 = vmul.f32 %v8021_v23, %v2788_v51  ;;  %v2837_v34 = vmul.f32 %v8027_v42, %v2788_v51 }
 0x472   : > { %v2816_v23 = vmul.f32 %v8033_v48, %v2744_v60  ;;  %v2815_v42 = vmul.f32 %v8043_v26, %v2744_v60  ;;  %v2822_v10 = vmul.f32 %v8065_v53, %v2756_v21  ;;  %v2760_v35 = vrot.slane %v2679_v24, %v9826_v9 }
 0x473   : > { %v2919_v19 = vsel %vm1088_vm5, %v2835_v50, 0.0  ;;  %v2928_v15 = vsel %vm1090_vm4, %v2838_v41, 0.0  ;;  %v2925_v8 = vsel %vm1088_vm5, %v2837_v34, 0.0  ;;  %v2840_v16 = vmul.f32 %v8082_v56, %v2792_v2 }
 0x474   : > { %v2862_v37 = vsel %vm1090_vm4, %v2816_v23, 0.0  ;;  %v2859_v1 = vsel %vm1088_vm5, %v2815_v42, 0.0  ;;  %v2880_v51 = vsel %vm1090_vm4, %v2822_v10, 0.0  ;;  %v2839_v31 = vmul.f32 %v8088_v49, %v2792_v2  ;;  %v9831_v2 = vld [vmem:[#allocation14_spill] sm:$0xff] }
 0x475   : > { %2851 = vadd.xlane.f32.xlu0 %v2850_v54  ;;  %2848 = vadd.xlane.f32.xlu1 %v2847_v5  ;;  %v2824_v50 = vmul.f32 %v8097_v57, %v2760_v35  ;;  %v2823_v41 = vmul.f32 %v8103_v44, %v2760_v35  ;;  %v9827_v42 = vlaneseq }
 0x476   : > { %v2931_v7 = vsel %vm1088_vm5, %v2839_v31, 0.0 }
 0x477   : > { %v2886_v49 = vsel %vm1090_vm4, %v2824_v50, 0.0 }
 0x479   : > { %2857 = vadd.xlane.f32.xlu0 %v2856_v39  ;;  %2854 = vadd.xlane.f32.xlu1 %v2853_v46  ;;  %v2820_v39 = vmul.f32 %v8053_v36, %v2752_v62  ;;  %v2819_v46 = vmul.f32 %v8059_v0, %v2752_v62  ;;  %v1723_v62 = vand.u32 127, %v9827_v42 }
 0x47b   : > { %v2871_v61 = vsel %vm1088_vm5, %v2819_v46, 0.0  ;;  %v9828_v46 = vld [vmem:[#allocation13_spill] sm:$0xff] }
 0x47d   : > { %2869 = vadd.xlane.f32.xlu0 %v2868_v38  ;;  %2866 = vadd.xlane.f32.xlu1 %v2865_v25  ;;  %v2874_v38 = vsel %vm1090_vm4, %v2820_v39, 0.0  ;;  %v2821_v25 = vmul.f32 %v8071_v28, %v2756_v21 }
 0x47f   : > { %v2877_v53 = vsel %vm1088_vm5, %v2821_v25, 0.0 }
 0x481   : > { %2911 = vadd.xlane.f32.xlu0 %v2910_v22  ;;  %2908 = vadd.xlane.f32.xlu1 %v2907_v12  ;;  %v2934_v12 = vsel %vm1090_vm4, %v2840_v16, 0.0 }
 0x485   : > { %2923 = vadd.xlane.f32.xlu0 %v2922_v52  ;;  %2920 = vadd.xlane.f32.xlu1 %v2919_v19  ;;  %v2883_v52 = vsel %vm1088_vm5, %v2823_v41, 0.0 }
 0x488   : > { %v8187_v43 = vpop.f32.mrb[6].mxu1 }
 0x489   : > { %v8193_v20 = vpop.f32.mrb[7].mxu1  ;;  %v8195_v54 = vpop.xlane.xlu1 %1643  ;;  %2929 = vadd.xlane.f32.xlu0 %v2928_v15  ;;  %2926 = vadd.xlane.f32.xlu1 %v2925_v8 }
 0x48a   : > { %v8197_v5 = vpop.xlane.xlu0 %1646  ;;  %v3377_v14 = vrot.slane %v8193_v20, %v9826_v9  ;;  %v3388_v10 = vrot.slane %v8193_v20, %v9828_v46  ;;  %v3399_v35 = vrot.slane %v8193_v20, %v9831_v2 }
 0x48d   : > { %v8204_v59 = vpop.xlane.xlu1 %1595  ;;  %2863 = vadd.xlane.f32.xlu0 %v2862_v37  ;;  %2860 = vadd.xlane.f32.xlu1 %v2859_v1  ;;  %v1728_v1 = vadd.s32 4294967288, %v1723_v62 }
 0x48e   : > { %v8206_v29 = vpop.xlane.xlu0 %1598 }
 0x491   : > { %v8213_v36 = vpop.xlane.xlu1 %1649  ;;  %2875 = vadd.xlane.f32.xlu0 %v2874_v38  ;;  %2872 = vadd.xlane.f32.xlu1 %v2871_v61  ;;  %v8262_v38 = vsub.s32 %v1723_v62, %v9825_v40  ;;  %v8265_v61 = vsub.s32 %v1728_v1, %v9825_v40  ;;  %v9832_v1 = vld [vmem:[#allocation15_spill] sm:$0xff] }
 0x492   : > { %v8215_v0 = vpop.xlane.xlu0 %1652 }
 0x493   : > { %9829 = vst [vmem:[#allocation22_spill] sm:$0xff] %v8262_v38  ;;  %9830 = vst [vmem:[#allocation23_spill] sm:$0xff] %v8265_v61  ;;  %v1801_v40 = vrot.slane %v8195_v54, %v8262_v38  ;;  %v1732_v41 = vrot.slane %v8206_v29, %v8265_v61 }
 0x495   : > { %v8222_v22 = vpop.xlane.xlu1 %1655  ;;  %2881 = vadd.xlane.f32.xlu0 %v2880_v51  ;;  %2878 = vadd.xlane.f32.xlu1 %v2877_v53  ;;  %v1810_v51 = vrot.slane %v8213_v36, %v8262_v38  ;;  %v1814_v53 = vrot.slane %v8215_v0, %v8265_v61  ;;  %v3465_v36 = vrot.slane %v8187_v43, %v9826_v9 }
 0x496   : > { %v8224_v28 = vpop.xlane.xlu0 %1658  ;;  %v1727_v0 = vrot.slane %v8204_v59, %v8262_v38 }
 0x497   : > { %v1823_v54 = vrot.slane %v8224_v28, %v8265_v61 }
 0x499   : > { %v8230_v34 = vpop.xlane.xlu1 %1667  ;;  %2935 = vadd.xlane.f32.xlu0 %v2934_v12  ;;  %2932 = vadd.xlane.f32.xlu1 %v2931_v7  ;;  %v1805_v7 = vrot.slane %v8197_v5, %v8265_v61  ;;  %v1815_v5 = vsel %vm1733_vm15, %v1814_v53, %v1810_v51 }
 0x49a   : > { %v8232_v56 = vpop.xlane.xlu0 %1670 }
 0x49b   : > { %v1806_v62 = vsel %vm1733_vm15, %v1805_v7, %v1801_v40 }
 0x49d   : > { %v1602_v19 = vpop.xlane.xlu1 %1601  ;;  %2887 = vadd.xlane.f32.xlu0 %v2886_v49  ;;  %2884 = vadd.xlane.f32.xlu1 %v2883_v52  ;;  %v1819_v49 = vrot.slane %v8222_v22, %v8262_v38 }
 0x49e   : > { %v1605_v60 = vpop.xlane.xlu0 %1604  ;;  %v1738_v16 = vrot.slane %v1602_v19, %v8262_v38 }
 0x49f   : > { %v1742_v31 = vrot.slane %v1605_v60, %v8265_v61 }
 0x4a1   : > { %v8236_v47 = vpop.xlane.xlu1 %1607  ;;  %v1743_v52 = vsel %vm1733_vm15, %v1742_v31, %v1738_v16 }
 0x4a2   : > { %v8238_v15 = vpop.xlane.xlu0 %1610  ;;  %v1747_v19 = vrot.slane %v8236_v47, %v8262_v38  ;;  %v3476_v47 = vrot.slane %v8187_v43, %v9828_v46 }
 0x4a3   : > { %v1751_v59 = vrot.slane %v8238_v15, %v8265_v61  ;;  %v3410_v15 = vrot.slane %v8193_v20, %v9832_v1 }
 0x4a5   : > { %v8240_v57 = vpop.xlane.xlu1 %1619  ;;  %v1752_v51 = vsel %vm1733_vm15, %v1751_v59, %v1747_v19 }
 0x4a6   : > { %v8242_v44 = vpop.xlane.xlu0 %1622  ;;  %v1765_v53 = vrot.slane %v8240_v57, %v8262_v38 }
 0x4a7   : > { %v1769_v16 = vrot.slane %v8242_v44, %v8265_v61 }
 0x4a9   : > { %v8244_v55 = vpop.xlane.xlu1 %1661 }
 0x4aa   : > { %v1665_v8 = vpop.xlane.xlu0 %1664  ;;  %v1828_v29 = vrot.slane %v8244_v55, %v8262_v38  ;;  %v1877_v55 = vsel %vm1254_vm6, %v1815_v5, %v1806_v62 }
 0x4ab   : > { %v1832_v60 = vrot.slane %v1665_v8, %v8265_v61  ;;  %v1824_v8 = vsel %vm1733_vm15, %v1823_v54, %v1819_v49  ;;  %v1841_v54 = vrot.slane %v8232_v56, %v8265_v61 }
 0x4ad   : > { %v8246_v23 = vpop.xlane.xlu1 %1673  ;;  %v1833_v31 = vsel %vm1733_vm15, %v1832_v60, %v1828_v29 }
 0x4ae   : > { %v8249_v21 = vpop.xlane.xlu0 %1676  ;;  %6825 = vrot.lane.b32.xlu1 %v7208_v13, %s7028_s29 }
 0x4b1   : > { %v8254_v37 = vpop.xlane.xlu1 %1679 }
 0x4b2   : > { %v8256_v39 = vpop.xlane.xlu0 %1682  ;;  %3379 = vbcast.lane.b32.xlu1 %v3377_v14, 256 }
 0x4b3   : > { %6820 = vrot.lane.b32.xlu0 %v7208_v13, %s7029_s18  ;;  %s7031_s18 = smov 72  }
 0x4b5   : > { %v1614_v24 = vpop.xlane.xlu1 %1613 }
 0x4b6   : > { %v1617_v25 = vpop.xlane.xlu0 %1616  ;;  %3390 = vbcast.lane.b32.xlu1 %v3388_v10, 256  ;;  %v1756_v22 = vrot.slane %v1614_v24, %v8262_v38  ;;  %v1837_v24 = vrot.slane %v8230_v34, %v8262_v38 }
 0x4b7   : > { %3383 = vbcast.lane.b32.xlu0 %v3377_v14, 264  ;;  %v1760_v28 = vrot.slane %v1617_v25, %v8265_v61 }
 0x4b9   : > { %v1626_v12 = vpop.xlane.xlu1 %1625  ;;  %v1761_v40 = vsel %vm1733_vm15, %v1760_v28, %v1756_v22  ;;  %v1842_v28 = vsel %vm1733_vm15, %v1841_v54, %v1837_v24 }
 0x4ba   : > { %v1629_v50 = vpop.xlane.xlu0 %1628  ;;  %3401 = vbcast.lane.b32.xlu1 %v3399_v35, 256  ;;  %v1774_v7 = vrot.slane %v1626_v12, %v8262_v38 }
 0x4bb   : > { %3394 = vbcast.lane.b32.xlu0 %v3388_v10, 264  ;;  %v1734_v10 = vsel %vm1733_vm15, %v1732_v41, %v1727_v0  ;;  %v1778_v0 = vrot.slane %v1629_v50, %v8265_v61  ;;  %v1850_v41 = vrot.slane %v8249_v21, %v8265_v61  ;;  %v1855_v50 = vrot.slane %v8254_v37, %v8262_v38 }
 0x4bc   : > { %v1870_v25 = vsel %vm1254_vm6, %v1743_v52, %v1734_v10  ;;  %v1878_v21 = vsel %vm1256_vm7, %v1824_v8, %v1877_v55  ;;  %v1770_v37 = vsel %vm1733_vm15, %v1769_v16, %v1765_v53  ;;  %v3487_v8 = vrot.slane %v8187_v43, %v9831_v2 }
 0x4bd   : > { %v1632_v42 = vpop.xlane.xlu1 %1631  ;;  %v1871_v12 = vsel %vm1256_vm7, %v1752_v51, %v1870_v25  ;;  %v1879_v59 = vsel %vm1258_vm8, %v1833_v31, %v1878_v21  ;;  %v1779_v56 = vsel %vm1733_vm15, %v1778_v0, %v1774_v7  ;;  %v9834_v0 = vld [vmem:[#allocation17_spill] sm:$0xff] }
 0x4be   : > { %v1635_v14 = vpop.xlane.xlu0 %1634  ;;  %3467 = vbcast.lane.b32.xlu1 %v3465_v36, 256  ;;  %v1783_v57 = vrot.slane %v1632_v42, %v8262_v38  ;;  %v1872_v5 = vsel %vm1258_vm8, %v1761_v40, %v1871_v12  ;;  %v1880_v10 = vsel %vm1260_vm9, %v1842_v28, %v1879_v59  ;;  %v9833_v40 = vld [vmem:[#allocation16_spill] sm:$0xff] }
 0x4bf   : > { %3405 = vbcast.lane.b32.xlu0 %v3399_v35, 264  ;;  %v1846_v35 = vrot.slane %v8246_v23, %v8262_v38  ;;  %v1787_v49 = vrot.slane %v1635_v14, %v8265_v61  ;;  %v1859_v23 = vrot.slane %v8256_v39, %v8265_v61  ;;  %v1873_v14 = vsel %vm1260_vm9, %v1770_v37, %v1872_v5 }
 0x4c0   : > { %v1874_v25 = vsel %vm1262_vm10, %v1779_v56, %v1873_v14  ;;  %v3421_v7 = vrot.slane %v8193_v20, %v9833_v40 }
 0x4c1   : > { %v1686_v34 = vpop.xlane.xlu1 %1685  ;;  %v1851_v60 = vsel %vm1733_vm15, %v1850_v41, %v1846_v35  ;;  %v1788_v39 = vsel %vm1733_vm15, %v1787_v49, %v1783_v57  ;;  %v1860_v42 = vsel %vm1733_vm15, %v1859_v23, %v1855_v50  ;;  %v9836_v41 = vld [vmem:[#allocation19_spill] sm:$0xff] }
 0x4c2   : > { %v1689_v44 = vpop.xlane.xlu0 %1688  ;;  %3478 = vbcast.lane.b32.xlu1 %v3476_v47, 256  ;;  %v1864_v52 = vrot.slane %v1686_v34, %v8262_v38  ;;  %v1881_v51 = vsel %vm1262_vm10, %v1851_v60, %v1880_v10  ;;  %v1875_v53 = vsel %vm1264_vm11, %v1788_v39, %v1874_v25  ;;  %v9835_v34 = vld [vmem:[#allocation18_spill] sm:$0xff]  ;;  %v3454_v57 = vrot.slane %v8193_v20, %v9836_v41 }
 0x4c3   : > { %3471 = vbcast.lane.b32.xlu0 %v3465_v36, 264  ;;  %v1868_v19 = vrot.slane %v1689_v44, %v8265_v61  ;;  %v1882_v16 = vsel %vm1264_vm11, %v1860_v42, %v1881_v51  ;;  %v3443_v35 = vrot.slane %v8193_v20, %v9835_v34  ;;  %v3531_v49 = vrot.slane %v8187_v43, %v9835_v34  ;;  %v8580_v34 = vld [vmem:[%s9780_s26 + $0xa8] sm:$0x1] }
 0x4c4   : > { %v3542_v44 = vrot.slane %v8187_v43, %v9836_v41 }
 0x4c5   : > { %v1638_v29 = vpop.xlane.xlu1 %1637  ;;  %v1869_v55 = vsel %vm1733_vm15, %v1868_v19, %v1864_v52 }
 0x4c6   : > { %v1792_v36 = vrot.slane %v1638_v29, %v8262_v38  ;;  %v1641_v22 = vpop.xlane.xlu0 %1640  ;;  %3412 = vbcast.lane.b32.xlu1 %v3410_v15, 256  ;;  %v1883_v31 = vsel %vm1266_vm12, %v1869_v55, %v1882_v16 }
 0x4c7   : > { %v1796_v62 = vrot.slane %v1641_v22, %v8265_v61  ;;  %3482 = vbcast.lane.b32.xlu0 %v3476_v47, 264 }
 0x4c9   : > { %v1797_v24 = vsel %vm1733_vm15, %v1796_v62, %v1792_v36 }
 0x4ca   : > { %3489 = vbcast.lane.b32.xlu1 %v3487_v8, 256  ;;  %v1876_v47 = vsel %vm1266_vm12, %v1797_v24, %v1875_v53 }
 0x4cb   : > { %6531 = vmatprep.mubr.msk.f32.mxu0 %vm1884_vm0, %v1876_v47  ;;  %3416 = vbcast.lane.b32.xlu0 %v3410_v15, 264  ;;  %v3498_v15 = vrot.slane %v8187_v43, %v9832_v1 }
 0x4cc   : > { %6532 = vmatmul.mubr.msk.f32.vlgmr.msra.gmra.mrb[4].mxu0 %vm1884_vm0, %v1883_v31 }
 0x4cd   : > { %6683 = vmatpush3.bf16.msra.mxu0 %v7794_v58  ;;  %6538 = vmatprep.mubr.msk.f32.mxu0 %vm1088_vm5, %v7813_v33  ;;  %v3432_v58 = vrot.slane %v8193_v20, %v9834_v0  ;;  %v3509_v33 = vrot.slane %v8187_v43, %v9833_v40 }
 0x4ce   : > { %3423 = vbcast.lane.b32.xlu1 %v3421_v7, 256  ;;  %6692 = vmatprep.subr.msk.bf16.mxu0 %vm7663_vm1, %v7661_v6 }
 0x4cf   : > { %3493 = vbcast.lane.b32.xlu0 %v3487_v8, 264 }
 0x4d2   : > { %3500 = vbcast.lane.b32.xlu1 %v3498_v15, 256 }
 0x4d3   : > { %3427 = vbcast.lane.b32.xlu0 %v3421_v7, 264 }
 0x4d4   : > { %6539 = vmatmul.mubr.msk.f32.vlgmr.msra.gmra.mrb[4].mxu0 %vm1088_vm5, %v7820_v11  ;;  %v3520_v11 = vrot.slane %v8187_v43, %v9834_v0 }
 0x4d5   : > { %6695 = vmatpush3.bf16.msk.msra.mxu0 %vm7663_vm1, %v7661_v6 }
 0x4d6   : > { %3434 = vbcast.lane.b32.xlu1 %v3432_v58, 256 }
 0x4d7   : > { %3504 = vbcast.lane.b32.xlu0 %v3498_v15, 264 }
 0x4da   : > { %3511 = vbcast.lane.b32.xlu1 %v3509_v33, 256 }
 0x4db   : > { %3438 = vbcast.lane.b32.xlu0 %v3432_v58, 264 }
 0x4de   : > { %3445 = vbcast.lane.b32.xlu1 %v3443_v35, 256 }
 0x4df   : > { %3515 = vbcast.lane.b32.xlu0 %v3509_v33, 264 }
 0x4e2   : > { %3522 = vbcast.lane.b32.xlu1 %v3520_v11, 256 }
 0x4e3   : > { %3449 = vbcast.lane.b32.xlu0 %v3443_v35, 264 }
 0x4e6   : > { %3456 = vbcast.lane.b32.xlu1 %v3454_v57, 256 }
 0x4e7   : > { %3526 = vbcast.lane.b32.xlu0 %v3520_v11, 264 }
 0x4ea   : > { %3533 = vbcast.lane.b32.xlu1 %v3531_v49, 256 }
 0x4eb   : > { %3460 = vbcast.lane.b32.xlu0 %v3454_v57, 264 }
 0x4ee   : > { %v2891_v54 = vpop.xlane.xlu1 %2890  ;;  %3544 = vbcast.lane.b32.xlu1 %v3542_v44, 256  ;;  %v2894_v12 = vpop.xlane.xlu0 %2893 }
 0x4ef   : > { %3537 = vbcast.lane.b32.xlu0 %v3531_v49, 264  ;;  %v3044_v53 = vrot.slane %v2891_v54, %v8262_v38  ;;  %v3048_v47 = vrot.slane %v2894_v12, %v8265_v61 }
 0x4f2   : > { %v2843_v50 = vpop.xlane.xlu1 %2842  ;;  %v2846_v23 = vpop.xlane.xlu0 %2845 }
 0x4f3   : > { %3548 = vbcast.lane.b32.xlu0 %v3542_v44, 264  ;;  %v2972_v7 = vrot.slane %v2843_v50, %v8262_v38  ;;  %v2976_v15 = vrot.slane %v2846_v23, %v8265_v61  ;;  %v3049_v44 = vsel %vm1733_vm15, %v3048_v47, %v3044_v53 }
 0x4f6   : > { %v2897_v21 = vpop.xlane.xlu1 %2896  ;;  %v2900_v5 = vpop.xlane.xlu0 %2899 }
 0x4f7   : > { %v3053_v10 = vrot.slane %v2897_v21, %v8262_v38  ;;  %v3057_v55 = vrot.slane %v2900_v5, %v8265_v61 }
 0x4f9   : > { %v3058_v58 = vsel %vm1733_vm15, %v3057_v55, %v3053_v10 }
 0x4fa   : > { %v2903_v20 = vpop.xlane.xlu1 %2902  ;;  %v2906_v52 = vpop.xlane.xlu0 %2905  ;;  %v3120_v23 = vsel %vm1254_vm6, %v3058_v58, %v3049_v44 }
 0x4fb   : > { %v3062_v51 = vrot.slane %v2903_v20, %v8262_v38  ;;  %v3066_v24 = vrot.slane %v2906_v52, %v8265_v61  ;;  %v2977_v20 = vsel %vm1733_vm15, %v2976_v15, %v2972_v7 }
 0x4fd   : > { %v3067_v11 = vsel %vm1733_vm15, %v3066_v24, %v3062_v51 }
 0x4fe   : > { %v8389_v19 = vpop.xlane.xlu1 %2914  ;;  %v8391_v59 = vpop.xlane.xlu0 %2917  ;;  %v3121_v52 = vsel %vm1256_vm7, %v3067_v11, %v3120_v23 }
 0x502   : > { %v2849_v56 = vpop.xlane.xlu1 %2848  ;;  %v2852_v29 = vpop.xlane.xlu0 %2851 }
 0x503   : > { %v2981_v16 = vrot.slane %v2849_v56, %v8262_v38  ;;  %v2985_v31 = vrot.slane %v2852_v29, %v8265_v61 }
 0x505   : > { %v2986_v54 = vsel %vm1733_vm15, %v2985_v31, %v2981_v16 }
 0x506   : > { %v2855_v37 = vpop.xlane.xlu1 %2854  ;;  %v2858_v60 = vpop.xlane.xlu0 %2857 }
 0x507   : > { %v2990_v57 = vrot.slane %v2855_v37, %v8262_v38  ;;  %v2994_v49 = vrot.slane %v2858_v60, %v8265_v61  ;;  %v3080_v37 = vrot.slane %v8389_v19, %v8262_v38  ;;  %v3084_v60 = vrot.slane %v8391_v59, %v8265_v61 }
 0x50a   : > { %v8393_v43 = vpop.xlane.xlu1 %2866  ;;  %v8395_v39 = vpop.xlane.xlu0 %2869 }
 0x50b   : > { %v3008_v10 = vrot.slane %v8393_v43, %v8262_v38  ;;  %v3012_v55 = vrot.slane %v8395_v39, %v8265_v61 }
 0x50e   : > { %v2909_v36 = vpop.xlane.xlu1 %2908  ;;  %v2912_v22 = vpop.xlane.xlu0 %2911 }
 0x50f   : > { %v3071_v12 = vrot.slane %v2909_v36, %v8262_v38  ;;  %v3075_v50 = vrot.slane %v2912_v22, %v8265_v61  ;;  %v3113_v36 = vsel %vm1254_vm6, %v2986_v54, %v2977_v20  ;;  %v2995_v22 = vsel %vm1733_vm15, %v2994_v49, %v2990_v57 }
 0x512   : > { %v2921_v28 = vpop.xlane.xlu1 %2920  ;;  %v2924_v42 = vpop.xlane.xlu0 %2923 }
 0x513   : > { %v3093_v51 = vrot.slane %v2924_v42, %v8265_v61 }
 0x516   : > { %v2927_v62 = vpop.xlane.xlu1 %2926  ;;  %v2930_v14 = vpop.xlane.xlu0 %2929 }
 0x517   : > { %v3098_v53 = vrot.slane %v2927_v62, %v8262_v38  ;;  %v3102_v47 = vrot.slane %v2930_v14, %v8265_v61  ;;  %v3085_v62 = vsel %vm1733_vm15, %v3084_v60, %v3080_v37 }
 0x519   : > { %v3103_v57 = vsel %vm1733_vm15, %v3102_v47, %v3098_v53 }
 0x51a   : > { %v2861_v8 = vpop.xlane.xlu1 %2860  ;;  %v2864_v25 = vpop.xlane.xlu0 %2863 }
 0x51b   : > { %v2999_v21 = vrot.slane %v2861_v8, %v8262_v38  ;;  %v3003_v5 = vrot.slane %v2864_v25, %v8265_v61  ;;  %v3076_v8 = vsel %vm1733_vm15, %v3075_v50, %v3071_v12  ;;  %v3089_v25 = vrot.slane %v2921_v28, %v8262_v38 }
 0x51c   : > { %v3114_v28 = vsel %vm1256_vm7, %v2995_v22, %v3113_v36  ;;  %v3122_v42 = vsel %vm1258_vm8, %v3076_v8, %v3121_v52 }
 0x51d   : > { %v3004_v19 = vsel %vm1733_vm15, %v3003_v5, %v2999_v21  ;;  %v3094_v14 = vsel %vm1733_vm15, %v3093_v51, %v3089_v25  ;;  %v3123_v11 = vsel %vm1260_vm9, %v3085_v62, %v3122_v42 }
 0x51e   : > { %v2873_v33 = vpop.xlane.xlu1 %2872  ;;  %v2876_v35 = vpop.xlane.xlu0 %2875  ;;  %v3115_v58 = vsel %vm1258_vm8, %v3004_v19, %v3114_v28  ;;  %v3124_v5 = vsel %vm1262_vm10, %v3094_v14, %v3123_v11 }
 0x51f   : > { %v3017_v59 = vrot.slane %v2873_v33, %v8262_v38  ;;  %v3021_v24 = vrot.slane %v2876_v35, %v8265_v61  ;;  %v3013_v35 = vsel %vm1733_vm15, %v3012_v55, %v3008_v10 }
 0x520   : > { %v3116_v21 = vsel %vm1260_vm9, %v3013_v35, %v3115_v58 }
 0x521   : > { %v3022_v33 = vsel %vm1733_vm15, %v3021_v24, %v3017_v59  ;;  %v6916_v24 = vld [vmem:[%s7146_s16] sm:$0xff]  ;;  %s7032_s16 = smov 48  }
 0x522   : > { %v2879_v56 = vpop.xlane.xlu1 %2878  ;;  %v2882_v29 = vpop.xlane.xlu0 %2881  ;;  %v3117_v20 = vsel %vm1262_vm10, %v3022_v33, %v3116_v21  ;;  %v8682_v59 = vld [vmem:[%s9780_s26 + $0xe0] sm:$0xff] }
 0x523   : > { %v3026_v43 = vrot.slane %v2879_v56, %v8262_v38  ;;  %v3030_v39 = vrot.slane %v2882_v29, %v8265_v61  ;;  %v3125_v29 = vsel %vm1264_vm11, %v3103_v57, %v3124_v5  ;;  %v8504_v5 = vld [vmem:[%s9780_s26 + $0x10] sm:$0xff]  ;;  %9851 = vst [vmem:[#allocation29_spill] sm:$0xff] %v8682_v59 }
 0x524   : > { %9840 = vst [vmem:[#allocation28_spill] sm:$0xff] %v8504_v5 }
 0x525   : > { %v3031_v49 = vsel %vm1733_vm15, %v3030_v39, %v3026_v43 }
 0x526   : > { %v2933_v16 = vpop.xlane.xlu1 %2932  ;;  %v2936_v31 = vpop.xlane.xlu0 %2935  ;;  %v3118_v56 = vsel %vm1264_vm11, %v3031_v49, %v3117_v20 }
 0x527   : > { %v3107_v7 = vrot.slane %v2933_v16, %v8262_v38  ;;  %v3111_v15 = vrot.slane %v2936_v31, %v8265_v61 }
 0x529   : > { %v3112_v12 = vsel %vm1733_vm15, %v3111_v15, %v3107_v7 }
 0x52a   : > { %v2885_v44 = vpop.xlane.xlu1 %2884  ;;  %v2888_v54 = vpop.xlane.xlu0 %2887  ;;  %v3126_v22 = vsel %vm1266_vm12, %v3112_v12, %v3125_v29  ;;  %v8516_v29 = vld [vmem:[%s9780_s26 + $0x90] sm:$0xff] }
 0x52b   : > { %v3035_v50 = vrot.slane %v2885_v44, %v8262_v38  ;;  %v3039_v23 = vrot.slane %v2888_v54, %v8265_v61  ;;  %v8714_v38 = vld [vmem:[%s9780_s26 + $0xf8] sm:$0x1] }
 0x52c   : > { %9856 = vst [vmem:[#allocation11_spill] sm:$0xff] %v8714_v38 }
 0x52d   : > { %v3040_v52 = vsel %vm1733_vm15, %v3039_v23, %v3035_v50 }
 0x52e   : > { %v6826_v37 = vpop.permute.xlu1 %6825  ;;  %v6821_v60 = vpop.permute.xlu0 %6820  ;;  %v3119_v36 = vsel %vm1266_vm12, %v3040_v52, %v3118_v56  ;;  %v8510_v52 = vld [vmem:[%s9780_s26 + $0x18] sm:$0x1] }
 0x52f   : > { %v6828_v10 = vunpack.i.h.bf16 %v6826_v37  ;;  %v6827_v55 = vunpack.i.l.bf16 %v6826_v37  ;;  %v6823_v8 = vunpack.i.h.bf16 %v6821_v60  ;;  %v6822_v25 = vunpack.i.l.bf16 %v6821_v60  ;;  %6557 = vmatprep.mubr.msk.f32.mxu0 %vm1884_vm0, %v3119_v36  ;;  %v8522_v60 = vld [vmem:[%s9780_s26 + $0x98] sm:$0x1] }
 0x530   : > { %6558 = vmatmul.mubr.msk.f32.vlgmr.msra.gmra.mrb[6].mxu0 %vm1884_vm0, %v3126_v22 }
 0x531   : > { %6564 = vmatprep.mubr.msk.f32.mxu0 %vm1088_vm5, %v8114_v32  ;;  %v6696_v51 = vpack.c.bf16 %v6823_v8, %v6822_v25  ;;  %v6700_v19 = vpack.c.bf16 %v6828_v10, %v6827_v55  ;;  %v8532_v55 = vld [vmem:[%s9780_s26] sm:$0xff]  ;;  %v8538_v25 = vld [vmem:[%s9780_s26 + $0x8] sm:$0x1] }
 0x532   : > { %v3380_v32 = vpop.permute.xlu1 %3379  ;;  %v3384_v53 = vpop.permute.xlu0 %3383 }
 0x533   : > { %6697 = vmatprep.subr.bf16.mxu0 %v6696_v51  ;;  %v3550_v8 = vmul.f32 %v8532_v55, %v3380_v32  ;;  %v8551_v32 = vld [vmem:[%s9780_s26 + $0x28] sm:$0x1] }
 0x534   : > { %6699 = vmatpush3.bf16.msra.mxu0 %v6696_v51  ;;  %v3551_v51 = vmul.f32 %v8538_v25, %v3384_v53  ;;  %9842 = vst [vmem:[#allocation27_spill] sm:$0xff] %v8551_v32  ;;  %v8557_v53 = vld [vmem:[%s9780_s26 + $0x80] sm:$0xff] }
 0x535   : > { %6702 = vmatprep.subr.msk.bf16.mxu0 %vm7220_vm3, %v6700_v19 }
 0x536   : > { %v3391_v47 = vpop.permute.xlu1 %3390 }
 0x537   : > { %v3552_v20 = vmul.f32 %v8504_v5, %v3391_v47 }
 0x538   : > { %6565 = vmatmul.mubr.msk.f32.vlgmr.msra.gmra.mrb[6].mxu0 %vm1088_vm5, %v8109_v4  ;;  %v3395_v4 = vpop.permute.xlu0 %3394 }
 0x539   : > { %6576 = vmatprep.mubr.msk.f32.mxu0 %vm798_vm2, %v7789_v63  ;;  %v3553_v56 = vmul.f32 %v8510_v52, %v3395_v4 }
 0x53a   : > { %v3402_v43 = vpop.permute.xlu1 %3401 }
 0x53c   : > { %v3406_v39 = vpop.permute.xlu0 %3405 }
 0x53d   : > { %6705 = vmatpush3.bf16.xpose.msk.msra.mxu0 %vm7220_vm3, %v6700_v19  ;;  %v3591_v19 = vsel %vm1088_vm5, %v3552_v20, 0.0  ;;  %v3555_v4 = vmul.f32 %v8551_v32, %v3406_v39 }
 0x53e   : > { %6593 = vmatprep.subr.mxu0 %v6916_v24  ;;  %v3468_v31 = vpop.permute.xlu1 %3467 }
 0x540   : > { %v3472_v28 = vpop.permute.xlu0 %3471 }
 0x542   : > { %v3479_v42 = vpop.permute.xlu1 %3478 }
 0x543   : > { %v3568_v37 = vmul.f32 %v8516_v29, %v3479_v42  ;;  %v3566_v42 = vmul.f32 %v8557_v53, %v3468_v31  ;;  %v8574_v31 = vld [vmem:[%s9780_s26 + $0xa0] sm:$0xff] }
 0x544   : > { %6577 = vmatmul.mubr.msk.f32.vlgmr.msra.gmra.mrb[8].mxu0 %vm798_vm2, %v7798_v17  ;;  %v3483_v7 = vpop.permute.xlu0 %3482 }
 0x545   : > { %6594 = vmatpush3.msra.mxu0 %v6916_v24  ;;  %v3569_v36 = vmul.f32 %v8522_v60, %v3483_v7  ;;  %v8545_v24 = vld [vmem:[%s9780_s26 + $0x20] sm:$0xff]  ;;  %v3592_v7 = vsel %vm1090_vm4, %v3553_v56, 0.0 }
 0x546   : > { %6724 = vmatprep.subr.msk.bf16.mxu0 %vm7663_vm1, %v7661_v6  ;;  %v3413_v17 = vpop.permute.xlu1 %3412  ;;  %9841 = vst [vmem:[#allocation25_spill] sm:$0xff] %v8545_v24  ;;  %v3554_v47 = vmul.f32 %v8545_v24, %v3402_v43  ;;  %v8564_v43 = vld [vmem:[%s9780_s26 + $0x88] sm:$0x1] }
 0x547   : > { %v3567_v20 = vmul.f32 %v8564_v43, %v3472_v28  ;;  %v3664_v41 = vsel %vm1090_vm4, %v3569_v36, 0.0  ;;  %v3583_v28 = vsel %vm1090_vm4, %v3551_v51, 0.0  ;;  %v3654_v36 = vsel %vm1088_vm5, %v3566_v42, 0.0 }
 0x548   : > { %v3417_v15 = vpop.permute.xlu0 %3416 }
 0x549   : > { %v3557_v39 = vmul.f32 %v8033_v48, %v3417_v15  ;;  %v3582_v48 = vsel %vm1088_vm5, %v3550_v8, 0.0  ;;  %v3600_v15 = vsel %vm1088_vm5, %v3554_v47, 0.0  ;;  %v3655_v40 = vsel %vm1090_vm4, %v3567_v20, 0.0  ;;  %v8600_v47 = vld [vmem:[%s9780_s26 + $0xb0] sm:$0xff]  ;;  %v8617_v20 = vld [vmem:[%s9780_s26 + $0xc0] sm:$0xff] }
 0x54a   : > { %v3490_v58 = vpop.permute.xlu1 %3489  ;;  %9843 = vst [vmem:[#allocation31_spill] sm:$0xff] %v8600_v47 }
 0x54b   : > { %v3570_v56 = vmul.f32 %v8574_v31, %v3490_v58  ;;  %v3610_v8 = vsel %vm1090_vm4, %v3557_v39, 0.0  ;;  %v8623_v39 = vld [vmem:[%s9780_s26 + $0xc8] sm:$0x1] }
 0x54c   : > { %v3494_v62 = vpop.permute.xlu0 %3493 }
 0x54d   : > { %v3672_v51 = vsel %vm1088_vm5, %v3570_v56, 0.0  ;;  %v8626_v56 = vadd.f32 %v3655_v40, %v3654_v36 }
 0x54e   : > { %v8485_v14 = vpop.permute.xlu1 %3423 }
 0x550   : > { %v8487_v33 = vpop.permute.xlu0 %3427 }
 0x552   : > { %v3501_v35 = vpop.permute.xlu1 %3500 }
 0x554   : > { %v3505_v11 = vpop.permute.xlu0 %3504 }
 0x556   : > { %v8489_v57 = vpop.permute.xlu1 %3434 }
 0x558   : > { %v8491_v49 = vpop.permute.xlu0 %3438 }
 0x55a   : > { %v3512_v44 = vpop.permute.xlu1 %3511 }
 0x55c   : > { %v3516_v54 = vpop.permute.xlu0 %3515 }
 0x55e   : > { %v8493_v12 = vpop.permute.xlu1 %3445 }
 0x560   : > { %v8495_v50 = vpop.permute.xlu0 %3449 }
 0x562   : > { %v8497_v23 = vpop.permute.xlu1 %3522 }
 0x564   : > { %v8499_v21 = vpop.permute.xlu0 %3526 }
 0x566   : > { %v8525_v22 = vpop.permute.xlu1 %3456 }
 0x568   : > { %v8527_v10 = vpop.permute.xlu0 %3460 }
 0x56a   : > { %v3534_v58 = vpop.permute.xlu1 %3533 }
 0x56b   : > { %v3578_v2 = vmul.f32 %v8682_v59, %v3534_v58 }
 0x56c   : > { %v3538_v0 = vpop.permute.xlu0 %3537 }
 0x5a7   : > { %v8481_v63 = vpop.f32.mrb[4].mxu0 }
 0x5a8   : > { %9838 = vst [vmem:[#allocation24_spill] sm:$0xff] %v8481_v63  ;;  %v8483_v16 = vpop.f32.mrb[5].mxu0  ;;  %v3556_v63 = vmul.f32 %v8043_v26, %v3413_v17  ;;  %v3571_v26 = vmul.f32 %v8580_v34, %v3494_v62  ;;  %v8585_v17 = vadd.f32 %v3592_v7, %v3591_v19 }
 0x5a9   : > { %9839 = vst [vmem:[#allocation26_spill] sm:$0xff] %v8483_v16  ;;  %v3663_v16 = vsel %vm1088_vm5, %v3568_v37, 0.0  ;;  %v3601_v37 = vsel %vm1090_vm4, %v3555_v4, 0.0  ;;  %v3572_v4 = vmul.f32 %v8600_v47, %v3501_v35  ;;  %v3574_v35 = vmul.f32 %v8617_v20, %v3512_v44 }
 0x5aa   : > { %v8591_v1 = vadd.f32 %v3664_v41, %v3663_v16  ;;  %v3609_v62 = vsel %vm1088_vm5, %v3556_v63, 0.0  ;;  %v3673_v19 = vsel %vm1090_vm4, %v3571_v26, 0.0  ;;  %v8606_v41 = vld [vmem:[%s9780_s26 + $0xb8] sm:$0x1]  ;;  %v8609_v16 = vadd.f32 %v3583_v28, %v3582_v48 }
 0x5ab   : > { %9844 = vst [vmem:[#allocation32_spill] sm:$0xff] %v8606_v41  ;;  %v3573_v63 = vmul.f32 %v8606_v41, %v3505_v11  ;;  %v8612_v7 = vadd.f32 %v3601_v37, %v3600_v15  ;;  %v3575_v11 = vmul.f32 %v8623_v39, %v3516_v54  ;;  %v8629_v48 = vadd.f32 %v3610_v8, %v3609_v62  ;;  %v8636_v15 = vld [vmem:[%s9780_s26 + $0x40] sm:$0xff]  ;;  %v8643_v54 = vld [vmem:[%s9780_s26 + $0x48] sm:$0x1]  ;;  %v3545_v62 = vpop.permute.xlu1 %3544  ;;  %v3549_v8 = vpop.permute.xlu0 %3548 }
 0x5ac   : > { %v8631_v28 = vadd.f32 %v3673_v19, %v3672_v51  ;;  %9845 = vst [vmem:[#allocation33_spill] sm:$0xff] %v8636_v15  ;;  %v3558_v44 = vmul.f32 %v8636_v15, %v8485_v14  ;;  %9846 = vst [vmem:[#allocation34_spill] sm:$0xff] %v8643_v54  ;;  %v3559_v40 = vmul.f32 %v8643_v54, %v8487_v33  ;;  %v3681_v37 = vsel %vm1088_vm5, %v3572_v4, 0.0  ;;  %v8652_v51 = vld [vmem:[%s9780_s26 + $0x50] sm:$0xff]  ;;  %v8659_v19 = vld [vmem:[%s9780_s26 + $0x58] sm:$0x1] }
 0x5ad   : > { %v3682_v36 = vsel %vm1090_vm4, %v3573_v63, 0.0  ;;  %9847 = vst [vmem:[#allocation35_spill] sm:$0xff] %v8652_v51  ;;  %v3560_v14 = vmul.f32 %v8652_v51, %v8489_v57  ;;  %9848 = vst [vmem:[#allocation36_spill] sm:$0xff] %v8659_v19  ;;  %v3561_v33 = vmul.f32 %v8659_v19, %v8491_v49  ;;  %v8666_v4 = vld [vmem:[%s9780_s26 + $0xd0] sm:$0xff]  ;;  %v8673_v57 = vld [vmem:[%s9780_s26 + $0xd8] sm:$0x1] }
 0x5ae   : > { %9849 = vst [vmem:[#allocation37_spill] sm:$0xff] %v8666_v4  ;;  %v3576_v63 = vmul.f32 %v8666_v4, %v8497_v23  ;;  %9850 = vst [vmem:[#allocation38_spill] sm:$0xff] %v8673_v57  ;;  %v3577_v26 = vmul.f32 %v8673_v57, %v8499_v21  ;;  %v3690_v42 = vsel %vm1088_vm5, %v3574_v35, 0.0  ;;  %v3691_v49 = vsel %vm1090_vm4, %v3575_v11, 0.0  ;;  %v8688_v23 = vld [vmem:[%s9780_s26 + $0xe8] sm:$0x1] }
 0x5af   : > { %9852 = vst [vmem:[#allocation30_spill] sm:$0xff] %v8688_v23  ;;  %v3579_v46 = vmul.f32 %v8688_v23, %v3538_v0  ;;  %v8694_v21 = vld [vmem:[%s9780_s26 + $0x60] sm:$0xff]  ;;  %v8701_v11 = vld [vmem:[%s9780_s26 + $0x68] sm:$0x1]  ;;  %v8708_v0 = vld [vmem:[%s9780_s26 + $0xf0] sm:$0xff]  ;;  %v3618_v13 = vsel %vm1088_vm5, %v3558_v44, 0.0  ;;  %v3692_v19 = vadd.f32 %v3691_v49, %v3690_v42 }
 0x5b0   : > { %9853 = vst [vmem:[#allocation21_spill] sm:$0xff] %v8694_v21  ;;  %v3562_v35 = vmul.f32 %v8694_v21, %v8493_v12  ;;  %9854 = vst [vmem:[#allocation20_spill] sm:$0xff] %v8701_v11  ;;  %v3563_v58 = vmul.f32 %v8701_v11, %v8495_v50  ;;  %v3580_v61 = vmul.f32 %v8708_v0, %v3545_v62  ;;  %v3619_v21 = vsel %vm1090_vm4, %v3559_v40, 0.0  ;;  %v8722_v50 = vld [vmem:[%s9780_s26 + $0x70] sm:$0xff]  ;;  %v8729_v62 = vld [vmem:[%s9780_s26 + $0x78] sm:$0x1] }
 0x5b1   : > { %9855 = vst [vmem:[#allocation7_spill] sm:$0xff] %v8708_v0  ;;  %v3581_v12 = vmul.f32 %v8714_v38, %v3549_v8  ;;  %9857 = vst [vmem:[#allocation12_spill] sm:$0xff] %v8722_v50  ;;  %v3564_v11 = vmul.f32 %v8722_v50, %v8525_v22  ;;  %v3565_v8 = vmul.f32 %v8729_v62, %v8527_v10  ;;  %v3627_v44 = vsel %vm1088_vm5, %v3560_v14, 0.0 }
 0x5b2   : > { %9858 = vst [vmem:[#allocation39_spill] sm:$0xff] %v8729_v62  ;;  %v3683_v0 = vadd.f32 %v3682_v36, %v3681_v37  ;;  %v3699_v40 = vsel %vm1088_vm5, %v3576_v63, 0.0  ;;  %v3700_v38 = vsel %vm1090_vm4, %v3577_v26, 0.0  ;;  %v3628_v51 = vsel %vm1090_vm4, %v3561_v33, 0.0 }
 0x5b3   : > { %v3708_v22 = vsel %vm1088_vm5, %v3578_v2, 0.0  ;;  %v3709_v50 = vsel %vm1090_vm4, %v3579_v46, 0.0  ;;  %v3636_v59 = vsel %vm1088_vm5, %v3562_v35, 0.0  ;;  %v3637_v23 = vsel %vm1090_vm4, %v3563_v58, 0.0 }
 0x5b4   : > { %v3717_v10 = vsel %vm1088_vm5, %v3580_v61, 0.0  ;;  %v3718_v37 = vsel %vm1090_vm4, %v3581_v12, 0.0  ;;  %v3620_v36 = vadd.f32 %v3619_v21, %v3618_v13  ;;  %v3701_v14 = vadd.f32 %v3700_v38, %v3699_v40 }
 0x5b5   : > { %v3645_v63 = vsel %vm1088_vm5, %v3564_v11, 0.0  ;;  %v3646_v26 = vsel %vm1090_vm4, %v3565_v8, 0.0  ;;  %v3603_v42 = vrot.slane %v8612_v7, 4  ;;  %v3675_v2 = vrot.slane %v8631_v28, 4 }
 0x5b6   : > { %v3629_v33 = vadd.f32 %v3628_v51, %v3627_v44  ;;  %v3710_v46 = vadd.f32 %v3709_v50, %v3708_v22  ;;  %v3657_v49 = vrot.slane %v8626_v56, 4  ;;  %v3684_v35 = vrot.slane %v3683_v0, 4 }
 0x5b7   : > { %v3638_v58 = vadd.f32 %v3637_v23, %v3636_v59  ;;  %v3719_v62 = vadd.f32 %v3718_v37, %v3717_v10  ;;  %v3585_v61 = vrot.slane %v8609_v16, 4  ;;  %v3612_v13 = vrot.slane %v8629_v48, 4 }
 0x5b8   : > { %v3693_v38 = vrot.slane %v3692_v19, 4  ;;  %v3647_v21 = vadd.f32 %v3646_v26, %v3645_v63  ;;  %v9859_v11 = vrot.slane %v8585_v17, 4  ;;  %v9860_v8 = vrot.slane %v8591_v1, 4 }
 0x5b9   : > { %v3621_v50 = vrot.slane %v3620_v36, 4  ;;  %v3702_v44 = vrot.slane %v3701_v14, 4  ;;  %v3604_v40 = vadd.f32 %v3603_v42, %v8612_v7  ;;  %v3676_v59 = vadd.f32 %v3675_v2, %v8631_v28 }
 0x5ba   : > { %v3595_v12 = vadd.f32 %v9859_v11, %v8585_v17  ;;  %v3667_v51 = vadd.f32 %v9860_v8, %v8591_v1  ;;  %v3630_v23 = vrot.slane %v3629_v33, 4  ;;  %v3711_v22 = vrot.slane %v3710_v46, 4 }
 0x5bb   : > { %v3658_v10 = vadd.f32 %v3657_v49, %v8626_v56  ;;  %v3685_v37 = vadd.f32 %v3684_v35, %v3683_v0  ;;  %v3639_v63 = vrot.slane %v3638_v58, 4  ;;  %v3720_v26 = vrot.slane %v3719_v62, 4 }
 0x5bc   : > { %v3586_v4 = vadd.f32 %v3585_v61, %v8609_v16  ;;  %v3613_v17 = vadd.f32 %v3612_v13, %v8629_v48  ;;  %v3694_v11 = vadd.f32 %v3693_v38, %v3692_v19  ;;  %v3648_v57 = vrot.slane %v3647_v21, 4 }
 0x5bd   : > { %v3596_v1 = vrot.slane %v3595_v12, 2  ;;  %v3668_v8 = vrot.slane %v3667_v51, 2  ;;  %v3622_v47 = vadd.f32 %v3621_v50, %v3620_v36  ;;  %v3703_v41 = vadd.f32 %v3702_v44, %v3701_v14 }
 0x5be   : > { %v3605_v7 = vrot.slane %v3604_v40, 2  ;;  %v3677_v42 = vrot.slane %v3676_v59, 2  ;;  %v3631_v28 = vadd.f32 %v3630_v23, %v3629_v33  ;;  %v3712_v2 = vadd.f32 %v3711_v22, %v3710_v46 }
 0x5bf   : > { %v3659_v15 = vrot.slane %v3658_v10, 2  ;;  %v3686_v54 = vrot.slane %v3685_v37, 2  ;;  %v3640_v56 = vadd.f32 %v3639_v63, %v3638_v58  ;;  %v3721_v0 = vadd.f32 %v3720_v26, %v3719_v62 }
 0x5c0   : > { %v3587_v49 = vrot.slane %v3586_v4, 2  ;;  %v3614_v35 = vrot.slane %v3613_v17, 2  ;;  %v3695_v24 = vrot.slane %v3694_v11, 2  ;;  %v3649_v16 = vadd.f32 %v3648_v57, %v3647_v21 }
 0x5c1   : > { %v3597_v61 = vadd.f32 %v3596_v1, %v3595_v12  ;;  %v3669_v48 = vadd.f32 %v3668_v8, %v3667_v51  ;;  %v3623_v19 = vrot.slane %v3622_v47, 2  ;;  %v3704_v13 = vrot.slane %v3703_v41, 2 }
 0x5c2   : > { %v3606_v38 = vadd.f32 %v3605_v7, %v3604_v40  ;;  %v3678_v32 = vadd.f32 %v3677_v42, %v3676_v59  ;;  %v3632_v36 = vrot.slane %v3631_v28, 2  ;;  %v3713_v14 = vrot.slane %v3712_v2, 2 }
 0x5c3   : > { %v3660_v50 = vadd.f32 %v3659_v15, %v3658_v10  ;;  %v3687_v44 = vadd.f32 %v3686_v54, %v3685_v37  ;;  %v3641_v33 = vrot.slane %v3640_v56, 2  ;;  %v3722_v46 = vrot.slane %v3721_v0, 2 }
 0x5c4   : > { %v3588_v23 = vadd.f32 %v3587_v49, %v3586_v4  ;;  %v3615_v22 = vadd.f32 %v3614_v35, %v3613_v17  ;;  %v3696_v58 = vadd.f32 %v3695_v24, %v3694_v11  ;;  %v3650_v62 = vrot.slane %v3649_v16, 2 }
 0x5c5   : > { %v3598_v63 = vrot.slane %v3597_v61, 1  ;;  %v3670_v26 = vrot.slane %v3669_v48, 1  ;;  %v3624_v5 = vadd.f32 %v3623_v19, %v3622_v47  ;;  %v3705_v57 = vadd.f32 %v3704_v13, %v3703_v41 }
 0x5c6   : > { %v3607_v21 = vrot.slane %v3606_v38, 1  ;;  %v3679_v12 = vrot.slane %v3678_v32, 1  ;;  %v3633_v51 = vadd.f32 %v3632_v36, %v3631_v28  ;;  %v3714_v1 = vadd.f32 %v3713_v14, %v3712_v2 }
 0x5c7   : > { %v3661_v40 = vrot.slane %v3660_v50, 1  ;;  %v3688_v59 = vrot.slane %v3687_v44, 1  ;;  %v3642_v8 = vadd.f32 %v3641_v33, %v3640_v56  ;;  %v3723_v15 = vadd.f32 %v3722_v46, %v3721_v0 }
 0x5c8   : > { %v3589_v54 = vrot.slane %v3588_v23, 1  ;;  %v3616_v10 = vrot.slane %v3615_v22, 1  ;;  %v3697_v4 = vrot.slane %v3696_v58, 1  ;;  %v3651_v24 = vadd.f32 %v3650_v62, %v3649_v16 }
 0x5c9   : > { %v3599_v17 = vadd.f32 %v3598_v63, %v3597_v61  ;;  %v3671_v11 = vadd.f32 %v3670_v26, %v3669_v48  ;;  %v3625_v47 = vrot.slane %v3624_v5, 1  ;;  %v3706_v41 = vrot.slane %v3705_v57, 1 }
 0x5ca   : > { %v3608_v42 = vadd.f32 %v3607_v21, %v3606_v38  ;;  %v3680_v49 = vadd.f32 %v3679_v12, %v3678_v32  ;;  %v3634_v28 = vrot.slane %v3633_v51, 1  ;;  %v3715_v2 = vrot.slane %v3714_v1, 1 }
 0x5cb   : > { %v3662_v35 = vadd.f32 %v3661_v40, %v3660_v50  ;;  %v3689_v19 = vadd.f32 %v3688_v59, %v3687_v44  ;;  %v3724_v56 = vrot.slane %v3723_v15, 1  ;;  %v3643_v13 = vrot.slane %v3642_v8, 1 }
 0x5cc   : > { %v3590_v36 = vadd.f32 %v3589_v54, %v3588_v23  ;;  %v3617_v0 = vadd.f32 %v3616_v10, %v3615_v22  ;;  %v3698_v14 = vadd.f32 %v3697_v4, %v3696_v58  ;;  %v3652_v33 = vrot.slane %v3651_v24, 1 }
 0x5cd   : > { %v3626_v46 = vadd.f32 %v3625_v47, %v3624_v5  ;;  %v3753_v16 = vsel %vm1254_vm6, %v3671_v11, %v3662_v35  ;;  %v3716_v61 = vadd.f32 %v3715_v2, %v3714_v1  ;;  %v3635_v62 = vadd.f32 %v3634_v28, %v3633_v51 }
 0x5ce   : > { %v3754_v48 = vsel %vm1256_vm7, %v3680_v49, %v3753_v16  ;;  %v3746_v32 = vsel %vm1254_vm6, %v3599_v17, %v3590_v36  ;;  %v3725_v38 = vadd.f32 %v3724_v56, %v3723_v15  ;;  %v3644_v44 = vadd.f32 %v3643_v13, %v3642_v8  ;;  %v9863_v13 = vld [vmem:[#allocation8_spill] sm:$0xff] }
 0x5cf   : > { %v3755_v50 = vsel %vm1258_vm8, %v3689_v19, %v3754_v48  ;;  %v3747_v63 = vsel %vm1256_vm7, %v3608_v42, %v3746_v32  ;;  %v3653_v22 = vadd.f32 %v3652_v33, %v3651_v24 }
 0x5d0   : > { %v3756_v23 = vsel %vm1260_vm9, %v3698_v14, %v3755_v50  ;;  %v3748_v5 = vsel %vm1258_vm8, %v3617_v0, %v3747_v63 }
 0x5d1   : > { %v3749_v26 = vsel %vm1260_vm9, %v3626_v46, %v3748_v5 }
 0x5d2   : > { %v3750_v21 = vsel %vm1262_vm10, %v3635_v62, %v3749_v26 }
 0x5d3   : > { %v3751_v1 = vsel %vm1264_vm11, %v3644_v44, %v3750_v21 }
 0x5d4   : > { %v3752_v59 = vsel %vm1266_vm12, %v3653_v22, %v3751_v1 }
 0x60b   : > { %v8761_v7 = vpop.f32.mrb[6].mxu0 }
 0x60c   : > { %9861 = vst [vmem:[#allocation40_spill] sm:$0xff] %v8761_v7  ;;  %v8763_v37 = vpop.f32.mrb[7].mxu0  ;;  %v3707_v7 = vadd.f32 %v3706_v41, %v3705_v57 }
 0x60d   : > { %9862 = vst [vmem:[#allocation41_spill] sm:$0xff] %v8763_v37 }
 0x60e   : > { %v3757_v58 = vsel %vm1262_vm10, %v3707_v7, %v3756_v23 }
 0x60f   : > { %v3758_v57 = vsel %vm1264_vm11, %v3716_v61, %v3757_v58 }
 0x610   : > { %v3759_v12 = vsel %vm1266_vm12, %v3725_v38, %v3758_v57 }
 0x617   : > { %v6578_v51 = vpop.f32.mrb[8].mxu0 }
 0x618   : > { %v3838_v40 = vadd.f32 %v6578_v51, %v3759_v12  ;;  %v3832_v8 = vpop.f32.mrb[9].mxu0 }
 0x619   : > { %v3833_v15 = vadd.f32 %v3832_v8, %v3752_v59 }
 0x61a   : > { %v3842_v54 = vmul.f32 0.35355338, %v3838_v40 }
 0x61b   : > { %v3841_v10 = vmul.f32 0.35355338, %v3833_v15 }
 0x61c   : > { %v3844_v7 = vsel %vm797_vm14, %v3842_v54, -1000000.0 }
 0x61d   : > { %v3848_v4 = vsel %vm1088_vm5, %v3844_v7, -inf  ;;  %v3843_v24 = vsel %vm796_vm13, %v3841_v10, -1000000.0 }
 0x61e   : > { %3849 = vmax.xlane.f32.xlu0 %v3848_v4  ;;  %v3845_v17 = vsel %vm1088_vm5, %v3843_v24, -inf }
 0x61f   : > { %3846 = vmax.xlane.f32.xlu1 %v3845_v17 }
 0x6ab   : > { %v3850_v11 = vpop.xlane.xlu0 %3849 }
 0x6ac   : > { %v3852_v47 = vsub.f32 %v3844_v7, %v3850_v11  ;;  %v3847_v41 = vpop.xlane.xlu1 %3846 }
 0x6ad   : > { %v3851_v42 = vsub.f32 %v3843_v24, %v3847_v41 }
 0x6ae   : > { %v3855_v49 = vmul.f32 1.442695, %v3852_v47 }
 0x6af   : > { %v3853_v28 = vmul.f32 1.442695, %v3851_v42 }
 0x6b0   : > { %6860 = vpow2.f32 %v3855_v49 }
 0x6b1   : > { %6862 = vpow2.f32 %v3853_v28 }
 0x6ba   : > { %v6861_v2 = vpop.eup %6860 }
 0x6bb   : > { %v6863_v35 = vpop.eup %6862  ;;  %v3860_v19 = vsel %vm1088_vm5, %v6861_v2, 0.0 }
 0x6bc   : > { %3861 = vadd.xlane.f32.xlu1 %v3860_v19  ;;  %v3857_v56 = vsel %vm1088_vm5, %v6863_v35, 0.0 }
 0x6bd   : > { %3858 = vadd.xlane.f32.xlu0 %v3857_v56 }
 0x6cd   : > { %4531 = vrot.lane.b32.xlu1 %v9824_v30, %s7030_s14 }
 0x6d3   : > { %4529 = vrot.lane.b32.xlu0 %v9863_v13, %s7030_s14  ;;  %v9865_v13 = vld [vmem:[#allocation27_spill] sm:$0xff] }
 0x749   : > { %v3862_v36 = vpop.xlane.xlu1 %3861 }
 0x74a   : > { %6864 = vrcp.f32 %v3862_v36  ;;  %v3859_v0 = vpop.xlane.xlu0 %3858  ;;  %v9866_v36 = vld [vmem:[#allocation25_spill] sm:$0xff] }
 0x74b   : > { %6866 = vrcp.f32 %v3859_v0 }
 0x74d   : > { %v8791_v33 = vpop.permute.xlu1 %4531 }
 0x74e   : > { %v8789_v14 = vpop.permute.xlu0 %4529 }
 0x74f   : > { %6595 = vmatprep.mubr.msk.f32.mxu0 %vm798_vm2, %v8789_v14 }
 0x750   : > { %6596 = vmatmul.mubr.msk.f32.vlgmr.msra.gmra.mrb[10].mxu0 %vm798_vm2, %v8791_v33 }
 0x751   : > { %6727 = vmatpush3.bf16.msk.msra.mxu0 %vm7663_vm1, %v7661_v6  ;;  %vm5795_vm1 = vcmask 195584  }
 0x754   : > { %v6865_v30 = vpop.eup %6864 }
 0x755   : > { %v6867_v46 = vpop.eup %6866  ;;  %v8800_v16 = vmul.f32 %v6865_v30, %v6861_v2 }
 0x756   : > { %v8802_v61 = vmul.f32 %v6867_v46, %v6863_v35 }
 0x757   : > { %v3925_v48 = vrot.slane %v8800_v16, %v7816_v27  ;;  %v3918_v6 = vcombine.high %v8800_v16, %v8800_v16 }
 0x758   : > { %v3876_v62 = vrot.slane %v8802_v61, %v7816_v27  ;;  %v3869_v54 = vcombine.high %v8802_v61, %v8802_v61 }
 0x759   : > { %v3941_v32 = vrot.slane %v3925_v48, %v7816_v27  ;;  %v3933_v38 = vcombine.high %v3925_v48, %v3925_v48  ;;  %v3932_v26 = vrot.slane %v3918_v6, %v7816_v27  ;;  %v9867_v48 = vld [vmem:[#allocation34_spill] sm:$0xff] }
 0x75a   : > { %v3892_v50 = vrot.slane %v3876_v62, %v7816_v27  ;;  %v3883_v17 = vrot.slane %v3869_v54, %v7816_v27 }
 0x75b   : > { %v4002_v45 = vrot.slane %v3941_v32, %v9826_v9  ;;  %v3955_v44 = vrot.slane %v3933_v38, %v7816_v27  ;;  %v3963_v58 = vcombine.high %v3941_v32, %v3941_v32  ;;  %v3934_v46 = vcombine.high %v3932_v26, %v3932_v26  ;;  %v9868_v32 = vld [vmem:[#allocation33_spill] sm:$0xff] }
 0x75c   : > { %v3970_v63 = vrot.slane %v3892_v50, %v9826_v9  ;;  %v3899_v28 = vrot.slane %v3883_v17, %v7816_v27 }
 0x75d   : > { %v4064_v23 = vmul.f32 %v8564_v43, %v4002_v45  ;;  %v4063_v22 = vmul.f32 %v8557_v53, %v4002_v45  ;;  %v4006_v5 = vrot.slane %v3955_v44, %v9826_v9  ;;  %v4010_v1 = vrot.slane %v3963_v58, %v9826_v9 }
 0x75e   : > { %v4047_v12 = vmul.f32 %v8532_v55, %v3970_v63  ;;  %v4048_v51 = vmul.f32 %v8538_v25, %v3970_v63  ;;  %v3948_v43 = vrot.slane %v3932_v26, %v7816_v27  ;;  %v3884_v53 = vcombine.high %v3876_v62, %v3876_v62  ;;  %v9870_v26 = vld [vmem:[#allocation31_spill] sm:$0xff] }
 0x75f   : > { %v4130_v57 = vsel %vm1090_vm4, %v4064_v23, 0.0  ;;  %v4127_v21 = vsel %vm1088_vm5, %v4063_v22, 0.0  ;;  %v4066_v8 = vmul.f32 %v8522_v60, %v4006_v5  ;;  %v4065_v15 = vmul.f32 %v8516_v29, %v4006_v5  ;;  %v9869_v5 = vld [vmem:[#allocation32_spill] sm:$0xff] }
 0x760   : > { %4131 = vadd.xlane.f32.xlu1 %v4130_v57  ;;  %4128 = vadd.xlane.f32.xlu0 %v4127_v21  ;;  %v4079_v40 = vsel %vm1088_vm5, %v4047_v12, 0.0  ;;  %v4082_v59 = vsel %vm1090_vm4, %v4048_v51, 0.0  ;;  %v4018_v55 = vrot.slane %v3948_v43, %v9826_v9  ;;  %v3906_v25 = vrot.slane %v3884_v53, %v7816_v27 }
 0x761   : > { %v4136_v10 = vsel %vm1090_vm4, %v4066_v8, 0.0  ;;  %v4133_v7 = vsel %vm1088_vm5, %v4065_v15, 0.0  ;;  %v4068_v4 = vmul.f32 %v8580_v34, %v4010_v1  ;;  %v4067_v24 = vmul.f32 %v8574_v31, %v4010_v1  ;;  %v9864_v31 = vld [vmem:[#allocation28_spill] sm:$0xff]  ;;  %v9872_v8 = vld [vmem:[#allocation37_spill] sm:$0xff] }
 0x762   : > { %v3974_v29 = vrot.slane %v3906_v25, %v9826_v9  ;;  %v3914_v60 = vcombine.high %v3892_v50, %v3892_v50  ;;  %v4072_v41 = vmul.f32 %v8623_v39, %v4018_v55  ;;  %v4071_v42 = vmul.f32 %v8617_v20, %v4018_v55  ;;  %v9873_v55 = vld [vmem:[#allocation30_spill] sm:$0xff] }
 0x763   : > { %v4142_v11 = vsel %vm1090_vm4, %v4068_v4, 0.0  ;;  %v4139_v47 = vsel %vm1088_vm5, %v4067_v24, 0.0  ;;  %v3986_v56 = vrot.slane %v3899_v28, %v9826_v9  ;;  %v3965_v30 = vcombine.high %v3955_v44, %v3955_v44 }
 0x764   : > { %4080 = vadd.xlane.f32.xlu1 %v4079_v40  ;;  %4083 = vadd.xlane.f32.xlu0 %v4082_v59  ;;  %v4050_v34 = vmul.f32 %v8510_v52, %v3974_v29  ;;  %v4049_v49 = vmul.f32 %v9864_v31, %v3974_v29  ;;  %v4154_v2 = vsel %vm1090_vm4, %v4072_v41, 0.0  ;;  %v4151_v35 = vsel %vm1088_vm5, %v4071_v42, 0.0  ;;  %v9871_v59 = vld [vmem:[#allocation38_spill] sm:$0xff]  ;;  %v8887_v42 = vld [vmem:[%s9780_s26 + $0x30] sm:$0xff] }
 0x765   : > { %v3978_v19 = vrot.slane %v3914_v60, %v9826_v9  ;;  %v4056_v62 = vmul.f32 %v9867_v48, %v3986_v56  ;;  %v4055_v38 = vmul.f32 %v9868_v32, %v3986_v56  ;;  %v4014_v45 = vrot.slane %v3965_v30, %v9826_v9  ;;  %v8879_v60 = vld [vmem:[%s9780_s26 + $0x38] sm:$0x1] }
 0x766   : > { %v4088_v39 = vsel %vm1090_vm4, %v4050_v34, 0.0  ;;  %v4085_v20 = vsel %vm1088_vm5, %v4049_v49, 0.0  ;;  %v3962_v63 = vrot.slane %v3934_v46, %v7816_v27  ;;  %v3964_v44 = vcombine.high %v3948_v43, %v3948_v43 }
 0x767   : > { %v4052_v52 = vmul.f32 %v9865_v13, %v3978_v19  ;;  %v4051_v0 = vmul.f32 %v9866_v36, %v3978_v19  ;;  %v4106_v23 = vsel %vm1090_vm4, %v4056_v62, 0.0  ;;  %v4103_v22 = vsel %vm1088_vm5, %v4055_v38, 0.0  ;;  %v9877_v13 = vld [vmem:[#allocation20_spill] sm:$0xff]  ;;  %v9878_v36 = vld [vmem:[#allocation21_spill] sm:$0xff] }
 0x768   : > { %4137 = vadd.xlane.f32.xlu1 %v4136_v10  ;;  %4134 = vadd.xlane.f32.xlu0 %v4133_v7  ;;  %v4070_v58 = vmul.f32 %v9869_v5, %v4014_v45  ;;  %v4069_v57 = vmul.f32 %v9870_v26, %v4014_v45  ;;  %v4022_v21 = vrot.slane %v3962_v63, %v9826_v9  ;;  %v9880_v45 = vld [vmem:[#allocation7_spill] sm:$0xff]  ;;  %v9882_v26 = vld [vmem:[#allocation12_spill] sm:$0xff] }
 0x769   : > { %v4094_v50 = vsel %vm1090_vm4, %v4052_v52, 0.0  ;;  %v4091_v6 = vsel %vm1088_vm5, %v4051_v0, 0.0  ;;  %v4026_v12 = vrot.slane %v3964_v44, %v9826_v9  ;;  %v3916_v51 = vcombine.high %v3906_v25, %v3906_v25  ;;  %v9874_v25 = vld [vmem:[#allocation29_spill] sm:$0xff]  ;;  %v9881_v5 = vld [vmem:[#allocation39_spill] sm:$0xff] }
 0x76a   : > { %v3885_v1 = vcombine.high %v3883_v17, %v3883_v17  ;;  %v4148_v53 = vsel %vm1090_vm4, %v4070_v58, 0.0  ;;  %v4145_v40 = vsel %vm1088_vm5, %v4069_v57, 0.0  ;;  %v4074_v43 = vmul.f32 %v9871_v59, %v4022_v21 }
 0x76b   : > { %v4073_v15 = vmul.f32 %v9872_v8, %v4022_v21  ;;  %v4076_v54 = vmul.f32 %v9873_v55, %v4026_v12  ;;  %v3982_v10 = vrot.slane %v3916_v51, %v9826_v9  ;;  %v4075_v24 = vmul.f32 %v9874_v25, %v4026_v12  ;;  %v9883_v51 = vld [vmem:[#allocation9_spill] sm:$0xff] }
 0x76c   : > { %4143 = vadd.xlane.f32.xlu1 %v4142_v11  ;;  %4140 = vadd.xlane.f32.xlu0 %v4139_v47  ;;  %v4160_v7 = vsel %vm1090_vm4, %v4074_v43, 0.0  ;;  %v3913_v29 = vrot.slane %v3885_v1, %v7816_v27  ;;  %v3915_v11 = vcombine.high %v3899_v28, %v3899_v28  ;;  %v3966_v56 = vcombine.high %v3962_v63, %v3962_v63 }
 0x76d   : > { %v4157_v4 = vsel %vm1088_vm5, %v4073_v15, 0.0  ;;  %v4054_v17 = vmul.f32 %v8879_v60, %v3982_v10  ;;  %v4166_v47 = vsel %vm1090_vm4, %v4076_v54, 0.0  ;;  %v4163_v41 = vsel %vm1088_vm5, %v4075_v24, 0.0 }
 0x76e   : > { %v4053_v34 = vmul.f32 %v8887_v42, %v3982_v10  ;;  %v3990_v31 = vrot.slane %v3913_v29, %v9826_v9  ;;  %v4030_v48 = vrot.slane %v3966_v56, %v9826_v9  ;;  %v3917_v62 = vcombine.high %v3913_v29, %v3913_v29 }
 0x76f   : > { %v4100_v49 = vsel %vm1090_vm4, %v4054_v17, 0.0 }
 0x770   : > { %4155 = vadd.xlane.f32.xlu1 %v4154_v2  ;;  %4152 = vadd.xlane.f32.xlu0 %v4151_v35  ;;  %v3994_v2 = vrot.slane %v3915_v11, %v9826_v9  ;;  %v4097_v28 = vsel %vm1088_vm5, %v4053_v34, 0.0  ;;  %v9875_v35 = vld [vmem:[#allocation36_spill] sm:$0xff]  ;;  %v4077_v63 = vmul.f32 %v9880_v45, %v4030_v48 }
 0x771   : > { %v4058_v19 = vmul.f32 %v9875_v35, %v3990_v31  ;;  %v9884_v35 = vld [vmem:[#allocation22_spill] sm:$0xff] }
 0x772   : > { %v4060_v52 = vmul.f32 %v9877_v13, %v3994_v2  ;;  %v4059_v0 = vmul.f32 %v9878_v36, %v3994_v2 }
 0x773   : > { %v4112_v30 = vsel %vm1090_vm4, %v4058_v19, 0.0 }
 0x774   : > { %4089 = vadd.xlane.f32.xlu1 %v4088_v39  ;;  %4086 = vadd.xlane.f32.xlu0 %v4085_v20  ;;  %v9876_v39 = vld [vmem:[#allocation35_spill] sm:$0xff]  ;;  %v4118_v32 = vsel %vm1090_vm4, %v4060_v52, 0.0  ;;  %v4115_v38 = vsel %vm1088_vm5, %v4059_v0, 0.0 }
 0x775   : > { %v4057_v20 = vmul.f32 %v9876_v39, %v3990_v31  ;;  %v9885_v39 = vld [vmem:[#allocation23_spill] sm:$0xff] }
 0x777   : > { %v4109_v46 = vsel %vm1088_vm5, %v4057_v20, 0.0 }
 0x778   : > { %4095 = vadd.xlane.f32.xlu1 %v4094_v50  ;;  %4092 = vadd.xlane.f32.xlu0 %v4091_v6  ;;  %v9879_v50 = vld [vmem:[#allocation11_spill] sm:$0xff] }
 0x779   : > { %v4078_v6 = vmul.f32 %v9879_v50, %v4030_v48 }
 0x77b   : > { %v4172_v44 = vsel %vm1090_vm4, %v4078_v6, 0.0 }
 0x77c   : > { %4107 = vadd.xlane.f32.xlu1 %v4106_v23  ;;  %4104 = vadd.xlane.f32.xlu0 %v4103_v22  ;;  %v3998_v23 = vrot.slane %v3917_v62, %v9826_v9  ;;  %v4169_v22 = vsel %vm1088_vm5, %v4077_v63, 0.0 }
 0x77e   : > { %v4062_v58 = vmul.f32 %v9881_v5, %v3998_v23  ;;  %v4061_v57 = vmul.f32 %v9882_v26, %v3998_v23 }
 0x780   : > { %4149 = vadd.xlane.f32.xlu1 %v4148_v53  ;;  %4146 = vadd.xlane.f32.xlu0 %v4145_v40  ;;  %v4124_v21 = vsel %vm1090_vm4, %v4062_v58, 0.0  ;;  %v4121_v12 = vsel %vm1088_vm5, %v4061_v57, 0.0 }
 0x784   : > { %4161 = vadd.xlane.f32.xlu1 %v4160_v7  ;;  %4158 = vadd.xlane.f32.xlu0 %v4157_v4 }
 0x788   : > { %4167 = vadd.xlane.f32.xlu1 %v4166_v47  ;;  %4164 = vadd.xlane.f32.xlu0 %v4163_v41 }
 0x78c   : > { %4101 = vadd.xlane.f32.xlu1 %v4100_v49  ;;  %4098 = vadd.xlane.f32.xlu0 %v4097_v28 }
 0x790   : > { %4113 = vadd.xlane.f32.xlu1 %v4112_v30  ;;  %4110 = vadd.xlane.f32.xlu0 %v4109_v46 }
 0x794   : > { %4119 = vadd.xlane.f32.xlu1 %v4118_v32  ;;  %4116 = vadd.xlane.f32.xlu0 %v4115_v38 }
 0x798   : > { %4173 = vadd.xlane.f32.xlu1 %v4172_v44  ;;  %4170 = vadd.xlane.f32.xlu0 %v4169_v22 }
 0x79c   : > { %4125 = vadd.xlane.f32.xlu1 %v4124_v21  ;;  %4122 = vadd.xlane.f32.xlu0 %v4121_v12 }
 0x7ad   : > { %6835 = vrot.lane.b32.xlu1 %v9883_v51, %s7031_s18  ;;  %s7033_s18 = smov 8  }
 0x7b2   : > { %6830 = vrot.lane.b32.xlu0 %v9883_v51, %s7032_s16  ;;  %s7034_s16 = smov 40  }
 0x7ed   : > { %v4129_v1 = vpop.xlane.xlu0 %4128  ;;  %v4132_v53 = vpop.xlane.xlu1 %4131 }
 0x7ee   : > { %v4282_v52 = vrot.slane %v4129_v1, %v9884_v35  ;;  %v4286_v36 = vrot.slane %v4132_v53, %v9885_v39 }
 0x7f0   : > { %v4287_v44 = vsel %vm1733_vm15, %v4286_v36, %v4282_v52 }
 0x7f1   : > { %v4084_v40 = vpop.xlane.xlu0 %4083  ;;  %v4081_v59 = vpop.xlane.xlu1 %4080 }
 0x7f2   : > { %v4214_v0 = vrot.slane %v4084_v40, %v9885_v39  ;;  %v4210_v30 = vrot.slane %v4081_v59, %v9884_v35 }
 0x7f4   : > { %v4215_v22 = vsel %vm1733_vm15, %v4214_v0, %v4210_v30 }
 0x7f5   : > { %v4135_v43 = vpop.xlane.xlu0 %4134  ;;  %v4138_v8 = vpop.xlane.xlu1 %4137 }
 0x7f6   : > { %v4291_v19 = vrot.slane %v4135_v43, %v9884_v35  ;;  %v4295_v20 = vrot.slane %v4138_v8, %v9885_v39 }
 0x7f8   : > { %v4296_v38 = vsel %vm1733_vm15, %v4295_v20, %v4291_v19 }
 0x7f9   : > { %v4141_v15 = vpop.xlane.xlu0 %4140  ;;  %v4144_v55 = vpop.xlane.xlu1 %4143  ;;  %v4358_v26 = vsel %vm1254_vm6, %v4296_v38, %v4287_v44 }
 0x7fa   : > { %v4300_v62 = vrot.slane %v4141_v15, %v9884_v35  ;;  %v4304_v32 = vrot.slane %v4144_v55, %v9885_v39 }
 0x7fc   : > { %v4305_v57 = vsel %vm1733_vm15, %v4304_v32, %v4300_v62 }
 0x7fd   : > { %v8914_v54 = vpop.xlane.xlu0 %4152  ;;  %v8916_v10 = vpop.xlane.xlu1 %4155 }
 0x7fe   : > { %v4318_v1 = vrot.slane %v8914_v54, %v9884_v35  ;;  %v4322_v53 = vrot.slane %v8916_v10, %v9885_v39 }
 0x801   : > { %v4087_v7 = vpop.xlane.xlu0 %4086  ;;  %v4090_v4 = vpop.xlane.xlu1 %4089 }
 0x802   : > { %v4219_v56 = vrot.slane %v4087_v7, %v9884_v35  ;;  %v4223_v13 = vrot.slane %v4090_v4, %v9885_v39 }
 0x804   : > { %v4224_v45 = vsel %vm1733_vm15, %v4223_v13, %v4219_v56  ;;  %v4359_v13 = vsel %vm1256_vm7, %v4305_v57, %v4358_v26 }
 0x805   : > { %v4093_v25 = vpop.xlane.xlu0 %4092  ;;  %v4096_v24 = vpop.xlane.xlu1 %4095  ;;  %v4351_v40 = vsel %vm1254_vm6, %v4224_v45, %v4215_v22 }
 0x806   : > { %v4228_v50 = vrot.slane %v4093_v25, %v9884_v35  ;;  %v4232_v6 = vrot.slane %v4096_v24, %v9885_v39 }
 0x808   : > { %v4233_v59 = vsel %vm1733_vm15, %v4232_v6, %v4228_v50  ;;  %v4323_v6 = vsel %vm1733_vm15, %v4322_v53, %v4318_v1 }
 0x809   : > { %v8918_v29 = vpop.xlane.xlu0 %4104  ;;  %v8920_v17 = vpop.xlane.xlu1 %4107 }
 0x80a   : > { %v4246_v8 = vrot.slane %v8918_v29, %v9884_v35  ;;  %v4250_v54 = vrot.slane %v8920_v17, %v9885_v39 }
 0x80d   : > { %v4147_v11 = vpop.xlane.xlu0 %4146  ;;  %v4150_v47 = vpop.xlane.xlu1 %4149 }
 0x80e   : > { %v4309_v21 = vrot.slane %v4147_v11, %v9884_v35  ;;  %v4313_v12 = vrot.slane %v4150_v47, %v9885_v39  ;;  %v4352_v47 = vsel %vm1256_vm7, %v4233_v59, %v4351_v40 }
 0x811   : > { %v8922_v41 = vpop.xlane.xlu0 %4158  ;;  %v8924_v34 = vpop.xlane.xlu1 %4161 }
 0x812   : > { %v4331_v19 = vrot.slane %v8924_v34, %v9885_v39  ;;  %v4251_v34 = vsel %vm1733_vm15, %v4250_v54, %v4246_v8 }
 0x815   : > { %v8926_v31 = vpop.xlane.xlu0 %4164  ;;  %v8928_v49 = vpop.xlane.xlu1 %4167 }
 0x816   : > { %v4336_v17 = vrot.slane %v8926_v31, %v9884_v35  ;;  %v4340_v20 = vrot.slane %v8928_v49, %v9885_v39 }
 0x818   : > { %v4341_v45 = vsel %vm1733_vm15, %v4340_v20, %v4336_v17  ;;  %v9892_v17 = vld [vmem:[#allocation18_spill] sm:$0xff] }
 0x819   : > { %v4099_v2 = vpop.xlane.xlu0 %4098  ;;  %v4102_v28 = vpop.xlane.xlu1 %4101 }
 0x81a   : > { %v4237_v63 = vrot.slane %v4099_v2, %v9884_v35  ;;  %v4241_v23 = vrot.slane %v4102_v28, %v9885_v39  ;;  %v4314_v2 = vsel %vm1733_vm15, %v4313_v12, %v4309_v21  ;;  %v4327_v28 = vrot.slane %v8922_v41, %v9884_v35  ;;  %v9887_v12 = vld [vmem:[#allocation14_spill] sm:$0xff] }
 0x81b   : > { %v4360_v0 = vsel %vm1258_vm8, %v4314_v2, %v4359_v13 }
 0x81c   : > { %v4242_v15 = vsel %vm1733_vm15, %v4241_v23, %v4237_v63  ;;  %v4332_v62 = vsel %vm1733_vm15, %v4331_v19, %v4327_v28  ;;  %v4361_v23 = vsel %vm1260_vm9, %v4323_v6, %v4360_v0 }
 0x81d   : > { %v4111_v46 = vpop.xlane.xlu0 %4110  ;;  %v4114_v48 = vpop.xlane.xlu1 %4113  ;;  %v4353_v56 = vsel %vm1258_vm8, %v4242_v15, %v4352_v47  ;;  %v9890_v47 = vld [vmem:[#allocation16_spill] sm:$0xff] }
 0x81e   : > { %v4255_v55 = vrot.slane %v4111_v46, %v9884_v35  ;;  %v4259_v7 = vrot.slane %v4114_v48, %v9885_v39  ;;  %v9886_v46 = vld [vmem:[#allocation13_spill] sm:$0xff]  ;;  %v4354_v32 = vsel %vm1260_vm9, %v4251_v34, %v4353_v56  ;;  %v9893_v56 = vld [vmem:[#allocation19_spill] sm:$0xff] }
 0x820   : > { %v4260_v52 = vsel %vm1733_vm15, %v4259_v7, %v4255_v55 }
 0x821   : > { %v4117_v5 = vpop.xlane.xlu0 %4116  ;;  %v4120_v58 = vpop.xlane.xlu1 %4119  ;;  %v4355_v63 = vsel %vm1262_vm10, %v4260_v52, %v4354_v32 }
 0x822   : > { %v4264_v10 = vrot.slane %v4117_v5, %v9884_v35  ;;  %v4268_v25 = vrot.slane %v4120_v58, %v9885_v39  ;;  %v4362_v58 = vsel %vm1262_vm10, %v4332_v62, %v4361_v23 }
 0x823   : > { %v8958_v43 = vpop.f32.mrb[10].mxu0  ;;  %v4363_v53 = vsel %vm1264_vm11, %v4341_v45, %v4362_v58 }
 0x824   : > { %v8965_v4 = vpop.f32.mrb[11].mxu0  ;;  %v4269_v31 = vsel %vm1733_vm15, %v4268_v25, %v4264_v10  ;;  %v4703_v54 = vrot.slane %v8958_v43, %v9826_v9  ;;  %v4747_v19 = vrot.slane %v8958_v43, %v9890_v47  ;;  %v4769_v52 = vrot.slane %v8958_v43, %v9892_v17  ;;  %v9097_v25 = vld [vmem:[%s9780_s26 + $0x8] sm:$0x1] }
 0x825   : > { %v4171_v24 = vpop.xlane.xlu0 %4170  ;;  %v4174_v11 = vpop.xlane.xlu1 %4173  ;;  %v4615_v29 = vrot.slane %v8965_v4, %v9826_v9  ;;  %v4626_v48 = vrot.slane %v8965_v4, %v9886_v46  ;;  %v4356_v5 = vsel %vm1264_vm11, %v4269_v31, %v4355_v63  ;;  %v4637_v1 = vrot.slane %v8965_v4, %v9887_v12 }
 0x826   : > { %v4345_v36 = vrot.slane %v4171_v24, %v9884_v35  ;;  %v4349_v41 = vrot.slane %v4174_v11, %v9885_v39  ;;  %v4714_v24 = vrot.slane %v8958_v43, %v9886_v46  ;;  %v4659_v2 = vrot.slane %v8965_v4, %v9890_v47  ;;  %v9110_v47 = vld [vmem:[%s9780_s26 + $0x28] sm:$0x1] }
 0x827   : > { %4621 = vbcast.lane.b32.xlu0 %v4615_v29, 264  ;;  %4617 = vbcast.lane.b32.xlu1 %v4615_v29, 256  ;;  %v4725_v29 = vrot.slane %v8958_v43, %v9887_v12  ;;  %v4681_v20 = vrot.slane %v8965_v4, %v9892_v17  ;;  %v4692_v13 = vrot.slane %v8965_v4, %v9893_v56 }
 0x828   : > { %v4350_v44 = vsel %vm1733_vm15, %v4349_v41, %v4345_v36  ;;  %v4780_v36 = vrot.slane %v8958_v43, %v9893_v56 }
 0x829   : > { %v4123_v30 = vpop.xlane.xlu0 %4122  ;;  %v4126_v49 = vpop.xlane.xlu1 %4125  ;;  %v4364_v55 = vsel %vm1266_vm12, %v4350_v44, %v4363_v53 }
 0x82a   : > { %v4273_v38 = vrot.slane %v4123_v30, %v9884_v35  ;;  %v4277_v50 = vrot.slane %v4126_v49, %v9885_v39 }
 0x82b   : > { %4632 = vbcast.lane.b32.xlu0 %v4626_v48, 264  ;;  %4628 = vbcast.lane.b32.xlu1 %v4626_v48, 256 }
 0x82c   : > { %v4278_v22 = vsel %vm1733_vm15, %v4277_v50, %v4273_v38 }
 0x82d   : > { %v6831_v26 = vpop.permute.xlu0 %6830  ;;  %v6836_v57 = vpop.permute.xlu1 %6835  ;;  %v4357_v21 = vsel %vm1266_vm12, %v4278_v22, %v4356_v5 }
 0x82e   : > { %v6833_v40 = vunpack.i.h.bf16 %v6831_v26  ;;  %v6832_v59 = vunpack.i.l.bf16 %v6831_v26  ;;  %6583 = vmatprep.mubr.msk.f32.mxu1 %vm1884_vm0, %v4357_v21  ;;  %v6838_v8 = vunpack.i.h.bf16 %v6836_v57  ;;  %v6837_v15 = vunpack.i.l.bf16 %v6836_v57 }
 0x82f   : > { %4643 = vbcast.lane.b32.xlu0 %v4637_v1, 264  ;;  %4639 = vbcast.lane.b32.xlu1 %v4637_v1, 256  ;;  %v9069_v1 = vld [vmem:[%s9780_s26 + $0x18] sm:$0x1] }
 0x830   : > { %v6712_v7 = vpack.c.bf16 %v6833_v40, %v6832_v59  ;;  %6584 = vmatmul.mubr.msk.f32.vlgmr.msra.gmra.mrb[8].mxu1 %vm1884_vm0, %v4364_v55  ;;  %v6716_v10 = vpack.c.bf16 %v6838_v8, %v6837_v15  ;;  %v9075_v40 = vld [vmem:[%s9780_s26 + $0x10] sm:$0xff]  ;;  %v9081_v8 = vld [vmem:[%s9780_s26 + $0x98] sm:$0x1] }
 0x831   : > { %6590 = vmatprep.mubr.msk.f32.mxu1 %vm1088_vm5, %v8802_v61  ;;  %v9889_v61 = vld [vmem:[#allocation15_spill] sm:$0xff]  ;;  %v9087_v55 = vld [vmem:[%s9780_s26 + $0x90] sm:$0xff] }
 0x832   : > { %6713 = vmatprep.subr.bf16.mxu1 %v6712_v7  ;;  %v4648_v11 = vrot.slane %v8965_v4, %v9889_v61 }
 0x833   : > { %4709 = vbcast.lane.b32.xlu0 %v4703_v54, 264  ;;  %4705 = vbcast.lane.b32.xlu1 %v4703_v54, 256 }
 0x834   : > { %6715 = vmatpush3.bf16.msra.mxu1 %v6712_v7 }
 0x835   : > { %6718 = vmatprep.subr.msk.bf16.mxu1 %vm7220_vm3, %v6716_v10 }
 0x837   : > { %4720 = vbcast.lane.b32.xlu0 %v4714_v24, 264  ;;  %4716 = vbcast.lane.b32.xlu1 %v4714_v24, 256 }
 0x838   : > { %6591 = vmatmul.mubr.msk.f32.vlgmr.msra.gmra.mrb[8].mxu1 %vm1088_vm5, %v8800_v16  ;;  %v9891_v16 = vld [vmem:[#allocation17_spill] sm:$0xff] }
 0x839   : > { %6602 = vmatprep.mubr.msk.f32.mxu1 %vm798_vm2, %v8789_v14  ;;  %v4736_v14 = vrot.slane %v8958_v43, %v9889_v61  ;;  %v4670_v28 = vrot.slane %v8965_v4, %v9891_v16  ;;  %v9103_v61 = vld [vmem:[%s9780_s26] sm:$0xff] }
 0x83b   : > { %4654 = vbcast.lane.b32.xlu0 %v4648_v11, 264  ;;  %4650 = vbcast.lane.b32.xlu1 %v4648_v11, 256 }
 0x83d   : > { %6721 = vmatpush3.bf16.xpose.msk.msra.mxu1 %vm7220_vm3, %v6716_v10  ;;  %vm9935_vm3 = vcmask 261120  }
 0x83f   : > { %4731 = vbcast.lane.b32.xlu0 %v4725_v29, 264  ;;  %4727 = vbcast.lane.b32.xlu1 %v4725_v29, 256 }
 0x843   : > { %4665 = vbcast.lane.b32.xlu0 %v4659_v2, 264  ;;  %4661 = vbcast.lane.b32.xlu1 %v4659_v2, 256 }
 0x844   : > { %6603 = vmatmul.mubr.msk.f32.vlgmr.msra.gmra.mrb[10].mxu1 %vm798_vm2, %v8791_v33  ;;  %v4758_v33 = vrot.slane %v8958_v43, %v9891_v16 }
 0x847   : > { %4742 = vbcast.lane.b32.xlu0 %v4736_v14, 264  ;;  %4738 = vbcast.lane.b32.xlu1 %v4736_v14, 256  ;;  %v9116_v14 = vld [vmem:[%s9780_s26 + $0x20] sm:$0xff] }
 0x84b   : > { %4676 = vbcast.lane.b32.xlu0 %v4670_v28, 264  ;;  %4672 = vbcast.lane.b32.xlu1 %v4670_v28, 256  ;;  %v9122_v28 = vld [vmem:[%s9780_s26 + $0x88] sm:$0x1] }
 0x84f   : > { %4753 = vbcast.lane.b32.xlu0 %v4747_v19, 264  ;;  %4749 = vbcast.lane.b32.xlu1 %v4747_v19, 256 }
 0x853   : > { %4687 = vbcast.lane.b32.xlu0 %v4681_v20, 264  ;;  %4683 = vbcast.lane.b32.xlu1 %v4681_v20, 256  ;;  %v9129_v20 = vld [vmem:[%s9780_s26 + $0x80] sm:$0xff] }
 0x857   : > { %4764 = vbcast.lane.b32.xlu0 %v4758_v33, 264  ;;  %4760 = vbcast.lane.b32.xlu1 %v4758_v33, 256 }
 0x85b   : > { %4698 = vbcast.lane.b32.xlu0 %v4692_v13, 264  ;;  %4694 = vbcast.lane.b32.xlu1 %v4692_v13, 256 }
 0x85f   : > { %4775 = vbcast.lane.b32.xlu0 %v4769_v52, 264  ;;  %4771 = vbcast.lane.b32.xlu1 %v4769_v52, 256 }
 0x863   : > { %4786 = vbcast.lane.b32.xlu0 %v4780_v36, 264  ;;  %4782 = vbcast.lane.b32.xlu1 %v4780_v36, 256 }
 0x899   : > { %v4622_v41 = vpop.permute.xlu0 %4621  ;;  %v4618_v34 = vpop.permute.xlu1 %4617 }
 0x89a   : > { %v4789_v24 = vmul.f32 %v9097_v25, %v4622_v41  ;;  %v4788_v11 = vmul.f32 %v9103_v61, %v4618_v34  ;;  %v9139_v41 = vld [vmem:[%s9780_s26 + $0xa8] sm:$0x1] }
 0x89d   : > { %v4633_v0 = vpop.permute.xlu0 %4632  ;;  %v4629_v31 = vpop.permute.xlu1 %4628 }
 0x89e   : > { %v4791_v53 = vmul.f32 %v9069_v1, %v4633_v0  ;;  %v4790_v59 = vmul.f32 %v9075_v40, %v4629_v31  ;;  %v9145_v0 = vld [vmem:[%s9780_s26 + $0xa0] sm:$0xff]  ;;  %v4820_v31 = vsel %vm1088_vm5, %v4788_v11, 0.0 }
 0x8a0   : > { %v4830_v29 = vsel %vm1090_vm4, %v4791_v53, 0.0  ;;  %v4829_v17 = vsel %vm1088_vm5, %v4790_v59, 0.0 }
 0x8a1   : > { %v4644_v30 = vpop.permute.xlu0 %4643  ;;  %v4640_v49 = vpop.permute.xlu1 %4639 }
 0x8a2   : > { %v4793_v2 = vmul.f32 %v9110_v47, %v4644_v30  ;;  %v4792_v16 = vmul.f32 %v9116_v14, %v4640_v49  ;;  %v9150_v30 = vadd.f32 %v4830_v29, %v4829_v17  ;;  %v9188_v17 = vld [vmem:[%s9780_s26 + $0xc0] sm:$0xff] }
 0x8a4   : > { %v4839_v49 = vsel %vm1090_vm4, %v4793_v2, 0.0  ;;  %v9279_v2 = vld [vmem:[%s9780_s26 + $0xf0] sm:$0xff] }
 0x8a5   : > { %v4710_v46 = vpop.permute.xlu0 %4709  ;;  %v4706_v4 = vpop.permute.xlu1 %4705  ;;  %9907 = vst [vmem:[#allocation35_spill] sm:$0xff] %v9279_v2 }
 0x8a6   : > { %v4805_v19 = vmul.f32 %v9122_v28, %v4710_v46  ;;  %v4804_v33 = vmul.f32 %v9129_v20, %v4706_v4  ;;  %v4838_v46 = vsel %vm1088_vm5, %v4792_v16, 0.0 }
 0x8a7   : > { %v9177_v16 = vadd.f32 %v4839_v49, %v4838_v46  ;;  %v9217_v46 = vld [vmem:[%s9780_s26 + $0x58] sm:$0x1] }
 0x8a8   : > { %v4893_v4 = vsel %vm1090_vm4, %v4805_v19, 0.0  ;;  %v9182_v19 = vld [vmem:[%s9780_s26 + $0xc8] sm:$0x1]  ;;  %9898 = vst [vmem:[#allocation34_spill] sm:$0xff] %v9217_v46 }
 0x8a9   : > { %v4721_v48 = vpop.permute.xlu0 %4720  ;;  %v4717_v62 = vpop.permute.xlu1 %4716 }
 0x8aa   : > { %v4807_v15 = vmul.f32 %v9081_v8, %v4721_v48  ;;  %v4806_v7 = vmul.f32 %v9087_v55, %v4717_v62 }
 0x8ac   : > { %v4902_v52 = vsel %vm1090_vm4, %v4807_v15, 0.0  ;;  %v4901_v36 = vsel %vm1088_vm5, %v4806_v7, 0.0  ;;  %v9165_v15 = vld [vmem:[%s9780_s26 + $0xb8] sm:$0x1] }
 0x8ad   : > { %v4655_v32 = vpop.permute.xlu0 %4654  ;;  %v4651_v38 = vpop.permute.xlu1 %4650  ;;  %9894 = vst [vmem:[#allocation8_spill] sm:$0xff] %v9165_v15 }
 0x8ae   : > { %v4795_v56 = vmul.f32 %v8879_v60, %v4655_v32  ;;  %v4794_v13 = vmul.f32 %v8887_v42, %v4651_v38  ;;  %v4821_v42 = vsel %vm1090_vm4, %v4789_v24, 0.0  ;;  %v4892_v32 = vsel %vm1088_vm5, %v4804_v33, 0.0  ;;  %v9171_v24 = vld [vmem:[%s9780_s26 + $0xb0] sm:$0xff] }
 0x8af   : > { %v9156_v38 = vadd.f32 %v4902_v52, %v4901_v36  ;;  %9895 = vst [vmem:[#allocation28_spill] sm:$0xff] %v9171_v24  ;;  %v9174_v29 = vadd.f32 %v4821_v42, %v4820_v31  ;;  %v9191_v33 = vadd.f32 %v4893_v4, %v4892_v32  ;;  %v9201_v36 = vld [vmem:[%s9780_s26 + $0x48] sm:$0x1]  ;;  %v9224_v4 = vld [vmem:[%s9780_s26 + $0x50] sm:$0xff]  ;;  %v9231_v32 = vld [vmem:[%s9780_s26 + $0xd8] sm:$0x1] }
 0x8b0   : > { %9896 = vst [vmem:[#allocation27_spill] sm:$0xff] %v9201_v36  ;;  %9899 = vst [vmem:[#allocation33_spill] sm:$0xff] %v9224_v4 }
 0x8b1   : > { %v4732_v50 = vpop.permute.xlu0 %4731  ;;  %v4728_v6 = vpop.permute.xlu1 %4727  ;;  %9900 = vst [vmem:[#allocation32_spill] sm:$0xff] %v9231_v32 }
 0x8b2   : > { %v4809_v34 = vmul.f32 %v9139_v41, %v4732_v50  ;;  %v4808_v60 = vmul.f32 %v9145_v0, %v4728_v6  ;;  %v4848_v50 = vsel %vm1090_vm4, %v4795_v56, 0.0  ;;  %v4847_v6 = vsel %vm1088_vm5, %v4794_v13, 0.0 }
 0x8b3   : > { %v9194_v13 = vadd.f32 %v4848_v50, %v4847_v6 }
 0x8b4   : > { %v4911_v53 = vsel %vm1090_vm4, %v4809_v34, 0.0  ;;  %v4910_v59 = vsel %vm1088_vm5, %v4808_v60, 0.0 }
 0x8b5   : > { %v9050_v45 = vpop.permute.xlu0 %4665  ;;  %v9052_v63 = vpop.permute.xlu1 %4661  ;;  %v9196_v52 = vadd.f32 %v4911_v53, %v4910_v59  ;;  %v9247_v59 = vld [vmem:[%s9780_s26 + $0xe8] sm:$0x1] }
 0x8b6   : > { %9902 = vst [vmem:[#allocation38_spill] sm:$0xff] %v9247_v59 }
 0x8b9   : > { %v4743_v43 = vpop.permute.xlu0 %4742  ;;  %v4739_v23 = vpop.permute.xlu1 %4738 }
 0x8ba   : > { %v4811_v7 = vmul.f32 %v9165_v15, %v4743_v43  ;;  %v4810_v11 = vmul.f32 %v9171_v24, %v4739_v23 }
 0x8bc   : > { %v4920_v60 = vsel %vm1090_vm4, %v4811_v7, 0.0  ;;  %v4919_v42 = vsel %vm1088_vm5, %v4810_v11, 0.0 }
 0x8bd   : > { %v9054_v44 = vpop.permute.xlu0 %4676  ;;  %v9056_v22 = vpop.permute.xlu1 %4672  ;;  %v4921_v37 = vadd.f32 %v4920_v60, %v4919_v42 }
 0x8c1   : > { %v4754_v5 = vpop.permute.xlu0 %4753  ;;  %v4750_v58 = vpop.permute.xlu1 %4749 }
 0x8c2   : > { %v4813_v43 = vmul.f32 %v9182_v19, %v4754_v5  ;;  %v4812_v23 = vmul.f32 %v9188_v17, %v4750_v58  ;;  %v4797_v5 = vmul.f32 %v9201_v36, %v9050_v45  ;;  %v9208_v58 = vld [vmem:[%s9780_s26 + $0x40] sm:$0xff]  ;;  %v4799_v45 = vmul.f32 %v9217_v46, %v9054_v44  ;;  %v9238_v44 = vld [vmem:[%s9780_s26 + $0xd0] sm:$0xff] }
 0x8c3   : > { %9897 = vst [vmem:[#allocation25_spill] sm:$0xff] %v9208_v58  ;;  %v4796_v34 = vmul.f32 %v9208_v58, %v9052_v63  ;;  %v4798_v63 = vmul.f32 %v9224_v4, %v9056_v22  ;;  %9901 = vst [vmem:[#allocation31_spill] sm:$0xff] %v9238_v44 }
 0x8c4   : > { %v4929_v53 = vsel %vm1090_vm4, %v4813_v43, 0.0  ;;  %v4928_v22 = vsel %vm1088_vm5, %v4812_v23, 0.0  ;;  %v9266_v23 = vld [vmem:[%s9780_s26 + $0x60] sm:$0xff]  ;;  %v4857_v35 = vsel %vm1090_vm4, %v4797_v5, 0.0  ;;  %v4866_v5 = vsel %vm1090_vm4, %v4799_v45, 0.0 }
 0x8c5   : > { %v9058_v26 = vpop.permute.xlu0 %4687  ;;  %v9060_v57 = vpop.permute.xlu1 %4683  ;;  %9905 = vst [vmem:[#allocation29_spill] sm:$0xff] %v9266_v23  ;;  %v4856_v39 = vsel %vm1088_vm5, %v4796_v34, 0.0 }
 0x8c6   : > { %v4858_v42 = vadd.f32 %v4857_v35, %v4856_v39  ;;  %v4850_v35 = vrot.slane %v9194_v13, 4 }
 0x8c9   : > { %v9062_v21 = vpop.permute.xlu0 %4764  ;;  %v9064_v12 = vpop.permute.xlu1 %4760 }
 0x8ca   : > { %v4815_v50 = vmul.f32 %v9231_v32, %v9062_v21  ;;  %v4814_v6 = vmul.f32 %v9238_v44, %v9064_v12  ;;  %v9253_v21 = vld [vmem:[%s9780_s26 + $0xe0] sm:$0xff]  ;;  %v9259_v12 = vld [vmem:[%s9780_s26 + $0x68] sm:$0x1] }
 0x8cb   : > { %9903 = vst [vmem:[#allocation37_spill] sm:$0xff] %v9253_v21  ;;  %9904 = vst [vmem:[#allocation30_spill] sm:$0xff] %v9259_v12  ;;  %v4801_v43 = vmul.f32 %v9259_v12, %v9058_v26 }
 0x8cc   : > { %v4938_v34 = vsel %vm1090_vm4, %v4815_v50, 0.0 }
 0x8cd   : > { %v9090_v54 = vpop.permute.xlu0 %4698  ;;  %v9092_v10 = vpop.permute.xlu1 %4694  ;;  %v4875_v12 = vsel %vm1090_vm4, %v4801_v43, 0.0  ;;  %v4922_v43 = vrot.slane %v4921_v37, 4 }
 0x8d1   : > { %v4776_v48 = vpop.permute.xlu0 %4775  ;;  %v4772_v62 = vpop.permute.xlu1 %4771 }
 0x8d2   : > { %v4817_v7 = vmul.f32 %v9247_v59, %v4776_v48  ;;  %v4816_v11 = vmul.f32 %v9253_v21, %v4772_v62  ;;  %v4800_v48 = vmul.f32 %v9266_v23, %v9060_v57  ;;  %v9273_v62 = vld [vmem:[%s9780_s26 + $0xf8] sm:$0x1]  ;;  %v4930_v23 = vadd.f32 %v4929_v53, %v4928_v22 }
 0x8d3   : > { %9906 = vst [vmem:[#allocation36_spill] sm:$0xff] %v9273_v62  ;;  %v9287_v57 = vld [vmem:[%s9780_s26 + $0x78] sm:$0x1]  ;;  %v4913_v53 = vrot.slane %v9196_v52, 4 }
 0x8d4   : > { %9908 = vst [vmem:[#allocation20_spill] sm:$0xff] %v9287_v57  ;;  %v4803_v51 = vmul.f32 %v9287_v57, %v9090_v54  ;;  %v4947_v54 = vsel %vm1090_vm4, %v4817_v7, 0.0  ;;  %v4946_v57 = vsel %vm1088_vm5, %v4816_v11, 0.0  ;;  %v4874_v4 = vsel %vm1088_vm5, %v4800_v48, 0.0 }
 0x8d5   : > { %v4787_v31 = vpop.permute.xlu0 %4786  ;;  %v4783_v49 = vpop.permute.xlu1 %4782  ;;  %v4948_v7 = vadd.f32 %v4947_v54, %v4946_v57  ;;  %v4895_v11 = vrot.slane %v9191_v33, 4  ;;  %v4876_v48 = vadd.f32 %v4875_v12, %v4874_v4  ;;  %v4931_v39 = vrot.slane %v4930_v23, 4 }
 0x8d6   : > { %v4819_v56 = vmul.f32 %v9273_v62, %v4787_v31  ;;  %v4818_v26 = vmul.f32 %v9279_v2, %v4783_v49  ;;  %v9294_v31 = vld [vmem:[%s9780_s26 + $0x70] sm:$0xff]  ;;  %v4937_v62 = vsel %vm1088_vm5, %v4814_v6, 0.0  ;;  %v4865_v2 = vsel %vm1088_vm5, %v4798_v63, 0.0 }
 0x8d7   : > { %9909 = vst [vmem:[#allocation21_spill] sm:$0xff] %v9294_v31  ;;  %v4802_v49 = vmul.f32 %v9294_v31, %v9092_v10  ;;  %v4939_v45 = vadd.f32 %v4938_v34, %v4937_v62  ;;  %v4884_v50 = vsel %vm1090_vm4, %v4803_v51, 0.0  ;;  %v4841_v63 = vrot.slane %v9177_v16, 4 }
 0x8d8   : > { %v4956_v10 = vsel %vm1090_vm4, %v4819_v56, 0.0  ;;  %v4955_v60 = vsel %vm1088_vm5, %v4818_v26, 0.0  ;;  %v4867_v22 = vadd.f32 %v4866_v5, %v4865_v2  ;;  %v4823_v56 = vrot.slane %v9174_v29, 4 }
 0x8d9   : > { %v4883_v6 = vsel %vm1088_vm5, %v4802_v49, 0.0  ;;  %v4957_v31 = vadd.f32 %v4956_v10, %v4955_v60  ;;  %v9910_v51 = vrot.slane %v9150_v30, 4  ;;  %v9911_v49 = vrot.slane %v9156_v38, 4 }
 0x8da   : > { %v4885_v62 = vadd.f32 %v4884_v50, %v4883_v6  ;;  %v4859_v57 = vrot.slane %v4858_v42, 4  ;;  %v4940_v5 = vrot.slane %v4939_v45, 4  ;;  %v4842_v34 = vadd.f32 %v4841_v63, %v9177_v16 }
 0x8db   : > { %v4833_v26 = vadd.f32 %v9910_v51, %v9150_v30  ;;  %v4905_v2 = vadd.f32 %v9911_v49, %v9156_v38  ;;  %v4914_v4 = vadd.f32 %v4913_v53, %v9196_v52  ;;  %v4868_v12 = vrot.slane %v4867_v22, 4 }
 0x8dc   : > { %v4949_v54 = vrot.slane %v4948_v7, 4  ;;  %v4896_v10 = vadd.f32 %v4895_v11, %v9191_v33  ;;  %v4923_v60 = vadd.f32 %v4922_v43, %v4921_v37  ;;  %v4877_v50 = vrot.slane %v4876_v48, 4 }
 0x8dd   : > { %v4958_v6 = vrot.slane %v4957_v31, 4  ;;  %v4824_v46 = vadd.f32 %v4823_v56, %v9174_v29  ;;  %v4851_v30 = vadd.f32 %v4850_v35, %v9194_v13  ;;  %v4932_v51 = vadd.f32 %v4931_v39, %v4930_v23 }
 0x8de   : > { %v4886_v21 = vrot.slane %v4885_v62, 4  ;;  %v4834_v38 = vrot.slane %v4833_v26, 2  ;;  %v4906_v49 = vrot.slane %v4905_v2, 2  ;;  %v4860_v59 = vadd.f32 %v4859_v57, %v4858_v42 }
 0x8df   : > { %v4941_v44 = vadd.f32 %v4940_v5, %v4939_v45  ;;  %v4843_v16 = vrot.slane %v4842_v34, 2  ;;  %v4915_v63 = vrot.slane %v4914_v4, 2  ;;  %v4869_v52 = vadd.f32 %v4868_v12, %v4867_v22 }
 0x8e0   : > { %v4950_v53 = vadd.f32 %v4949_v54, %v4948_v7  ;;  %v4897_v32 = vrot.slane %v4896_v10, 2  ;;  %v4924_v24 = vrot.slane %v4923_v60, 2  ;;  %v4878_v33 = vadd.f32 %v4877_v50, %v4876_v48 }
 0x8e1   : > { %v4959_v37 = vadd.f32 %v4958_v6, %v4957_v31  ;;  %v4825_v11 = vrot.slane %v4824_v46, 2  ;;  %v4852_v43 = vrot.slane %v4851_v30, 2  ;;  %v4933_v15 = vrot.slane %v4932_v51, 2 }
 0x8e2   : > { %v4887_v29 = vadd.f32 %v4886_v21, %v4885_v62  ;;  %v4835_v56 = vadd.f32 %v4834_v38, %v4833_v26  ;;  %v4907_v13 = vadd.f32 %v4906_v49, %v4905_v2  ;;  %v4861_v23 = vrot.slane %v4860_v59, 2 }
 0x8e3   : > { %v4942_v35 = vrot.slane %v4941_v44, 2  ;;  %v4844_v39 = vadd.f32 %v4843_v16, %v4842_v34  ;;  %v4916_v58 = vadd.f32 %v4915_v63, %v4914_v4  ;;  %v4870_v42 = vrot.slane %v4869_v52, 2 }
 0x8e4   : > { %v4951_v45 = vrot.slane %v4950_v53, 2  ;;  %v4898_v57 = vadd.f32 %v4897_v32, %v4896_v10  ;;  %v4925_v5 = vadd.f32 %v4924_v24, %v4923_v60  ;;  %v4879_v22 = vrot.slane %v4878_v33, 2 }
 0x8e5   : > { %v4960_v7 = vrot.slane %v4959_v37, 2  ;;  %v4826_v12 = vadd.f32 %v4825_v11, %v4824_v46  ;;  %v4853_v54 = vadd.f32 %v4852_v43, %v4851_v30  ;;  %v4934_v48 = vadd.f32 %v4933_v15, %v4932_v51 }
 0x8e6   : > { %v4888_v31 = vrot.slane %v4887_v29, 2  ;;  %v4836_v50 = vrot.slane %v4835_v56, 1  ;;  %v4908_v6 = vrot.slane %v4907_v13, 1  ;;  %v4862_v36 = vadd.f32 %v4861_v23, %v4860_v59 }
 0x8e7   : > { %v4943_v21 = vadd.f32 %v4942_v35, %v4941_v44  ;;  %v4845_v62 = vrot.slane %v4844_v39, 1  ;;  %v4917_v26 = vrot.slane %v4916_v58, 1  ;;  %v4871_v2 = vadd.f32 %v4870_v42, %v4869_v52 }
 0x8e8   : > { %v4952_v38 = vadd.f32 %v4951_v45, %v4950_v53  ;;  %v4899_v34 = vrot.slane %v4898_v57, 1  ;;  %v4926_v4 = vrot.slane %v4925_v5, 1  ;;  %v4880_v49 = vadd.f32 %v4879_v22, %v4878_v33 }
 0x8e9   : > { %v4961_v16 = vadd.f32 %v4960_v7, %v4959_v37  ;;  %v4827_v24 = vrot.slane %v4826_v12, 1  ;;  %v4854_v10 = vrot.slane %v4853_v54, 1  ;;  %v4935_v46 = vrot.slane %v4934_v48, 1 }
 0x8ea   : > { %v4889_v60 = vadd.f32 %v4888_v31, %v4887_v29  ;;  %v4837_v30 = vadd.f32 %v4836_v50, %v4835_v56  ;;  %v4909_v51 = vadd.f32 %v4908_v6, %v4907_v13  ;;  %v4863_v59 = vrot.slane %v4862_v36, 1 }
 0x8eb   : > { %v4944_v44 = vrot.slane %v4943_v21, 1  ;;  %v4846_v63 = vadd.f32 %v4845_v62, %v4844_v39  ;;  %v4918_v11 = vadd.f32 %v4917_v26, %v4916_v58  ;;  %v4872_v52 = vrot.slane %v4871_v2, 1 }
 0x8ec   : > { %v4953_v53 = vrot.slane %v4952_v38, 1  ;;  %v4900_v43 = vadd.f32 %v4899_v34, %v4898_v57  ;;  %v4927_v23 = vadd.f32 %v4926_v4, %v4925_v5  ;;  %v4881_v33 = vrot.slane %v4880_v49, 1 }
 0x8ed   : > { %v4962_v37 = vrot.slane %v4961_v16, 1  ;;  %v4828_v35 = vadd.f32 %v4827_v24, %v4826_v12  ;;  %v4855_v42 = vadd.f32 %v4854_v10, %v4853_v54  ;;  %v4936_v45 = vadd.f32 %v4935_v46, %v4934_v48 }
 0x8ee   : > { %v4890_v22 = vrot.slane %v4889_v60, 1  ;;  %v4991_v29 = vsel %vm1254_vm6, %v4909_v51, %v4900_v43  ;;  %v4864_v7 = vadd.f32 %v4863_v59, %v4862_v36  ;;  %v4945_v31 = vadd.f32 %v4944_v44, %v4943_v21 }
 0x8ef   : > { %v4984_v56 = vsel %vm1254_vm6, %v4837_v30, %v4828_v35  ;;  %v4873_v13 = vadd.f32 %v4872_v52, %v4871_v2  ;;  %v4954_v50 = vadd.f32 %v4953_v53, %v4952_v38  ;;  %v4992_v58 = vsel %vm1256_vm7, %v4918_v11, %v4991_v29 }
 0x8f0   : > { %v4963_v39 = vadd.f32 %v4962_v37, %v4961_v16  ;;  %v4993_v57 = vsel %vm1258_vm8, %v4927_v23, %v4992_v58  ;;  %v4882_v5 = vadd.f32 %v4881_v33, %v4880_v49  ;;  %v4985_v6 = vsel %vm1256_vm7, %v4846_v63, %v4984_v56 }
 0x8f1   : > { %v4994_v12 = vsel %vm1260_vm9, %v4936_v45, %v4993_v57  ;;  %v4891_v54 = vadd.f32 %v4890_v22, %v4889_v60  ;;  %v4986_v48 = vsel %vm1258_vm8, %v4855_v42, %v4985_v6 }
 0x8f2   : > { %v4995_v36 = vsel %vm1262_vm10, %v4945_v31, %v4994_v12  ;;  %v4987_v21 = vsel %vm1260_vm9, %v4864_v7, %v4986_v48 }
 0x8f3   : > { %v4996_v62 = vsel %vm1264_vm11, %v4954_v50, %v4995_v36  ;;  %v4988_v26 = vsel %vm1262_vm10, %v4873_v13, %v4987_v21 }
 0x8f4   : > { %v4997_v2 = vsel %vm1266_vm12, %v4963_v39, %v4996_v62  ;;  %v4989_v34 = vsel %vm1264_vm11, %v4882_v5, %v4988_v26 }
 0x8f5   : > { %v4990_v49 = vsel %vm1266_vm12, %v4891_v54, %v4989_v34 }
 0x90b   : > { %v9326_v32 = vpop.f32.mrb[8].mxu1 }
 0x90c   : > { %v9328_v15 = vpop.f32.mrb[9].mxu1 }
 0x917   : > { %v6604_v38 = vpop.f32.mrb[10].mxu1 }
 0x918   : > { %v5076_v4 = vadd.f32 %v6604_v38, %v4997_v2  ;;  %v5070_v16 = vpop.f32.mrb[11].mxu1 }
 0x919   : > { %v5071_v24 = vadd.f32 %v5070_v16, %v4990_v49 }
 0x91a   : > { %v5080_v10 = vmul.f32 0.35355338, %v5076_v4 }
 0x91b   : > { %v5079_v46 = vmul.f32 0.35355338, %v5071_v24 }
 0x91c   : > { %v5082_v60 = vsel %vm797_vm14, %v5080_v10, -1000000.0 }
 0x91d   : > { %v5086_v30 = vsel %vm1088_vm5, %v5082_v60, -inf  ;;  %v5081_v51 = vsel %vm796_vm13, %v5079_v46, -1000000.0 }
 0x91e   : > { %5087 = vmax.xlane.f32.xlu0 %v5086_v30  ;;  %v5083_v59 = vsel %vm1088_vm5, %v5081_v51, -inf }
 0x91f   : > { %5084 = vmax.xlane.f32.xlu1 %v5083_v59 }
 0x9ab   : > { %v5088_v44 = vpop.xlane.xlu0 %5087 }
 0x9ac   : > { %v5090_v63 = vsub.f32 %v5082_v60, %v5088_v44  ;;  %v5085_v11 = vpop.xlane.xlu1 %5084 }
 0x9ad   : > { %v5089_v52 = vsub.f32 %v5081_v51, %v5085_v11 }
 0x9ae   : > { %v5093_v53 = vmul.f32 1.442695, %v5090_v63 }
 0x9af   : > { %v5091_v43 = vmul.f32 1.442695, %v5089_v52 }
 0x9b0   : > { %6868 = vpow2.f32 %v5093_v53 }
 0x9b1   : > { %6870 = vpow2.f32 %v5091_v43 }
 0x9ba   : > { %v6869_v23 = vpop.eup %6868 }
 0x9bb   : > { %v6871_v3 = vpop.eup %6870  ;;  %v5098_v33 = vsel %vm1088_vm5, %v6869_v23, 0.0 }
 0x9bc   : > { %5099 = vadd.xlane.f32.xlu1 %v5098_v33  ;;  %v5095_v18 = vsel %vm1088_vm5, %v6871_v3, 0.0 }
 0x9bd   : > { %5096 = vadd.xlane.f32.xlu0 %v5095_v18 }
 0xa49   : > { %v5100_v37 = vpop.xlane.xlu1 %5099 }
 0xa4a   : > { %6872 = vrcp.f32 %v5100_v37  ;;  %v5097_v35 = vpop.xlane.xlu0 %5096  ;;  %v9912_v37 = vld [vmem:[#allocation27_spill] sm:$0xff] }
 0xa4b   : > { %6874 = vrcp.f32 %v5097_v35 }
 0xa54   : > { %v6873_v42 = vpop.eup %6872 }
 0xa55   : > { %v6875_v45 = vpop.eup %6874  ;;  %v9352_v22 = vmul.f32 %v6873_v42, %v6869_v23  ;;  %v9913_v42 = vld [vmem:[#allocation25_spill] sm:$0xff] }
 0xa56   : > { %v9354_v29 = vmul.f32 %v6875_v45, %v6871_v3 }
 0xa57   : > { %v5163_v7 = vrot.slane %v9352_v22, %v7816_v27  ;;  %v5156_v58 = vcombine.high %v9352_v22, %v9352_v22 }
 0xa58   : > { %v5114_v31 = vrot.slane %v9354_v29, %v7816_v27  ;;  %v5107_v24 = vcombine.high %v9354_v29, %v9354_v29 }
 0xa59   : > { %v5179_v56 = vrot.slane %v5163_v7, %v7816_v27  ;;  %v5171_v13 = vcombine.high %v5163_v7, %v5163_v7  ;;  %v5170_v36 = vrot.slane %v5156_v58, %v7816_v27  ;;  %v9914_v58 = vld [vmem:[#allocation8_spill] sm:$0xff] }
 0xa5a   : > { %v5130_v50 = vrot.slane %v5114_v31, %v7816_v27  ;;  %v5121_v51 = vrot.slane %v5107_v24, %v7816_v27  ;;  %v6979_v24 = vld [vmem:[%s9780_s26 + $0x38] sm:$0x1] }
 0xa5b   : > { %v5240_v39 = vrot.slane %v5179_v56, %v9826_v9  ;;  %v5193_v57 = vrot.slane %v5171_v13, %v7816_v27  ;;  %v5201_v48 = vcombine.high %v5179_v56, %v5179_v56  ;;  %v5172_v18 = vcombine.high %v5170_v36, %v5170_v36 }
 0xa5c   : > { %v5208_v5 = vrot.slane %v5130_v50, %v9826_v9  ;;  %v5137_v52 = vrot.slane %v5121_v51, %v7816_v27 }
 0xa5d   : > { %v5302_v6 = vmul.f32 %v9122_v28, %v5240_v39  ;;  %v5301_v12 = vmul.f32 %v9129_v20, %v5240_v39  ;;  %v5244_v54 = vrot.slane %v5193_v57, %v9826_v9  ;;  %v5248_v38 = vrot.slane %v5201_v48, %v9826_v9 }
 0xa5e   : > { %v5286_v26 = vmul.f32 %v9097_v25, %v5208_v5  ;;  %v5285_v2 = vmul.f32 %v9103_v61, %v5208_v5  ;;  %v5186_v28 = vrot.slane %v5170_v36, %v7816_v27  ;;  %v5122_v20 = vcombine.high %v5114_v31, %v5114_v31 }
 0xa5f   : > { %v5368_v21 = vsel %vm1090_vm4, %v5302_v6, 0.0  ;;  %v5365_v62 = vsel %vm1088_vm5, %v5301_v12, 0.0  ;;  %v5304_v49 = vmul.f32 %v9081_v8, %v5244_v54  ;;  %v5303_v16 = vmul.f32 %v9087_v55, %v5244_v54 }
 0xa60   : > { %5369 = vadd.xlane.f32.xlu1 %v5368_v21  ;;  %5366 = vadd.xlane.f32.xlu0 %v5365_v62  ;;  %v5320_v34 = vsel %vm1090_vm4, %v5286_v26, 0.0  ;;  %v5317_v4 = vsel %vm1088_vm5, %v5285_v2, 0.0  ;;  %v5256_v25 = vrot.slane %v5186_v28, %v9826_v9  ;;  %v5144_v61 = vrot.slane %v5122_v20, %v7816_v27  ;;  %v9916_v62 = vld [vmem:[#allocation32_spill] sm:$0xff]  ;;  %v9917_v2 = vld [vmem:[#allocation31_spill] sm:$0xff] }
 0xa61   : > { %v5374_v10 = vsel %vm1090_vm4, %v5304_v49, 0.0  ;;  %v5371_v46 = vsel %vm1088_vm5, %v5303_v16, 0.0  ;;  %v5306_v60 = vmul.f32 %v9139_v41, %v5248_v38  ;;  %v5305_v30 = vmul.f32 %v9145_v0, %v5248_v38  ;;  %v9919_v16 = vld [vmem:[#allocation37_spill] sm:$0xff] }
 0xa62   : > { %v5212_v8 = vrot.slane %v5144_v61, %v9826_v9  ;;  %v5152_v55 = vcombine.high %v5130_v50, %v5130_v50  ;;  %v5310_v63 = vmul.f32 %v9182_v19, %v5256_v25  ;;  %v5309_v11 = vmul.f32 %v9188_v17, %v5256_v25 }
 0xa63   : > { %v5380_v59 = vsel %vm1090_vm4, %v5306_v60, 0.0  ;;  %v5377_v44 = vsel %vm1088_vm5, %v5305_v30, 0.0  ;;  %v5224_v3 = vrot.slane %v5137_v52, %v9826_v9  ;;  %v5203_v33 = vcombine.high %v5193_v57, %v5193_v57  ;;  %v9915_v57 = vld [vmem:[#allocation28_spill] sm:$0xff] }
 0xa64   : > { %5321 = vadd.xlane.f32.xlu1 %v5320_v34  ;;  %5318 = vadd.xlane.f32.xlu0 %v5317_v4  ;;  %v5288_v41 = vmul.f32 %v9069_v1, %v5212_v8  ;;  %v5287_v0 = vmul.f32 %v9075_v40, %v5212_v8  ;;  %v5392_v53 = vsel %vm1090_vm4, %v5310_v63, 0.0  ;;  %v5389_v43 = vsel %vm1088_vm5, %v5309_v11, 0.0  ;;  %v9920_v63 = vld [vmem:[#allocation34_spill] sm:$0xff] }
 0xa65   : > { %v5216_v23 = vrot.slane %v5152_v55, %v9826_v9  ;;  %v5294_v35 = vmul.f32 %v9912_v37, %v5224_v3  ;;  %v5293_v45 = vmul.f32 %v9913_v42, %v5224_v3  ;;  %v5252_v56 = vrot.slane %v5203_v33, %v9826_v9 }
 0xa66   : > { %v5326_v19 = vsel %vm1090_vm4, %v5288_v41, 0.0  ;;  %v5323_v17 = vsel %vm1088_vm5, %v5287_v0, 0.0  ;;  %v5200_v13 = vrot.slane %v5172_v18, %v7816_v27  ;;  %v5154_v54 = vcombine.high %v5144_v61, %v5144_v61  ;;  %v9921_v41 = vld [vmem:[#allocation33_spill] sm:$0xff] }
 0xa67   : > { %v5290_v1 = vmul.f32 %v9110_v47, %v5216_v23  ;;  %v5289_v40 = vmul.f32 %v9116_v14, %v5216_v23  ;;  %v5344_v47 = vsel %vm1090_vm4, %v5294_v35, 0.0  ;;  %v5202_v14 = vcombine.high %v5186_v28, %v5186_v28  ;;  %v9918_v28 = vld [vmem:[#allocation38_spill] sm:$0xff]  ;;  %v9924_v35 = vld [vmem:[#allocation20_spill] sm:$0xff] }
 0xa68   : > { %5375 = vadd.xlane.f32.xlu1 %v5374_v10  ;;  %5372 = vadd.xlane.f32.xlu0 %v5371_v46  ;;  %v5341_v50 = vsel %vm1088_vm5, %v5293_v45, 0.0  ;;  %v5308_v39 = vmul.f32 %v9914_v58, %v5252_v56  ;;  %v5307_v5 = vmul.f32 %v9915_v57, %v5252_v56  ;;  %v5260_v6 = vrot.slane %v5200_v13, %v9826_v9  ;;  %v6980_v46 = vld [vmem:[%s9780_s26 + $0x30] sm:$0xff]  ;;  %v9925_v45 = vld [vmem:[#allocation35_spill] sm:$0xff]  ;;  %v9929_v57 = vld [vmem:[#allocation40_spill] sm:$0xff] }
 0xa69   : > { %v5332_v7 = vsel %vm1090_vm4, %v5290_v1, 0.0  ;;  %v5329_v31 = vsel %vm1088_vm5, %v5289_v40, 0.0  ;;  %v5264_v12 = vrot.slane %v5202_v14, %v9826_v9  ;;  %v5123_v48 = vcombine.high %v5121_v51, %v5121_v51  ;;  %v9927_v14 = vld [vmem:[#allocation21_spill] sm:$0xff] }
 0xa6a   : > { %v5386_v36 = vsel %vm1090_vm4, %v5308_v39, 0.0  ;;  %v5383_v21 = vsel %vm1088_vm5, %v5307_v5, 0.0  ;;  %v5312_v26 = vmul.f32 %v9916_v62, %v5260_v6  ;;  %v5311_v38 = vmul.f32 %v9917_v2, %v5260_v6  ;;  %v9928_v39 = vld [vmem:[#allocation41_spill] sm:$0xff] }
 0xa6b   : > { %v5314_v20 = vmul.f32 %v9918_v28, %v5264_v12  ;;  %v5220_v34 = vrot.slane %v5154_v54, %v9826_v9  ;;  %v5313_v25 = vmul.f32 %v9919_v16, %v5264_v12  ;;  %v5151_v61 = vrot.slane %v5123_v48, %v7816_v27  ;;  %v9930_v5 = vld [vmem:[#allocation9_spill] sm:$0xff] }
 0xa6c   : > { %5381 = vadd.xlane.f32.xlu1 %v5380_v59  ;;  %5378 = vadd.xlane.f32.xlu0 %v5377_v44  ;;  %v5398_v4 = vsel %vm1090_vm4, %v5312_v26, 0.0  ;;  %v5395_v49 = vsel %vm1088_vm5, %v5311_v38, 0.0  ;;  %v5153_v30 = vcombine.high %v5137_v52, %v5137_v52  ;;  %v5204_v52 = vcombine.high %v5200_v13, %v5200_v13  ;;  %v9926_v13 = vld [vmem:[#allocation36_spill] sm:$0xff] }
 0xa6d   : > { %v5292_v10 = vmul.f32 %v6979_v24, %v5220_v34  ;;  %v5291_v60 = vmul.f32 %v6980_v46, %v5220_v34  ;;  %v5404_v8 = vsel %vm1090_vm4, %v5314_v20, 0.0  ;;  %v5401_v55 = vsel %vm1088_vm5, %v5313_v25, 0.0  ;;  %v9931_v46 = vld [vmem:[#allocation23_spill] sm:$0xff] }
 0xa6e   : > { %v5228_v51 = vrot.slane %v5151_v61, %v9826_v9  ;;  %v5232_v44 = vrot.slane %v5153_v30, %v9826_v9  ;;  %v5268_v33 = vrot.slane %v5204_v52, %v9826_v9  ;;  %v9932_v30 = vld [vmem:[#allocation22_spill] sm:$0xff] }
 0xa6f   : > { %v5338_v27 = vsel %vm1090_vm4, %v5292_v10, 0.0  ;;  %v5335_v59 = vsel %vm1088_vm5, %v5291_v60, 0.0 }
 0xa70   : > { %5393 = vadd.xlane.f32.xlu1 %v5392_v53  ;;  %5390 = vadd.xlane.f32.xlu0 %v5389_v43  ;;  %v5296_v11 = vmul.f32 %v9920_v63, %v5228_v51  ;;  %v5295_v0 = vmul.f32 %v9921_v41, %v5228_v51  ;;  %v5155_v53 = vcombine.high %v5151_v61, %v5151_v61  ;;  %v9922_v43 = vld [vmem:[#allocation30_spill] sm:$0xff] }
 0xa71   : > { %v5298_v23 = vmul.f32 %v9922_v43, %v5232_v44 }
 0xa72   : > { %v5350_v3 = vsel %vm1090_vm4, %v5296_v11, 0.0  ;;  %v5347_v1 = vsel %vm1088_vm5, %v5295_v0, 0.0  ;;  %v5236_v40 = vrot.slane %v5155_v53, %v9826_v9 }
 0xa73   : > { %v5356_v18 = vsel %vm1090_vm4, %v5298_v23, 0.0 }
 0xa74   : > { %5327 = vadd.xlane.f32.xlu1 %v5326_v19  ;;  %5324 = vadd.xlane.f32.xlu0 %v5323_v17  ;;  %v9923_v19 = vld [vmem:[#allocation29_spill] sm:$0xff]  ;;  %v5300_v42 = vmul.f32 %v9924_v35, %v5236_v40  ;;  %v5299_v9 = vmul.f32 %v9927_v14, %v5236_v40 }
 0xa75   : > { %v5297_v17 = vmul.f32 %v9923_v19, %v5232_v44 }
 0xa76   : > { %v5359_v58 = vsel %vm1088_vm5, %v5299_v9, 0.0 }
 0xa77   : > { %v5353_v37 = vsel %vm1088_vm5, %v5297_v17, 0.0 }
 0xa78   : > { %5333 = vadd.xlane.f32.xlu1 %v5332_v7  ;;  %5330 = vadd.xlane.f32.xlu0 %v5329_v31  ;;  %v5315_v7 = vmul.f32 %v9925_v45, %v5268_v33  ;;  %v5362_v31 = vsel %vm1090_vm4, %v5300_v42, 0.0 }
 0xa7a   : > { %v5407_v56 = vsel %vm1088_vm5, %v5315_v7, 0.0 }
 0xa7c   : > { %5345 = vadd.xlane.f32.xlu1 %v5344_v47  ;;  %5342 = vadd.xlane.f32.xlu0 %v5341_v50  ;;  %v5316_v47 = vmul.f32 %v9926_v13, %v5268_v33 }
 0xa7e   : > { %v5410_v50 = vsel %vm1090_vm4, %v5316_v47, 0.0  ;;  %vm9936_vm4 = vmmov %vm9935_vm3 }
 0xa80   : > { %5387 = vadd.xlane.f32.xlu1 %v5386_v36  ;;  %5384 = vadd.xlane.f32.xlu0 %v5383_v21 }
 0xa84   : > { %5399 = vadd.xlane.f32.xlu1 %v5398_v4  ;;  %5396 = vadd.xlane.f32.xlu0 %v5395_v49 }
 0xa88   : > { %5405 = vadd.xlane.f32.xlu1 %v5404_v8  ;;  %5402 = vadd.xlane.f32.xlu0 %v5401_v55 }
 0xa8c   : > { %5339 = vadd.xlane.f32.xlu1 %v5338_v27  ;;  %5336 = vadd.xlane.f32.xlu0 %v5335_v59 }
 0xa90   : > { %5351 = vadd.xlane.f32.xlu1 %v5350_v3  ;;  %5348 = vadd.xlane.f32.xlu0 %v5347_v1 }
 0xa94   : > { %5357 = vadd.xlane.f32.xlu1 %v5356_v18  ;;  %5354 = vadd.xlane.f32.xlu0 %v5353_v37 }
 0xa98   : > { %5363 = vadd.xlane.f32.xlu1 %v5362_v31  ;;  %5408 = vadd.xlane.f32.xlu0 %v5407_v56 }
 0xa9c   : > { %5411 = vadd.xlane.f32.xlu1 %v5410_v50  ;;  %5360 = vadd.xlane.f32.xlu0 %v5359_v58 }
 0xaad   : > { %5769 = vrot.lane.b32.xlu1 %v9928_v39, %s7033_s18 }
 0xab1   : > { %5771 = vrot.lane.b32.xlu1 %v9929_v57, %s7033_s18 }
 0xab2   : > { %6840 = vrot.lane.b32.xlu0 %v9930_v5, %s7034_s16  ;;  %s7037_s16 = smov [#allocation3]  }
 0xab5   : > { %5779 = vrot.lane.b32.xlu1 %v9326_v32, %s7035_s5 }
 0xab6   : > { %5777 = vrot.lane.b32.xlu0 %v9328_v15, %s7035_s5  ;;  %s6177_s5 = sshll.u32 %s7037_s16, 4  ;;  %s6178_s5 = int_to_ptr.vmem [resolvable:$true] %s6177_s5 }
 0xab7   : > { %p6990_p9 = scmp.lt.s32.totalorder %s6178_s5, %s6178_s5 }
 0xaed   : > { %v5370_v6 = vpop.xlane.xlu1 %5369  ;;  %v5367_v12 = vpop.xlane.xlu0 %5366 }
 0xaee   : > { %v5524_v0 = vrot.slane %v5370_v6, %v9931_v46  ;;  %v5520_v53 = vrot.slane %v5367_v12, %v9932_v30 }
 0xaf0   : > { %v5525_v42 = vsel %vm1733_vm15, %v5524_v0, %v5520_v53 }
 0xaf1   : > { %v5322_v54 = vpop.xlane.xlu1 %5321  ;;  %v5319_v48 = vpop.xlane.xlu0 %5318 }
 0xaf2   : > { %v5452_v52 = vrot.slane %v5322_v54, %v9931_v46  ;;  %v5448_v43 = vrot.slane %v5319_v48, %v9932_v30 }
 0xaf4   : > { %v5453_v45 = vsel %vm1733_vm15, %v5452_v52, %v5448_v43 }
 0xaf5   : > { %v5376_v36 = vpop.xlane.xlu1 %5375  ;;  %v5373_v21 = vpop.xlane.xlu0 %5372 }
 0xaf6   : > { %v5533_v60 = vrot.slane %v5376_v36, %v9931_v46  ;;  %v5529_v8 = vrot.slane %v5373_v21, %v9932_v30 }
 0xaf8   : > { %v5534_v17 = vsel %vm1733_vm15, %v5533_v60, %v5529_v8 }
 0xaf9   : > { %v5382_v62 = vpop.xlane.xlu1 %5381  ;;  %v5379_v26 = vpop.xlane.xlu0 %5378  ;;  %v5596_v7 = vsel %vm1254_vm6, %v5534_v17, %v5525_v42  ;;  %v5800_v17 = vld [vmem:[%s7141_s28 + $0x10] sm:$0xff] }
 0xafa   : > { %v5542_v55 = vrot.slane %v5382_v62, %v9931_v46  ;;  %v5538_v51 = vrot.slane %v5379_v26, %v9932_v30 }
 0xafc   : > { %v5543_v3 = vsel %vm1733_vm15, %v5542_v55, %v5538_v51 }
 0xafd   : > { %v9465_v2 = vpop.xlane.xlu1 %5393  ;;  %v9467_v38 = vpop.xlane.xlu0 %5390  ;;  %v5597_v47 = vsel %vm1256_vm7, %v5543_v3, %v5596_v7 }
 0xafe   : > { %v5560_v14 = vrot.slane %v9465_v2, %v9931_v46  ;;  %v5556_v9 = vrot.slane %v9467_v38, %v9932_v30 }
 0xb01   : > { %v5328_v28 = vpop.xlane.xlu1 %5327  ;;  %v5325_v20 = vpop.xlane.xlu0 %5324 }
 0xb02   : > { %v5461_v44 = vrot.slane %v5328_v28, %v9931_v46  ;;  %v5457_v63 = vrot.slane %v5325_v20, %v9932_v30 }
 0xb04   : > { %v5462_v1 = vsel %vm1733_vm15, %v5461_v44, %v5457_v63 }
 0xb05   : > { %v5334_v34 = vpop.xlane.xlu1 %5333  ;;  %v5331_v4 = vpop.xlane.xlu0 %5330  ;;  %v5589_v31 = vsel %vm1254_vm6, %v5462_v1, %v5453_v45  ;;  %v5801_v1 = vld [vmem:[%s7141_s28 + $0x18] sm:$0xff]  ;;  %vm9937_vm6 = vmmov %vm9935_vm3 }
 0xb06   : > { %v5470_v11 = vrot.slane %v5334_v34, %v9931_v46  ;;  %v5466_v41 = vrot.slane %v5331_v4, %v9932_v30  ;;  %v5561_v34 = vsel %vm1733_vm15, %v5560_v14, %v5556_v9 }
 0xb08   : > { %v5471_v40 = vsel %vm1733_vm15, %v5470_v11, %v5466_v41 }
 0xb09   : > { %v5346_v49 = vpop.xlane.xlu1 %5345  ;;  %v5343_v32 = vpop.xlane.xlu0 %5342  ;;  %v5590_v50 = vsel %vm1256_vm7, %v5471_v40, %v5589_v31  ;;  %v6736_v40 = vpack.c.bf16 %v5801_v1, %v5800_v17  ;;  %v9934_v31 = vld [vmem:[#allocation24_spill] sm:$0xff] }
 0xb0a   : > { %v5488_v58 = vrot.slane %v5346_v49, %v9931_v46  ;;  %v5484_v39 = vrot.slane %v5343_v32, %v9932_v30 }
 0xb0c   : > { %v5489_v4 = vsel %vm1733_vm15, %v5488_v58, %v5484_v39  ;;  %v6981_v39 = vld [vmem:[#allocation2 + $0x8] sm:$0xff] }
 0xb0d   : > { %v5388_v16 = vpop.xlane.xlu1 %5387  ;;  %v5385_v15 = vpop.xlane.xlu0 %5384 }
 0xb0e   : > { %v5551_v33 = vrot.slane %v5388_v16, %v9931_v46  ;;  %v5547_v18 = vrot.slane %v5385_v15, %v9932_v30 }
 0xb10   : > { %v5552_v57 = vsel %vm1733_vm15, %v5551_v33, %v5547_v18 }
 0xb11   : > { %v5400_v25 = vpop.xlane.xlu1 %5399  ;;  %v5397_v61 = vpop.xlane.xlu0 %5396  ;;  %v5598_v28 = vsel %vm1258_vm8, %v5552_v57, %v5597_v47 }
 0xb12   : > { %v5569_v6 = vrot.slane %v5400_v25, %v9931_v46  ;;  %v5565_v12 = vrot.slane %v5397_v61, %v9932_v30  ;;  %v5599_v16 = vsel %vm1260_vm9, %v5561_v34, %v5598_v28 }
 0xb14   : > { %v5570_v49 = vsel %vm1733_vm15, %v5569_v6, %v5565_v12  ;;  %v6982_v6 = vld [vmem:[#allocation2] sm:$0xff] }
 0xb15   : > { %v5406_v24 = vpop.xlane.xlu1 %5405  ;;  %v5403_v10 = vpop.xlane.xlu0 %5402 }
 0xb16   : > { %v5578_v36 = vrot.slane %v5406_v24, %v9931_v46  ;;  %v5574_v21 = vrot.slane %v5403_v10, %v9932_v30 }
 0xb18   : > { %v5579_v15 = vsel %vm1733_vm15, %v5578_v36, %v5574_v21 }
 0xb19   : > { %v5340_v27 = vpop.xlane.xlu1 %5339  ;;  %v5337_v59 = vpop.xlane.xlu0 %5336 }
 0xb1a   : > { %v5479_v37 = vrot.slane %v5340_v27, %v9931_v46  ;;  %v5475_v35 = vrot.slane %v5337_v59, %v9932_v30  ;;  %v5600_v27 = vsel %vm1262_vm10, %v5570_v49, %v5599_v16  ;;  %v5930_v49 = vld [vmem:[%s7157_s23] sm:$0xff]  ;;  %v5932_v16 = vld [vmem:[%s7157_s23 + $0x10] sm:$0xff] }
 0xb1b   : > { %v5601_v44 = vsel %vm1264_vm11, %v5579_v15, %v5600_v27  ;;  %v6028_v27 = vld [vmem:[%s7167_s22 + $0x20] sm:$0xff] }
 0xb1c   : > { %v5480_v5 = vsel %vm1733_vm15, %v5479_v37, %v5475_v35 }
 0xb1d   : > { %v5352_v23 = vpop.xlane.xlu1 %5351  ;;  %v5349_v19 = vpop.xlane.xlu0 %5348  ;;  %v5591_v20 = vsel %vm1258_vm8, %v5480_v5, %v5590_v50 }
 0xb1e   : > { %v5497_v54 = vrot.slane %v5352_v23, %v9931_v46  ;;  %v5493_v48 = vrot.slane %v5349_v19, %v9932_v30  ;;  %v5592_v25 = vsel %vm1260_vm9, %v5489_v4, %v5591_v20  ;;  %v5798_v23 = vld [vmem:[%s7141_s28] sm:$0xff]  ;;  %v5799_v19 = vld [vmem:[%s7141_s28 + $0x8] sm:$0xff] }
 0xb1f   : > { %v6732_v3 = vpack.c.bf16 %v5799_v19, %v5798_v23  ;;  %v6398_v23 = vld [vmem:[%s655_s4] ss:$0 sm:$0xff]  ;;  %s9943_s4 = scalar_lea.vmem %s9640_s6, %s7131_s20 }
 0xb20   : > { %v5498_v32 = vsel %vm1733_vm15, %v5497_v54, %v5493_v48 }
 0xb21   : > { %v5358_v56 = vpop.xlane.xlu1 %5357  ;;  %v5355_v13 = vpop.xlane.xlu0 %5354  ;;  %v5593_v59 = vsel %vm1262_vm10, %v5498_v32, %v5592_v25  ;;  %6733 = vmatprep.subr.bf16.mxu1 %v6732_v3  ;;  %v5931_v32 = vld [vmem:[%s7157_s23 + $0x8] sm:$0xff]  ;;  %v5933_v25 = vld [vmem:[%s7157_s23 + $0x18] sm:$0xff]  ;;  %vm6039_vm10 = vcmask 523264  }
 0xb22   : > { %v5506_v62 = vrot.slane %v5358_v56, %v9931_v46  ;;  %v5502_v26 = vrot.slane %v5355_v13, %v9932_v30  ;;  %6735 = vmatpush3.bf16.msra.mxu1 %v6732_v3  ;;  %v6740_v15 = vpack.c.bf16 %v5931_v32, %v5930_v49 }
 0xb23   : > { %6737 = vmatprep.subr.bf16.mxu1 %v6736_v40 }
 0xb24   : > { %v5507_v61 = vsel %vm1733_vm15, %v5506_v62, %v5502_v26 }
 0xb25   : > { %v5364_v2 = vpop.xlane.xlu1 %5363  ;;  %v5409_v38 = vpop.xlane.xlu0 %5408  ;;  %v5594_v41 = vsel %vm1264_vm11, %v5507_v61, %v5593_v59  ;;  %v6744_v61 = vpack.c.bf16 %v5933_v25, %v5932_v16  ;;  %v6029_v59 = vld [vmem:[%s7167_s22 + $0x28] sm:$0xff] }
 0xb26   : > { %v5515_v60 = vrot.slane %v5364_v2, %v9931_v46  ;;  %v5583_v8 = vrot.slane %v5409_v38, %v9932_v30  ;;  %6739 = vmatpush3.bf16.msra.mxu1 %v6736_v40 }
 0xb29   : > { %v5412_v24 = vpop.xlane.xlu1 %5411  ;;  %v5361_v10 = vpop.xlane.xlu0 %5360 }
 0xb2a   : > { %v5587_v55 = vrot.slane %v5412_v24, %v9931_v46  ;;  %v5511_v51 = vrot.slane %v5361_v10, %v9932_v30  ;;  %v6024_v24 = vld [vmem:[%s7167_s22] sm:$0xff]  ;;  %v6025_v10 = vld [vmem:[%s7167_s22 + $0x8] sm:$0xff] }
 0xb2c   : > { %v5588_v63 = vsel %vm1733_vm15, %v5587_v55, %v5583_v8  ;;  %v5516_v11 = vsel %vm1733_vm15, %v5515_v60, %v5511_v51  ;;  %v6026_v60 = vld [vmem:[%s7167_s22 + $0x10] sm:$0xff]  ;;  %v6748_v8 = vpack.c.bf16 %v6025_v10, %v6024_v24  ;;  %v6027_v55 = vld [vmem:[%s7167_s22 + $0x18] sm:$0xff]  ;;  %v6406_v10 = vld [vmem:[%s661_s1] ss:$0 sm:$0xff] }
 0xb2d   : > { %v6841_v0 = vpop.permute.xlu0 %6840  ;;  %v5595_v46 = vsel %vm1266_vm12, %v5516_v11, %v5594_v41  ;;  %v5602_v30 = vsel %vm1266_vm12, %v5588_v63, %v5601_v44  ;;  %v6752_v51 = vpack.c.bf16 %v6027_v55, %v6026_v60  ;;  %v6756_v44 = vpack.c.bf16 %v6029_v59, %v6028_v27 }
 0xb2e   : > { %v6843_v53 = vunpack.i.h.bf16 %v6841_v0  ;;  %v6842_v52 = vunpack.i.l.bf16 %v6841_v0  ;;  %6609 = vmatprep.mubr.msk.f32.mxu0 %vm1884_vm0, %v5595_v46  ;;  %6749 = vmatprep.subr.bf16.mxu1 %v6748_v8 }
 0xb2f   : > { %6610 = vmatmul.mubr.msk.f32.vlgmr.msra.gmra.mrb[12].mxu0 %vm1884_vm0, %v5602_v30 }
 0xb30   : > { %v6728_v43 = vpack.c.bf16 %v6843_v53, %v6842_v52  ;;  %6616 = vmatprep.mubr.msk.f32.mxu0 %vm1088_vm5, %v9354_v29  ;;  %v5770_v29 = vpop.permute.xlu1 %5769  ;;  %v6397_v52 = vld [vmem:[%s652_s0] ss:$0 sm:$0xff] }
 0xb31   : > { %v5778_v42 = vpop.permute.xlu0 %5777 }
 0xb32   : > { %6729 = vmatprep.subr.bf16.mxu0 %v6728_v43 }
 0xb33   : > { %6731 = vmatpush3.bf16.msra.mxu0 %v6728_v43 }
 0xb34   : > { %v5772_v37 = vpop.permute.xlu1 %5771  ;;  %6741 = vmatprep.subr.bf16.mxu0 %v6740_v15 }
 0xb35   : > { %v5792_v56 = vsel %vm798_vm2, %v9934_v31, %v5772_v37 }
 0xb37   : > { %6617 = vmatmul.mubr.msk.f32.vlgmr.msra.gmra.mrb[12].mxu0 %vm1088_vm5, %v9352_v22  ;;  %v9933_v22 = vld [vmem:[#allocation26_spill] sm:$0xff] }
 0xb38   : > { %v5780_v35 = vpop.permute.xlu1 %5779  ;;  %v5791_v45 = vsel %vm798_vm2, %v9933_v22, %v5770_v29  ;;  %vm9938_vm2 = vmmov %vm9935_vm3  ;;  %6743 = vmatpush3.bf16.msra.mxu0 %v6740_v15  ;;  %v6031_v29 = vld [vmem:[%s7167_s22 + $0x38] sm:$0xff]  ;;  %v6405_v15 = vld [vmem:[%s658_s27] ss:$0 sm:$0xff]  ;;  %s6983_s27 = scalar_lea.vmem %s6178_s5, 256 }
 0xb39   : > { %v5793_v13 = vsel %vm1088_vm5, %v5791_v45, %v5778_v42  ;;  %v5794_v14 = vsel %vm1088_vm5, %v5792_v56, %v5780_v35  ;;  %vm9939_vm5 = vmmov %vm9938_vm2  ;;  %6745 = vmatprep.subr.bf16.mxu0 %v6744_v61  ;;  %v6399_v35 = vld [vmem:[%s9943_s4] ss:$0 sm:$0xff]  ;;  %p6984_p6 = scmp.ne.s32.totalorder %s6178_s5, %s6983_s27  ;;  %p6991_p10 = scmp.lt.s32.totalorder %s6983_s27, %s6983_s27 }
 0xb3a   : > { %vm9940_vm7 = vmmov %vm9938_vm2 }
 0xb3b   : > { %vm9941_vm8 = vmmov %vm9938_vm2  ;;  %p6985_p7 = pnand %p6984_p6, %p6776_p5  ;;  %p6992_p11 = por %p6991_p10, %p6990_p9 }
 0xb3c   : > { %6747 = vmatpush3.bf16.msra.mxu0 %v6744_v61  ;;  %vm9942_vm9 = vmmov %vm9938_vm2 }
 0xb3d   : > { %vm9944_vm11 = vmmov %vm9938_vm2  ;;  %p6986_p8 = pneg %p6985_p7 }
 0xb3e   : > { %vm9945_vm12 = vmmov %vm9938_vm2 }
 0xb3f   : > { %vm9946_vm13 = vmmov %vm9938_vm2  ;;  %p6993_p12 = pnand %p6992_p11, %p6986_p8 }
 0xb40   : > { %vm9947_vm14 = vmmov %vm9938_vm2 }
 0xb41   : > { %vm9948_vm15 = vmmov %vm9938_vm2 }
 0xb42   : > { %vm9949_vm0 = vmmov %vm9938_vm2 }
 0xc0a   : > { %v6618_v33 = vpop.f32.mrb[12].mxu0 }
 0xc0b   : > { %5787 = vrot.lane.b32.xlu1 %v6618_v33, %s7036_s25  ;;  %v5758_v18 = vpop.f32.mrb[13].mxu0 }
 0xc0c   : > { %5785 = vrot.lane.b32.xlu0 %v5758_v18, %s7036_s25  ;;  %v6030_v18 = vld [vmem:[%s7167_s22 + $0x30] sm:$0xff] }
 0xc0d   : > { %v6760_v37 = vpack.c.bf16 %v6031_v29, %v6030_v18 }
 0xc7d   : > { %v5788_v7 = vpop.permute.xlu1 %5787 }
 0xc7e   : > { %v5786_v47 = vpop.permute.xlu0 %5785  ;;  %v5797_v50 = vsel %vm5795_vm1, %v5794_v14, %v5788_v7 }
 0xc7f   : > { %v5796_v9 = vsel %vm5795_vm1, %v5793_v13, %v5786_v47  ;;  %v6402_v13 = vld [vmem:[%s649_s15] ss:$0 sm:$0xff]  ;;  %vm9950_vm1 = vmmov %vm9949_vm0 }
 0xc80   : > { %6627 = vmatprep.mubr.msk.f32.mxu1 %vm9935_vm3, %v5796_v9  ;;  %vm9951_vm3 = vmmov %vm9949_vm0 }
 0xc81   : > { %6628 = vmatmul.mubr.msk.f32.vlgmr.msra.gmra.mrb[12].mxu1 %vm9936_vm4, %v5797_v50 }
 0xc82   : > { %6751 = vmatpush3.bf16.msra.mxu1 %v6748_v8 }
 0xc83   : > { %6753 = vmatprep.subr.bf16.mxu1 %v6752_v51 }
 0xc86   : > { %6755 = vmatpush3.bf16.msra.mxu1 %v6752_v51 }
 0xc87   : > { %6757 = vmatprep.subr.bf16.mxu1 %v6756_v44 }
 0xc8a   : > { %6759 = vmatpush3.bf16.msra.mxu1 %v6756_v44 }
 0xc8b   : > { %6761 = vmatprep.subr.bf16.mxu1 %v6760_v37 }
 0xc8e   : > { %6763 = vmatpush3.bf16.msra.mxu1 %v6760_v37 }
 0xd54   : > { %v6629_v58 = vpop.f32.mrb[12].mxu1 }
 0xd55   : > { %v5884_v57 = vadd.f32 %v6981_v39, %v6629_v58  ;;  %v5874_v5 = vpop.f32.mrb[13].mxu1 }
 0xd56   : > { %v5883_v12 = vadd.f32 %v6982_v6, %v5874_v5 }
 0xd57   : > { %v5888_v54 = vsel %vm9937_vm6, %v5884_v57, 0.0 }
 0xd58   : > { %5889 = vadd.xlane.f32.xlu1 %v5888_v54  ;;  %v5885_v48 = vsel %vm9938_vm2, %v5883_v12, 0.0 }
 0xd59   : > { %5886 = vadd.xlane.f32.xlu0 %v5885_v48 }
 0xde5   : > { %v5890_v36 = vpop.xlane.xlu1 %5889 }
 0xde6   : > { %v5893_v21 = vmul.f32 0.03125, %v5890_v36  ;;  %v5887_v62 = vpop.xlane.xlu0 %5886 }
 0xde7   : > { %v5892_v26 = vmul.f32 0.03125, %v5887_v62 }
 0xde8   : > { %v5895_v2 = vsub.f32 %v5884_v57, %v5893_v21 }
 0xde9   : > { %v5894_v38 = vsub.f32 %v5883_v12, %v5892_v26 }
 0xdea   : > { %v5897_v34 = vmul.f32 %v5895_v2, %v5895_v2 }
 0xdeb   : > { %v5896_v28 = vmul.f32 %v5894_v38, %v5894_v38 }
 0xdec   : > { %v5901_v4 = vsel %vm9940_vm7, %v5897_v34, 0.0 }
 0xded   : > { %v5898_v20 = vsel %vm9939_vm5, %v5896_v28, 0.0 }
 0xdee   : > { %5899 = vadd.xlane.f32.xlu0 %v5898_v20 }
 0xdf2   : > { %5902 = vadd.xlane.f32.xlu0 %v5901_v4 }
 0xe7b   : > { %v5900_v63 = vpop.xlane.xlu0 %5899 }
 0xe7c   : > { %v5904_v11 = vmul.f32 0.03125, %v5900_v63 }
 0xe7e   : > { %v5906_v41 = vadd.f32 1e-05, %v5904_v11 }
 0xe7f   : > { %v5903_v0 = vpop.xlane.xlu0 %5902 }
 0xe80   : > { %6876 = vrsqrt.f32 %v5906_v41  ;;  %v5905_v46 = vmul.f32 0.03125, %v5903_v0 }
 0xe82   : > { %v5907_v30 = vadd.f32 1e-05, %v5905_v46 }
 0xe84   : > { %6878 = vrsqrt.f32 %v5907_v30 }
 0xe8a   : > { %v6877_v53 = vpop.eup %6876 }
 0xe8b   : > { %v5910_v43 = vmul.f32 %v6877_v53, %v5894_v38 }
 0xe8d   : > { %v5919_v19 = vmul.f32 %v6397_v52, %v5910_v43 }
 0xe8e   : > { %v6879_v17 = vpop.eup %6878 }
 0xe8f   : > { %v5911_v3 = vmul.f32 %v6879_v17, %v5895_v2  ;;  %v5928_v1 = vadd.f32 %v6398_v23, %v5919_v19 }
 0xe91   : > { %v5920_v40 = vmul.f32 %v6397_v52, %v5911_v3  ;;  %6638 = vmatprep.mubr.msk.f32.mxu0 %vm9941_vm8, %v5928_v1 }
 0xe93   : > { %v5929_v33 = vadd.f32 %v6398_v23, %v5920_v40 }
 0xe95   : > { %6639 = vmatmul.mubr.msk.f32.vlgmr.msra.gmra.mrb[14].mxu0 %vm9942_vm9, %v5929_v33 }
 0xf68   : > { %v6640_v42 = vpop.f32.mrb[14].mxu0 }
 0xf69   : > { %v6019_v22 = vadd.f32 %v6640_v42, %v6399_v35  ;;  %v6013_v45 = vpop.f32.mrb[15].mxu0 }
 0xf6a   : > { %v6014_v7 = vadd.f32 %v6399_v35, %v6013_v45 }
 0xf6b   : > { %v6023_v56 = vmax.f32 %v6019_v22, 0.0 }
 0xf6c   : > { %v6022_v31 = vmax.f32 %v6014_v7, 0.0 }
 0xf6e   : > { %6657 = vmatprep.mubr.msk.f32.mxu1 %vm6039_vm10, %v6022_v31 }
 0xf6f   : > { %6658 = vmatmul.mubr.msk.f32.vlgmr.msra.gmra.mrb[14].mxu1 %vm6039_vm10, %v6023_v56 }
0x1042   : > { %v6659_v47 = vpop.f32.mrb[14].mxu1 }
0x1043   : > { %v6118_v14 = vadd.f32 %v6659_v47, %v6402_v13  ;;  %v6112_v9 = vpop.f32.mrb[15].mxu1 }
0x1044   : > { %v6113_v50 = vadd.f32 %v6402_v13, %v6112_v9 }
0x1045   : > { %v6122_v58 = vadd.f32 %v6118_v14, %v5929_v33 }
0x1046   : > { %v6121_v39 = vadd.f32 %v6113_v50, %v5928_v1 }
0x1047   : > { %v6126_v57 = vsel %vm9944_vm11, %v6122_v58, 0.0 }
0x1048   : > { %6127 = vadd.xlane.f32.xlu0 %v6126_v57  ;;  %v6123_v5 = vsel %vm9945_vm12, %v6121_v39, 0.0 }
0x1049   : > { %6124 = vadd.xlane.f32.xlu1 %v6123_v5 }
0x10d5   : > { %v6128_v6 = vpop.xlane.xlu0 %6127 }
0x10d6   : > { %v6130_v12 = vmul.f32 0.03125, %v6128_v6  ;;  %v6125_v54 = vpop.xlane.xlu1 %6124 }
0x10d7   : > { %v6129_v48 = vmul.f32 0.03125, %v6125_v54 }
0x10d8   : > { %v6132_v36 = vsub.f32 %v6122_v58, %v6130_v12 }
0x10d9   : > { %v6131_v21 = vsub.f32 %v6121_v39, %v6129_v48 }
0x10da   : > { %v6134_v62 = vmul.f32 %v6132_v36, %v6132_v36 }
0x10db   : > { %v6133_v26 = vmul.f32 %v6131_v21, %v6131_v21 }
0x10dc   : > { %v6138_v2 = vsel %vm9946_vm13, %v6134_v62, 0.0 }
0x10dd   : > { %6139 = vadd.xlane.f32.xlu0 %v6138_v2  ;;  %v6135_v38 = vsel %vm9947_vm14, %v6133_v26, 0.0 }
0x10de   : > { %6136 = vadd.xlane.f32.xlu1 %v6135_v38 }
0x116a   : > { %v6140_v28 = vpop.xlane.xlu0 %6139 }
0x116b   : > { %v6142_v20 = vmul.f32 0.03125, %v6140_v28  ;;  %v6137_v34 = vpop.xlane.xlu1 %6136 }
0x116c   : > { %v6141_v4 = vmul.f32 0.03125, %v6137_v34 }
0x116d   : > { %v6144_v49 = vadd.f32 1e-05, %v6142_v20 }
0x116e   : > { %v6143_v32 = vadd.f32 1e-05, %v6141_v4 }
0x116f   : > { %6880 = vrsqrt.f32 %v6144_v49 }
0x1170   : > { %6882 = vrsqrt.f32 %v6143_v32 }
0x1179   : > { %v6881_v16 = vpop.eup %6880 }
0x117a   : > { %v6883_v25 = vpop.eup %6882  ;;  %v6148_v61 = vmul.f32 %v6881_v16, %v6132_v36 }
0x117b   : > { %v6147_v24 = vmul.f32 %v6883_v25, %v6131_v21 }
0x117c   : > { %v6157_v60 = vmul.f32 %v6405_v15, %v6148_v61 }
0x117d   : > { %v6156_v8 = vmul.f32 %v6405_v15, %v6147_v24 }
0x117e   : > { %v6166_v55 = vadd.f32 %v6406_v10, %v6157_v60 }
0x117f   : > { %v6165_v51 = vadd.f32 %v6406_v10, %v6156_v8 }
0x1180   : > { %6168 = vst.msk [vmem:[#allocation2 + $0x8] sm:$0xff] %vm9948_vm15, %v6166_v55 }
0x1181   : > { %6170 = vst.msk [vmem:[#allocation3 + $0x8] sm:$0xff] %vm9949_vm0, %v6166_v55 }
0x1182   : > { %6167 = vst.msk [vmem:[#allocation2] sm:$0xff] %vm9950_vm1, %v6165_v51 }
0x1183   : > { %6169 = vst.msk [vmem:[#allocation3] sm:$0xff] %vm9951_vm3, %v6165_v51 }
0x1184   : > { %6996 = shalt.err (!%p6993_p12)
}
0x1185   : > { %s9952_s25 = sld [smem:[#allocation50_spill]] }
0x118b   : > { %s6997_s28 = scalar_lea.hbm %s9952_s25, 256 }
0x118c   : > { %p6998_p13 = scmp.ne.s32.totalorder %s9952_s25, %s6997_s28  ;;  %p7003_p2 = scmp.lt.u32.totalorder %s6997_s28, %s9952_s25 }
0x118e   : > { %p6999_p0 = pnand %p6998_p13, %p6776_p5 }
0x1190   : > { %p7000_p1 = pneg %p6999_p0 }
0x1192   : > { %p7005_p3 = pnand %p7003_p2, %p7000_p1 }
0x1194   : > { %7008 = shalt.err (!%p7005_p3)
}
0x1195   : > { %s7038_s14 = smov 128  }
0x1196   : > { %6773 = dma.vmem_to_hbm [thread:$0]  (%p6776_p5), %s6178_s5, 256, %s9952_s25, [#allocation4], %s7038_s14, %s7038_s14, %s7033_s18  }
0x1197   : > { %7014 = dma.done.wait (%p6776_p5), [#allocation4], 256  }
0x1198   : > { %7016 = vsyncadd (%p6776_p5), [#allocation4], 4294967040 }
0x1199 PF: > { %s9953_s2 = sld [smem:[#allocation6_spill]] }
0x119f   : > { %s26_s18 = sadd.s32 1, %s9953_s2  }
0x11a0   : > { %p23_p4 = scmp.ge.s32.totalorder %s26_s18, 4  }
0x11a2   :  { %25 = sbr.rel (!%p23_p4) target bundleno = 11 (0xb), region = 144 }
0x11a9   :  { %6193 = vsyncpa [#allocation4], 1 }
0x11aa   :  { %6195 = vsyncpa [#allocation4 + $0x1], 1 }

</bundles_post_ra>
